<compile_context>
chip_gen: v6e
topology: v6e:2x2x1
jax: 0.10.0
libtpu: 0.0.40
codegen_flags: <defaults>
</compile_context>

<pallas_src>
import functools

import jax
import jax.numpy as jnp
from jax import lax
from jax.experimental import pallas as pl
from jax.experimental.pallas import tpu as pltpu


def _round_up(x, m):
    return ((x + m - 1) // m) * m


def _choose_chunk(seq_len, max_chunk=16):
    t = min(seq_len, max_chunk)
    while seq_len % t != 0:
        t -= 1
    return t


# ---------------------------------------------------------------------------
# Fused kernel.  Grid iterates sequentially over time chunks ("arbitrary").
# refs layout: x, (w_ih_t, w_hh_t, b) * L, w_fc_t, b_fc, out, h, c, gates, act
# Gate order matches PyTorch nn.LSTM: i, f, g, o.
# ---------------------------------------------------------------------------
def _fused_lstm_fc_kernel(num_layers, T, Bp, Hp, *refs):
    n_in = 1 + 3 * num_layers + 2
    x_ref = refs[0]
    layer_refs = refs[1:1 + 3 * num_layers]
    w_fc_ref = refs[1 + 3 * num_layers]
    b_fc_ref = refs[2 + 3 * num_layers]
    out_ref = refs[n_in]
    h_ref, c_ref, gates_ref, act_ref = refs[n_in + 1:]

    chunk = pl.program_id(0)
    four_hp = 4 * Hp

    @pl.when(chunk == 0)
    def _init():
        h_ref[...] = jnp.zeros_like(h_ref)
        c_ref[...] = jnp.zeros_like(c_ref)

    for l in range(num_layers):
        w_ih_ref = layer_refs[3 * l + 0]
        w_hh_ref = layer_refs[3 * l + 1]
        b_ref = layer_refs[3 * l + 2]

        # --- input projection for the whole chunk: ONE big MXU matmul ---
        if l == 0:
            x2d = x_ref[0]                                       # (T*Bp, Din) bf16
        else:
            x2d = act_ref[...].reshape(T * Bp, Hp).astype(jnp.bfloat16)
        gx = jnp.dot(x2d, w_ih_ref[...],
                     preferred_element_type=jnp.float32) + b_ref[...]
        gates_ref[...] = gx.reshape(T, Bp, four_hp)

        # --- serial recurrence: only h @ w_hh per step ---
        def step(t, carry, _l=l):
            h, c = carry
            g = gates_ref[t] + jnp.dot(h.astype(jnp.bfloat16), w_hh_ref[...],
                                       preferred_element_type=jnp.float32)
            i = jax.nn.sigmoid(g[:, 0 * Hp:1 * Hp])
            f = jax.nn.sigmoid(g[:, 1 * Hp:2 * Hp])
            gg = jnp.tanh(g[:, 2 * Hp:3 * Hp])
            o = jax.nn.sigmoid(g[:, 3 * Hp:4 * Hp])
            c_new = f * c + i * gg
            h_new = o * jnp.tanh(c_new)
            if _l < num_layers - 1:
                act_ref[t] = h_new        # next layer's input; stays in VMEM
            return h_new, c_new

        h, c = lax.fori_loop(0, T, step, (h_ref[l], c_ref[l]), unroll=True)
        h_ref[l] = h
        c_ref[l] = c

    # --- fused Linear + LeakyReLU on the last timestep of the last layer ---
    @pl.when(chunk == pl.num_programs(0) - 1)
    def _fc():
        h_last = h_ref[num_layers - 1]
        y = jnp.dot(h_last.astype(jnp.bfloat16), w_fc_ref[...],
                    preferred_element_type=jnp.float32) + b_fc_ref[...]
        out_ref[...] = jnp.where(y >= 0, y, 0.01 * y)


# ---------------------------------------------------------------------------
# Parameter init (PyTorch-style uniform(-1/sqrt(H), 1/sqrt(H))).
# ---------------------------------------------------------------------------
def init_params(key, input_dim, hidden_dim, layer_dim, output_dim):
    params = {"lstm": [], "fc": None}
    scale = 1.0 / jnp.sqrt(jnp.float32(hidden_dim))
    for layer in range(layer_dim):
        d_in = input_dim if layer == 0 else hidden_dim
        key, k1, k2, k3, k4 = jax.random.split(key, 5)
        params["lstm"].append({
            "w_ih": jax.random.uniform(k1, (4 * hidden_dim, d_in),
                                       jnp.float32, -scale, scale),
            "w_hh": jax.random.uniform(k2, (4 * hidden_dim, hidden_dim),
                                       jnp.float32, -scale, scale),
            "b_ih": jax.random.uniform(k3, (4 * hidden_dim,),
                                       jnp.float32, -scale, scale),
            "b_hh": jax.random.uniform(k4, (4 * hidden_dim,),
                                       jnp.float32, -scale, scale),
        })
    key, k1, k2 = jax.random.split(key, 3)
    params["fc"] = {
        "w": jax.random.uniform(k1, (output_dim, hidden_dim),
                                jnp.float32, -scale, scale),
        "b": jax.random.uniform(k2, (output_dim,),
                                jnp.float32, -scale, scale),
    }
    return params


# ---------------------------------------------------------------------------
# One-time weight prep: pad each gate block to H_pad (multiple of 128),
# transpose, cast matmul operands to bf16.  Zero padding keeps math exact.
# ---------------------------------------------------------------------------
def prepare_params(params, input_dim, hidden_dim, output_dim):
    H = hidden_dim
    Hp = _round_up(H, 128)
    Op = _round_up(output_dim, 128)

    def pad_gate_rows(w):                       # (4H, X) -> (4*Hp, X)
        x_dim = w.shape[1]
        w4 = w.reshape(4, H, x_dim)
        w4 = jnp.pad(w4, ((0, 0), (0, Hp - H), (0, 0)))
        return w4.reshape(4 * Hp, x_dim)

    layers = []
    for idx, p in enumerate(params["lstm"]):
        w_ih = pad_gate_rows(p["w_ih"])         # (4Hp, d_in)
        if idx > 0:
            w_ih = jnp.pad(w_ih, ((0, 0), (0, Hp - H)))       # (4Hp, Hp)
        w_hh = pad_gate_rows(p["w_hh"])
        w_hh = jnp.pad(w_hh, ((0, 0), (0, Hp - H)))           # (4Hp, Hp)
        b = (p["b_ih"] + p["b_hh"]).reshape(4, H)
        b = jnp.pad(b, ((0, 0), (0, Hp - H))).reshape(1, 4 * Hp)
        layers.append({
            "w_ih_t": jnp.transpose(w_ih).astype(jnp.bfloat16),
            "w_hh_t": jnp.transpose(w_hh).astype(jnp.bfloat16),
            "b": b.astype(jnp.float32),
        })

    w_fc = jnp.pad(params["fc"]["w"],
                   ((0, Op - output_dim), (0, Hp - H)))        # (Op, Hp)
    b_fc = jnp.pad(params["fc"]["b"], (0, Op - output_dim)).reshape(1, Op)
    return {
        "layers": layers,
        "w_fc_t": jnp.transpose(w_fc).astype(jnp.bfloat16),
        "b_fc": b_fc.astype(jnp.float32),
    }


# ---------------------------------------------------------------------------
# Forward builder (static config captured by closure; weights are a pytree).
# x: (B, S, input_dim) batch_first, like the PyTorch module.
# ---------------------------------------------------------------------------
def make_forward(input_dim, hidden_dim, layer_dim, output_dim,
                 chunk_timesteps=16):
    Hp = _round_up(hidden_dim, 128)
    Op = _round_up(output_dim, 128)

    def forward(prepared, x):
        B, S, Din = x.shape
        Bp = _round_up(B, 8)
        T = _choose_chunk(S, chunk_timesteps)
        C = S // T

        # batch_first -> time-major, pad batch, chunk, cast matmul input to bf16
        x_tm = jnp.transpose(x, (1, 0, 2))                     # (S, B, Din)
        x_tm = jnp.pad(x_tm, ((0, 0), (0, Bp - B), (0, 0)))    # (S, Bp, Din)
        x_chunks = x_tm.reshape(C, T * Bp, Din).astype(jnp.bfloat16)

        flat_w = []
        in_specs = [pl.BlockSpec((1, T * Bp, Din), lambda c: (c, 0, 0))]
        for l in range(layer_dim):
            lw = prepared["layers"][l]
            d_in = input_dim if l == 0 else Hp
            flat_w += [lw["w_ih_t"], lw["w_hh_t"], lw["b"]]
            in_specs += [
                pl.BlockSpec((d_in, 4 * Hp), lambda c: (0, 0)),
                pl.BlockSpec((Hp, 4 * Hp), lambda c: (0, 0)),
                pl.BlockSpec((1, 4 * Hp), lambda c: (0, 0)),
            ]
        flat_w += [prepared["w_fc_t"], prepared["b_fc"]]
        in_specs += [
            pl.BlockSpec((Hp, Op), lambda c: (0, 0)),
            pl.BlockSpec((1, Op), lambda c: (0, 0)),
        ]

        kernel = functools.partial(_fused_lstm_fc_kernel, layer_dim, T, Bp, Hp)
        out_pad = pl.pallas_call(
            kernel,
            out_shape=jax.ShapeDtypeStruct((Bp, Op), jnp.float32),
            grid_spec=pltpu.PrefetchScalarGridSpec(
                num_scalar_prefetch=0,
                grid=(C,),
                in_specs=in_specs,
                out_specs=pl.BlockSpec((Bp, Op), lambda c: (0, 0)),
                scratch_shapes=[
                    pltpu.VMEM((layer_dim, Bp, Hp), jnp.float32),   # h per layer
                    pltpu.VMEM((layer_dim, Bp, Hp), jnp.float32),   # c per layer
                    pltpu.VMEM((T, Bp, 4 * Hp), jnp.float32),       # chunk gates_x
                    pltpu.VMEM((T, Bp, Hp), jnp.float32),           # inter-layer act
                ],
            ),
            compiler_params=pltpu.CompilerParams(
                # time chunks carry the recurrence -> must stay sequential
                dimension_semantics=("arbitrary",),
            ),
        )(x_chunks, *flat_w)
        return out_pad[:B, :output_dim]

    return jax.jit(forward)


# ---------------------------------------------------------------------------
# Pure-JAX f32 reference (PyTorch semantics) for validation.
# ---------------------------------------------------------------------------
def lstm_model_reference(params, x):
    B = x.shape[0]
    h_seq = jnp.transpose(x, (1, 0, 2))                        # (S, B, Din)
    for p in params["lstm"]:
        H = p["w_hh"].shape[1]
        w_ih_t, w_hh_t = p["w_ih"].T, p["w_hh"].T
        b = p["b_ih"] + p["b_hh"]

        def step(carry, x_t, w_ih_t=w_ih_t, w_hh_t=w_hh_t, b=b, H=H):
            h, c = carry
            g = x_t @ w_ih_t + h @ w_hh_t + b
            i = jax.nn.sigmoid(g[:, 0 * H:1 * H])
            f = jax.nn.sigmoid(g[:, 1 * H:2 * H])
            gg = jnp.tanh(g[:, 2 * H:3 * H])
            o = jax.nn.sigmoid(g[:, 3 * H:4 * H])
            c = f * c + i * gg
            h = o * jnp.tanh(c)
            return (h, c), h

        init = (jnp.zeros((B, H), jnp.float32), jnp.zeros((B, H), jnp.float32))
        _, h_seq = lax.scan(step, init, h_seq)
    last = h_seq[-1]
    y = last @ params["fc"]["w"].T + params["fc"]["b"]
    return jnp.where(y >= 0, y, 0.01 * y)


if __name__ == "__main__":
    batch, seq = 2, 8
    input_dim, hidden_dim, layer_dim, output_dim = 16, 32, 2, 8

    key = jax.random.PRNGKey(0)
    key, pkey, xkey = jax.random.split(key, 3)
    params = init_params(pkey, input_dim, hidden_dim, layer_dim, output_dim)
    x = jax.random.normal(xkey, (batch, seq, input_dim), dtype=jnp.float32)

    prepared = prepare_params(params, input_dim, hidden_dim, output_dim)
    forward = make_forward(input_dim, hidden_dim, layer_dim, output_dim)

    out = forward(prepared, x)
    jax.block_until_ready(out)
    assert out.shape == (batch, output_dim)

    # bf16 MXU operands introduce small rounding differences vs the f32 reference
    ref = lstm_model_reference(params, x)
    max_err = float(jnp.max(jnp.abs(out - ref)))
    assert max_err < 1e-1, f"max abs error too large: {max_err}"

    print("KERNEL_OK")
</pallas_src>

<mosaic_0001>
module attributes {stable_mosaic.version = 11 : i64} {
  func.func @_fused_lstm_fc_kernel(%arg0: i32, %arg1: memref<1x64x16xbf16, #tpu.memory_space<vmem>>, %arg2: memref<16x512xbf16, #tpu.memory_space<vmem>>, %arg3: memref<128x512xbf16, #tpu.memory_space<vmem>>, %arg4: memref<1x512xf32, #tpu.memory_space<vmem>>, %arg5: memref<128x512xbf16, #tpu.memory_space<vmem>>, %arg6: memref<128x512xbf16, #tpu.memory_space<vmem>>, %arg7: memref<1x512xf32, #tpu.memory_space<vmem>>, %arg8: memref<128x128xbf16, #tpu.memory_space<vmem>>, %arg9: memref<1x128xf32, #tpu.memory_space<vmem>>, %arg10: memref<8x128xf32, #tpu.memory_space<vmem>>, %arg11: memref<2x8x128xf32, #tpu.memory_space<vmem>>, %arg12: memref<2x8x128xf32, #tpu.memory_space<vmem>>, %arg13: memref<8x8x512xf32, #tpu.memory_space<vmem>>, %arg14: memref<8x8x128xf32, #tpu.memory_space<vmem>>) attributes {dimension_semantics = [#tpu.dimension_semantics<arbitrary>], iteration_bounds = array<i64: 1>, scalar_prefetch = 0 : i64, scratch_operands = 4 : i64, tpu.core_type = #tpu.core_type<tc>, window_params = [{transform_indices = @transform_0, window_bounds = array<i64: 1, 64, 16>}, {pipeline_mode = #tpu.pipeline_mode<synchronous>, transform_indices = @transform_1, window_bounds = array<i64: 16, 512>}, {pipeline_mode = #tpu.pipeline_mode<synchronous>, transform_indices = @transform_2, window_bounds = array<i64: 128, 512>}, {pipeline_mode = #tpu.pipeline_mode<synchronous>, transform_indices = @transform_3, window_bounds = array<i64: 1, 512>}, {pipeline_mode = #tpu.pipeline_mode<synchronous>, transform_indices = @transform_4, window_bounds = array<i64: 128, 512>}, {pipeline_mode = #tpu.pipeline_mode<synchronous>, transform_indices = @transform_5, window_bounds = array<i64: 128, 512>}, {pipeline_mode = #tpu.pipeline_mode<synchronous>, transform_indices = @transform_6, window_bounds = array<i64: 1, 512>}, {pipeline_mode = #tpu.pipeline_mode<synchronous>, transform_indices = @transform_7, window_bounds = array<i64: 128, 128>}, {pipeline_mode = #tpu.pipeline_mode<synchronous>, transform_indices = @transform_8, window_bounds = array<i64: 1, 128>}, {pipeline_mode = #tpu.pipeline_mode<synchronous>, transform_indices = @transform_9, window_bounds = array<i64: 8, 128>}]} {
    %c0_i32 = arith.constant 0 : i32
    %0 = arith.cmpi eq, %arg0, %c0_i32 : i32
    %1 = arith.extui %0 : i1 to i32
    %c0_i32_0 = arith.constant 0 : i32
    %2 = arith.cmpi ne, %1, %c0_i32_0 : i32
    scf.if %2 {
      %cst_200 = arith.constant 0.000000e+00 : f32
      %589 = vector.broadcast %cst_200 : f32 to vector<2x8x128xf32>
      %c0_201 = arith.constant 0 : index
      %c0_202 = arith.constant 0 : index
      %c0_203 = arith.constant 0 : index
      %590 = vector.load %arg11[%c0_201, %c0_202, %c0_203] : memref<2x8x128xf32, #tpu.memory_space<vmem>>, vector<2x8x128xf32>
      tpu.vector_store %arg11[%c0_201, %c0_202, %c0_203], %589 {strides = array<i32>} : memref<2x8x128xf32, #tpu.memory_space<vmem>>, vector<2x8x128xf32>,
      %cst_204 = arith.constant 0.000000e+00 : f32
      %591 = vector.broadcast %cst_204 : f32 to vector<2x8x128xf32>
      %c0_205 = arith.constant 0 : index
      %c0_206 = arith.constant 0 : index
      %c0_207 = arith.constant 0 : index
      %592 = vector.load %arg12[%c0_205, %c0_206, %c0_207] : memref<2x8x128xf32, #tpu.memory_space<vmem>>, vector<2x8x128xf32>
      tpu.vector_store %arg12[%c0_205, %c0_206, %c0_207], %591 {strides = array<i32>} : memref<2x8x128xf32, #tpu.memory_space<vmem>>, vector<2x8x128xf32>,
    } else {
    }
    %c0 = arith.constant 0 : index
    %c0_1 = arith.constant 0 : index
    %c0_2 = arith.constant 0 : index
    %3 = vector.load %arg1[%c0, %c0_1, %c0_2] : memref<1x64x16xbf16, #tpu.memory_space<vmem>>, vector<1x64x16xbf16>
    %4 = vector.shape_cast %3 : vector<1x64x16xbf16> to vector<64x16xbf16>
    %c0_3 = arith.constant 0 : index
    %c0_4 = arith.constant 0 : index
    %5 = vector.load %arg2[%c0_3, %c0_4] : memref<16x512xbf16, #tpu.memory_space<vmem>>, vector<16x512xbf16>
    %cst = arith.constant dense<0.000000e+00> : vector<64x512xf32>
    %6 = tpu.matmul %4, %5, %cst {dimension_numbers = #tpu.dot_dimension_numbers<[1], [0], [0], [1], [0, 0, 1, 1], [], []>} : vector<64x16xbf16>, vector<16x512xbf16>, vector<64x512xf32> -> vector<64x512xf32>
    %c0_5 = arith.constant 0 : index
    %c0_6 = arith.constant 0 : index
    %7 = vector.load %arg4[%c0_5, %c0_6] : memref<1x512xf32, #tpu.memory_space<vmem>>, vector<1x512xf32>
    %8 = vector.broadcast %7 : vector<1x512xf32> to vector<64x512xf32>
    %9 = arith.addf %6, %8 : vector<64x512xf32>
    %10 = vector.shape_cast %9 : vector<64x512xf32> to vector<8x8x512xf32>
    %c0_7 = arith.constant 0 : index
    %c0_8 = arith.constant 0 : index
    %c0_9 = arith.constant 0 : index
    %11 = vector.load %arg13[%c0_7, %c0_8, %c0_9] : memref<8x8x512xf32, #tpu.memory_space<vmem>>, vector<8x8x512xf32>
    tpu.vector_store %arg13[%c0_7, %c0_8, %c0_9], %10 {strides = array<i32>} : memref<8x8x512xf32, #tpu.memory_space<vmem>>, vector<8x8x512xf32>,
    %c0_10 = arith.constant 0 : index
    %c0_11 = arith.constant 0 : index
    %c0_12 = arith.constant 0 : index
    %12 = vector.load %arg11[%c0_10, %c0_11, %c0_12] : memref<2x8x128xf32, #tpu.memory_space<vmem>>, vector<1x8x128xf32>
    %13 = vector.shape_cast %12 : vector<1x8x128xf32> to vector<8x128xf32>
    %c0_13 = arith.constant 0 : index
    %c0_14 = arith.constant 0 : index
    %c0_15 = arith.constant 0 : index
    %14 = vector.load %arg12[%c0_13, %c0_14, %c0_15] : memref<2x8x128xf32, #tpu.memory_space<vmem>>, vector<1x8x128xf32>
    %15 = vector.shape_cast %14 : vector<1x8x128xf32> to vector<8x128xf32>
    %c0_i32_16 = arith.constant 0 : i32
    %16 = arith.index_cast %c0_i32_16 : i32 to index
    %c0_17 = arith.constant 0 : index
    %c0_18 = arith.constant 0 : index
    %17 = vector.load %arg13[%16, %c0_17, %c0_18] : memref<8x8x512xf32, #tpu.memory_space<vmem>>, vector<1x8x512xf32>
    %18 = vector.shape_cast %17 : vector<1x8x512xf32> to vector<8x512xf32>
    %19 = arith.truncf %13 : vector<8x128xf32> to vector<8x128xbf16>
    %c0_19 = arith.constant 0 : index
    %c0_20 = arith.constant 0 : index
    %20 = vector.load %arg3[%c0_19, %c0_20] : memref<128x512xbf16, #tpu.memory_space<vmem>>, vector<128x512xbf16>
    %cst_21 = arith.constant dense<0.000000e+00> : vector<8x512xf32>
    %21 = tpu.matmul %19, %20, %cst_21 {dimension_numbers = #tpu.dot_dimension_numbers<[1], [0], [0], [1], [0, 0, 1, 1], [], []>} : vector<8x128xbf16>, vector<128x512xbf16>, vector<8x512xf32> -> vector<8x512xf32>
    %22 = arith.addf %18, %21 : vector<8x512xf32>
    %23 = vector.extract_strided_slice %22 {offsets = [0, 0], sizes = [8, 128], strides = [1, 1]} : vector<8x512xf32> to vector<8x128xf32>
    %24 = arith.negf %23 : vector<8x128xf32>
    %25 = math.exp %24 : vector<8x128xf32>
    %cst_22 = arith.constant 1.000000e+00 : f32
    %26 = vector.broadcast %cst_22 : f32 to vector<8x128xf32>
    %27 = arith.addf %26, %25 : vector<8x128xf32>
    %28 = arith.divf %26, %27 : vector<8x128xf32>
    %29 = vector.extract_strided_slice %22 {offsets = [0, 128], sizes = [8, 128], strides = [1, 1]} : vector<8x512xf32> to vector<8x128xf32>
    %30 = arith.negf %29 : vector<8x128xf32>
    %31 = math.exp %30 : vector<8x128xf32>
    %cst_23 = arith.constant 1.000000e+00 : f32
    %32 = vector.broadcast %cst_23 : f32 to vector<8x128xf32>
    %33 = arith.addf %32, %31 : vector<8x128xf32>
    %34 = arith.divf %32, %33 : vector<8x128xf32>
    %35 = vector.extract_strided_slice %22 {offsets = [0, 256], sizes = [8, 128], strides = [1, 1]} : vector<8x512xf32> to vector<8x128xf32>
    %36 = math.tanh %35 : vector<8x128xf32>
    %37 = vector.extract_strided_slice %22 {offsets = [0, 384], sizes = [8, 128], strides = [1, 1]} : vector<8x512xf32> to vector<8x128xf32>
    %38 = arith.negf %37 : vector<8x128xf32>
    %39 = math.exp %38 : vector<8x128xf32>
    %cst_24 = arith.constant 1.000000e+00 : f32
    %40 = vector.broadcast %cst_24 : f32 to vector<8x128xf32>
    %41 = arith.addf %40, %39 : vector<8x128xf32>
    %42 = arith.divf %40, %41 : vector<8x128xf32>
    %43 = arith.mulf %34, %15 : vector<8x128xf32>
    %44 = arith.mulf %28, %36 : vector<8x128xf32>
    %45 = arith.addf %43, %44 : vector<8x128xf32>
    %46 = math.tanh %45 : vector<8x128xf32>
    %47 = arith.mulf %42, %46 : vector<8x128xf32>
    %48 = arith.index_cast %c0_i32_16 : i32 to index
    %c0_25 = arith.constant 0 : index
    %c0_26 = arith.constant 0 : index
    %49 = vector.load %arg14[%48, %c0_25, %c0_26] : memref<8x8x128xf32, #tpu.memory_space<vmem>>, vector<1x8x128xf32>
    %50 = vector.shape_cast %49 : vector<1x8x128xf32> to vector<8x128xf32>
    %51 = vector.shape_cast %47 : vector<8x128xf32> to vector<1x8x128xf32>
    tpu.vector_store %arg14[%48, %c0_25, %c0_26], %51 {strides = array<i32>} : memref<8x8x128xf32, #tpu.memory_space<vmem>>, vector<1x8x128xf32>,
    %c1_i32 = arith.constant 1 : i32
    %52 = arith.index_cast %c1_i32 : i32 to index
    %c0_27 = arith.constant 0 : index
    %c0_28 = arith.constant 0 : index
    %53 = vector.load %arg13[%52, %c0_27, %c0_28] : memref<8x8x512xf32, #tpu.memory_space<vmem>>, vector<1x8x512xf32>
    %54 = vector.shape_cast %53 : vector<1x8x512xf32> to vector<8x512xf32>
    %55 = arith.truncf %47 : vector<8x128xf32> to vector<8x128xbf16>
    %c0_29 = arith.constant 0 : index
    %c0_30 = arith.constant 0 : index
    %56 = vector.load %arg3[%c0_29, %c0_30] : memref<128x512xbf16, #tpu.memory_space<vmem>>, vector<128x512xbf16>
    %cst_31 = arith.constant dense<0.000000e+00> : vector<8x512xf32>
    %57 = tpu.matmul %55, %56, %cst_31 {dimension_numbers = #tpu.dot_dimension_numbers<[1], [0], [0], [1], [0, 0, 1, 1], [], []>} : vector<8x128xbf16>, vector<128x512xbf16>, vector<8x512xf32> -> vector<8x512xf32>
    %58 = arith.addf %54, %57 : vector<8x512xf32>
    %59 = vector.extract_strided_slice %58 {offsets = [0, 0], sizes = [8, 128], strides = [1, 1]} : vector<8x512xf32> to vector<8x128xf32>
    %60 = arith.negf %59 : vector<8x128xf32>
    %61 = math.exp %60 : vector<8x128xf32>
    %cst_32 = arith.constant 1.000000e+00 : f32
    %62 = vector.broadcast %cst_32 : f32 to vector<8x128xf32>
    %63 = arith.addf %62, %61 : vector<8x128xf32>
    %64 = arith.divf %62, %63 : vector<8x128xf32>
    %65 = vector.extract_strided_slice %58 {offsets = [0, 128], sizes = [8, 128], strides = [1, 1]} : vector<8x512xf32> to vector<8x128xf32>
    %66 = arith.negf %65 : vector<8x128xf32>
    %67 = math.exp %66 : vector<8x128xf32>
    %cst_33 = arith.constant 1.000000e+00 : f32
    %68 = vector.broadcast %cst_33 : f32 to vector<8x128xf32>
    %69 = arith.addf %68, %67 : vector<8x128xf32>
    %70 = arith.divf %68, %69 : vector<8x128xf32>
    %71 = vector.extract_strided_slice %58 {offsets = [0, 256], sizes = [8, 128], strides = [1, 1]} : vector<8x512xf32> to vector<8x128xf32>
    %72 = math.tanh %71 : vector<8x128xf32>
    %73 = vector.extract_strided_slice %58 {offsets = [0, 384], sizes = [8, 128], strides = [1, 1]} : vector<8x512xf32> to vector<8x128xf32>
    %74 = arith.negf %73 : vector<8x128xf32>
    %75 = math.exp %74 : vector<8x128xf32>
    %cst_34 = arith.constant 1.000000e+00 : f32
    %76 = vector.broadcast %cst_34 : f32 to vector<8x128xf32>
    %77 = arith.addf %76, %75 : vector<8x128xf32>
    %78 = arith.divf %76, %77 : vector<8x128xf32>
    %79 = arith.mulf %70, %45 : vector<8x128xf32>
    %80 = arith.mulf %64, %72 : vector<8x128xf32>
    %81 = arith.addf %79, %80 : vector<8x128xf32>
    %82 = math.tanh %81 : vector<8x128xf32>
    %83 = arith.mulf %78, %82 : vector<8x128xf32>
    %84 = arith.index_cast %c1_i32 : i32 to index
    %c0_35 = arith.constant 0 : index
    %c0_36 = arith.constant 0 : index
    %85 = vector.load %arg14[%84, %c0_35, %c0_36] : memref<8x8x128xf32, #tpu.memory_space<vmem>>, vector<1x8x128xf32>
    %86 = vector.shape_cast %85 : vector<1x8x128xf32> to vector<8x128xf32>
    %87 = vector.shape_cast %83 : vector<8x128xf32> to vector<1x8x128xf32>
    tpu.vector_store %arg14[%84, %c0_35, %c0_36], %87 {strides = array<i32>} : memref<8x8x128xf32, #tpu.memory_space<vmem>>, vector<1x8x128xf32>,
    %c2_i32 = arith.constant 2 : i32
    %88 = arith.index_cast %c2_i32 : i32 to index
    %c0_37 = arith.constant 0 : index
    %c0_38 = arith.constant 0 : index
    %89 = vector.load %arg13[%88, %c0_37, %c0_38] : memref<8x8x512xf32, #tpu.memory_space<vmem>>, vector<1x8x512xf32>
    %90 = vector.shape_cast %89 : vector<1x8x512xf32> to vector<8x512xf32>
    %91 = arith.truncf %83 : vector<8x128xf32> to vector<8x128xbf16>
    %c0_39 = arith.constant 0 : index
    %c0_40 = arith.constant 0 : index
    %92 = vector.load %arg3[%c0_39, %c0_40] : memref<128x512xbf16, #tpu.memory_space<vmem>>, vector<128x512xbf16>
    %cst_41 = arith.constant dense<0.000000e+00> : vector<8x512xf32>
    %93 = tpu.matmul %91, %92, %cst_41 {dimension_numbers = #tpu.dot_dimension_numbers<[1], [0], [0], [1], [0, 0, 1, 1], [], []>} : vector<8x128xbf16>, vector<128x512xbf16>, vector<8x512xf32> -> vector<8x512xf32>
    %94 = arith.addf %90, %93 : vector<8x512xf32>
    %95 = vector.extract_strided_slice %94 {offsets = [0, 0], sizes = [8, 128], strides = [1, 1]} : vector<8x512xf32> to vector<8x128xf32>
    %96 = arith.negf %95 : vector<8x128xf32>
    %97 = math.exp %96 : vector<8x128xf32>
    %cst_42 = arith.constant 1.000000e+00 : f32
    %98 = vector.broadcast %cst_42 : f32 to vector<8x128xf32>
    %99 = arith.addf %98, %97 : vector<8x128xf32>
    %100 = arith.divf %98, %99 : vector<8x128xf32>
    %101 = vector.extract_strided_slice %94 {offsets = [0, 128], sizes = [8, 128], strides = [1, 1]} : vector<8x512xf32> to vector<8x128xf32>
    %102 = arith.negf %101 : vector<8x128xf32>
    %103 = math.exp %102 : vector<8x128xf32>
    %cst_43 = arith.constant 1.000000e+00 : f32
    %104 = vector.broadcast %cst_43 : f32 to vector<8x128xf32>
    %105 = arith.addf %104, %103 : vector<8x128xf32>
    %106 = arith.divf %104, %105 : vector<8x128xf32>
    %107 = vector.extract_strided_slice %94 {offsets = [0, 256], sizes = [8, 128], strides = [1, 1]} : vector<8x512xf32> to vector<8x128xf32>
    %108 = math.tanh %107 : vector<8x128xf32>
    %109 = vector.extract_strided_slice %94 {offsets = [0, 384], sizes = [8, 128], strides = [1, 1]} : vector<8x512xf32> to vector<8x128xf32>
    %110 = arith.negf %109 : vector<8x128xf32>
    %111 = math.exp %110 : vector<8x128xf32>
    %cst_44 = arith.constant 1.000000e+00 : f32
    %112 = vector.broadcast %cst_44 : f32 to vector<8x128xf32>
    %113 = arith.addf %112, %111 : vector<8x128xf32>
    %114 = arith.divf %112, %113 : vector<8x128xf32>
    %115 = arith.mulf %106, %81 : vector<8x128xf32>
    %116 = arith.mulf %100, %108 : vector<8x128xf32>
    %117 = arith.addf %115, %116 : vector<8x128xf32>
    %118 = math.tanh %117 : vector<8x128xf32>
    %119 = arith.mulf %114, %118 : vector<8x128xf32>
    %120 = arith.index_cast %c2_i32 : i32 to index
    %c0_45 = arith.constant 0 : index
    %c0_46 = arith.constant 0 : index
    %121 = vector.load %arg14[%120, %c0_45, %c0_46] : memref<8x8x128xf32, #tpu.memory_space<vmem>>, vector<1x8x128xf32>
    %122 = vector.shape_cast %121 : vector<1x8x128xf32> to vector<8x128xf32>
    %123 = vector.shape_cast %119 : vector<8x128xf32> to vector<1x8x128xf32>
    tpu.vector_store %arg14[%120, %c0_45, %c0_46], %123 {strides = array<i32>} : memref<8x8x128xf32, #tpu.memory_space<vmem>>, vector<1x8x128xf32>,
    %c3_i32 = arith.constant 3 : i32
    %124 = arith.index_cast %c3_i32 : i32 to index
    %c0_47 = arith.constant 0 : index
    %c0_48 = arith.constant 0 : index
    %125 = vector.load %arg13[%124, %c0_47, %c0_48] : memref<8x8x512xf32, #tpu.memory_space<vmem>>, vector<1x8x512xf32>
    %126 = vector.shape_cast %125 : vector<1x8x512xf32> to vector<8x512xf32>
    %127 = arith.truncf %119 : vector<8x128xf32> to vector<8x128xbf16>
    %c0_49 = arith.constant 0 : index
    %c0_50 = arith.constant 0 : index
    %128 = vector.load %arg3[%c0_49, %c0_50] : memref<128x512xbf16, #tpu.memory_space<vmem>>, vector<128x512xbf16>
    %cst_51 = arith.constant dense<0.000000e+00> : vector<8x512xf32>
    %129 = tpu.matmul %127, %128, %cst_51 {dimension_numbers = #tpu.dot_dimension_numbers<[1], [0], [0], [1], [0, 0, 1, 1], [], []>} : vector<8x128xbf16>, vector<128x512xbf16>, vector<8x512xf32> -> vector<8x512xf32>
    %130 = arith.addf %126, %129 : vector<8x512xf32>
    %131 = vector.extract_strided_slice %130 {offsets = [0, 0], sizes = [8, 128], strides = [1, 1]} : vector<8x512xf32> to vector<8x128xf32>
    %132 = arith.negf %131 : vector<8x128xf32>
    %133 = math.exp %132 : vector<8x128xf32>
    %cst_52 = arith.constant 1.000000e+00 : f32
    %134 = vector.broadcast %cst_52 : f32 to vector<8x128xf32>
    %135 = arith.addf %134, %133 : vector<8x128xf32>
    %136 = arith.divf %134, %135 : vector<8x128xf32>
    %137 = vector.extract_strided_slice %130 {offsets = [0, 128], sizes = [8, 128], strides = [1, 1]} : vector<8x512xf32> to vector<8x128xf32>
    %138 = arith.negf %137 : vector<8x128xf32>
    %139 = math.exp %138 : vector<8x128xf32>
    %cst_53 = arith.constant 1.000000e+00 : f32
    %140 = vector.broadcast %cst_53 : f32 to vector<8x128xf32>
    %141 = arith.addf %140, %139 : vector<8x128xf32>
    %142 = arith.divf %140, %141 : vector<8x128xf32>
    %143 = vector.extract_strided_slice %130 {offsets = [0, 256], sizes = [8, 128], strides = [1, 1]} : vector<8x512xf32> to vector<8x128xf32>
    %144 = math.tanh %143 : vector<8x128xf32>
    %145 = vector.extract_strided_slice %130 {offsets = [0, 384], sizes = [8, 128], strides = [1, 1]} : vector<8x512xf32> to vector<8x128xf32>
    %146 = arith.negf %145 : vector<8x128xf32>
    %147 = math.exp %146 : vector<8x128xf32>
    %cst_54 = arith.constant 1.000000e+00 : f32
    %148 = vector.broadcast %cst_54 : f32 to vector<8x128xf32>
    %149 = arith.addf %148, %147 : vector<8x128xf32>
    %150 = arith.divf %148, %149 : vector<8x128xf32>
    %151 = arith.mulf %142, %117 : vector<8x128xf32>
    %152 = arith.mulf %136, %144 : vector<8x128xf32>
    %153 = arith.addf %151, %152 : vector<8x128xf32>
    %154 = math.tanh %153 : vector<8x128xf32>
    %155 = arith.mulf %150, %154 : vector<8x128xf32>
    %156 = arith.index_cast %c3_i32 : i32 to index
    %c0_55 = arith.constant 0 : index
    %c0_56 = arith.constant 0 : index
    %157 = vector.load %arg14[%156, %c0_55, %c0_56] : memref<8x8x128xf32, #tpu.memory_space<vmem>>, vector<1x8x128xf32>
    %158 = vector.shape_cast %157 : vector<1x8x128xf32> to vector<8x128xf32>
    %159 = vector.shape_cast %155 : vector<8x128xf32> to vector<1x8x128xf32>
    tpu.vector_store %arg14[%156, %c0_55, %c0_56], %159 {strides = array<i32>} : memref<8x8x128xf32, #tpu.memory_space<vmem>>, vector<1x8x128xf32>,
    %c4_i32 = arith.constant 4 : i32
    %160 = arith.index_cast %c4_i32 : i32 to index
    %c0_57 = arith.constant 0 : index
    %c0_58 = arith.constant 0 : index
    %161 = vector.load %arg13[%160, %c0_57, %c0_58] : memref<8x8x512xf32, #tpu.memory_space<vmem>>, vector<1x8x512xf32>
    %162 = vector.shape_cast %161 : vector<1x8x512xf32> to vector<8x512xf32>
    %163 = arith.truncf %155 : vector<8x128xf32> to vector<8x128xbf16>
    %c0_59 = arith.constant 0 : index
    %c0_60 = arith.constant 0 : index
    %164 = vector.load %arg3[%c0_59, %c0_60] : memref<128x512xbf16, #tpu.memory_space<vmem>>, vector<128x512xbf16>
    %cst_61 = arith.constant dense<0.000000e+00> : vector<8x512xf32>
    %165 = tpu.matmul %163, %164, %cst_61 {dimension_numbers = #tpu.dot_dimension_numbers<[1], [0], [0], [1], [0, 0, 1, 1], [], []>} : vector<8x128xbf16>, vector<128x512xbf16>, vector<8x512xf32> -> vector<8x512xf32>
    %166 = arith.addf %162, %165 : vector<8x512xf32>
    %167 = vector.extract_strided_slice %166 {offsets = [0, 0], sizes = [8, 128], strides = [1, 1]} : vector<8x512xf32> to vector<8x128xf32>
    %168 = arith.negf %167 : vector<8x128xf32>
    %169 = math.exp %168 : vector<8x128xf32>
    %cst_62 = arith.constant 1.000000e+00 : f32
    %170 = vector.broadcast %cst_62 : f32 to vector<8x128xf32>
    %171 = arith.addf %170, %169 : vector<8x128xf32>
    %172 = arith.divf %170, %171 : vector<8x128xf32>
    %173 = vector.extract_strided_slice %166 {offsets = [0, 128], sizes = [8, 128], strides = [1, 1]} : vector<8x512xf32> to vector<8x128xf32>
    %174 = arith.negf %173 : vector<8x128xf32>
    %175 = math.exp %174 : vector<8x128xf32>
    %cst_63 = arith.constant 1.000000e+00 : f32
    %176 = vector.broadcast %cst_63 : f32 to vector<8x128xf32>
    %177 = arith.addf %176, %175 : vector<8x128xf32>
    %178 = arith.divf %176, %177 : vector<8x128xf32>
    %179 = vector.extract_strided_slice %166 {offsets = [0, 256], sizes = [8, 128], strides = [1, 1]} : vector<8x512xf32> to vector<8x128xf32>
    %180 = math.tanh %179 : vector<8x128xf32>
    %181 = vector.extract_strided_slice %166 {offsets = [0, 384], sizes = [8, 128], strides = [1, 1]} : vector<8x512xf32> to vector<8x128xf32>
    %182 = arith.negf %181 : vector<8x128xf32>
    %183 = math.exp %182 : vector<8x128xf32>
    %cst_64 = arith.constant 1.000000e+00 : f32
    %184 = vector.broadcast %cst_64 : f32 to vector<8x128xf32>
    %185 = arith.addf %184, %183 : vector<8x128xf32>
    %186 = arith.divf %184, %185 : vector<8x128xf32>
    %187 = arith.mulf %178, %153 : vector<8x128xf32>
    %188 = arith.mulf %172, %180 : vector<8x128xf32>
    %189 = arith.addf %187, %188 : vector<8x128xf32>
    %190 = math.tanh %189 : vector<8x128xf32>
    %191 = arith.mulf %186, %190 : vector<8x128xf32>
    %192 = arith.index_cast %c4_i32 : i32 to index
    %c0_65 = arith.constant 0 : index
    %c0_66 = arith.constant 0 : index
    %193 = vector.load %arg14[%192, %c0_65, %c0_66] : memref<8x8x128xf32, #tpu.memory_space<vmem>>, vector<1x8x128xf32>
    %194 = vector.shape_cast %193 : vector<1x8x128xf32> to vector<8x128xf32>
    %195 = vector.shape_cast %191 : vector<8x128xf32> to vector<1x8x128xf32>
    tpu.vector_store %arg14[%192, %c0_65, %c0_66], %195 {strides = array<i32>} : memref<8x8x128xf32, #tpu.memory_space<vmem>>, vector<1x8x128xf32>,
    %c5_i32 = arith.constant 5 : i32
    %196 = arith.index_cast %c5_i32 : i32 to index
    %c0_67 = arith.constant 0 : index
    %c0_68 = arith.constant 0 : index
    %197 = vector.load %arg13[%196, %c0_67, %c0_68] : memref<8x8x512xf32, #tpu.memory_space<vmem>>, vector<1x8x512xf32>
    %198 = vector.shape_cast %197 : vector<1x8x512xf32> to vector<8x512xf32>
    %199 = arith.truncf %191 : vector<8x128xf32> to vector<8x128xbf16>
    %c0_69 = arith.constant 0 : index
    %c0_70 = arith.constant 0 : index
    %200 = vector.load %arg3[%c0_69, %c0_70] : memref<128x512xbf16, #tpu.memory_space<vmem>>, vector<128x512xbf16>
    %cst_71 = arith.constant dense<0.000000e+00> : vector<8x512xf32>
    %201 = tpu.matmul %199, %200, %cst_71 {dimension_numbers = #tpu.dot_dimension_numbers<[1], [0], [0], [1], [0, 0, 1, 1], [], []>} : vector<8x128xbf16>, vector<128x512xbf16>, vector<8x512xf32> -> vector<8x512xf32>
    %202 = arith.addf %198, %201 : vector<8x512xf32>
    %203 = vector.extract_strided_slice %202 {offsets = [0, 0], sizes = [8, 128], strides = [1, 1]} : vector<8x512xf32> to vector<8x128xf32>
    %204 = arith.negf %203 : vector<8x128xf32>
    %205 = math.exp %204 : vector<8x128xf32>
    %cst_72 = arith.constant 1.000000e+00 : f32
    %206 = vector.broadcast %cst_72 : f32 to vector<8x128xf32>
    %207 = arith.addf %206, %205 : vector<8x128xf32>
    %208 = arith.divf %206, %207 : vector<8x128xf32>
    %209 = vector.extract_strided_slice %202 {offsets = [0, 128], sizes = [8, 128], strides = [1, 1]} : vector<8x512xf32> to vector<8x128xf32>
    %210 = arith.negf %209 : vector<8x128xf32>
    %211 = math.exp %210 : vector<8x128xf32>
    %cst_73 = arith.constant 1.000000e+00 : f32
    %212 = vector.broadcast %cst_73 : f32 to vector<8x128xf32>
    %213 = arith.addf %212, %211 : vector<8x128xf32>
    %214 = arith.divf %212, %213 : vector<8x128xf32>
    %215 = vector.extract_strided_slice %202 {offsets = [0, 256], sizes = [8, 128], strides = [1, 1]} : vector<8x512xf32> to vector<8x128xf32>
    %216 = math.tanh %215 : vector<8x128xf32>
    %217 = vector.extract_strided_slice %202 {offsets = [0, 384], sizes = [8, 128], strides = [1, 1]} : vector<8x512xf32> to vector<8x128xf32>
    %218 = arith.negf %217 : vector<8x128xf32>
    %219 = math.exp %218 : vector<8x128xf32>
    %cst_74 = arith.constant 1.000000e+00 : f32
    %220 = vector.broadcast %cst_74 : f32 to vector<8x128xf32>
    %221 = arith.addf %220, %219 : vector<8x128xf32>
    %222 = arith.divf %220, %221 : vector<8x128xf32>
    %223 = arith.mulf %214, %189 : vector<8x128xf32>
    %224 = arith.mulf %208, %216 : vector<8x128xf32>
    %225 = arith.addf %223, %224 : vector<8x128xf32>
    %226 = math.tanh %225 : vector<8x128xf32>
    %227 = arith.mulf %222, %226 : vector<8x128xf32>
    %228 = arith.index_cast %c5_i32 : i32 to index
    %c0_75 = arith.constant 0 : index
    %c0_76 = arith.constant 0 : index
    %229 = vector.load %arg14[%228, %c0_75, %c0_76] : memref<8x8x128xf32, #tpu.memory_space<vmem>>, vector<1x8x128xf32>
    %230 = vector.shape_cast %229 : vector<1x8x128xf32> to vector<8x128xf32>
    %231 = vector.shape_cast %227 : vector<8x128xf32> to vector<1x8x128xf32>
    tpu.vector_store %arg14[%228, %c0_75, %c0_76], %231 {strides = array<i32>} : memref<8x8x128xf32, #tpu.memory_space<vmem>>, vector<1x8x128xf32>,
    %c6_i32 = arith.constant 6 : i32
    %232 = arith.index_cast %c6_i32 : i32 to index
    %c0_77 = arith.constant 0 : index
    %c0_78 = arith.constant 0 : index
    %233 = vector.load %arg13[%232, %c0_77, %c0_78] : memref<8x8x512xf32, #tpu.memory_space<vmem>>, vector<1x8x512xf32>
    %234 = vector.shape_cast %233 : vector<1x8x512xf32> to vector<8x512xf32>
    %235 = arith.truncf %227 : vector<8x128xf32> to vector<8x128xbf16>
    %c0_79 = arith.constant 0 : index
    %c0_80 = arith.constant 0 : index
    %236 = vector.load %arg3[%c0_79, %c0_80] : memref<128x512xbf16, #tpu.memory_space<vmem>>, vector<128x512xbf16>
    %cst_81 = arith.constant dense<0.000000e+00> : vector<8x512xf32>
    %237 = tpu.matmul %235, %236, %cst_81 {dimension_numbers = #tpu.dot_dimension_numbers<[1], [0], [0], [1], [0, 0, 1, 1], [], []>} : vector<8x128xbf16>, vector<128x512xbf16>, vector<8x512xf32> -> vector<8x512xf32>
    %238 = arith.addf %234, %237 : vector<8x512xf32>
    %239 = vector.extract_strided_slice %238 {offsets = [0, 0], sizes = [8, 128], strides = [1, 1]} : vector<8x512xf32> to vector<8x128xf32>
    %240 = arith.negf %239 : vector<8x128xf32>
    %241 = math.exp %240 : vector<8x128xf32>
    %cst_82 = arith.constant 1.000000e+00 : f32
    %242 = vector.broadcast %cst_82 : f32 to vector<8x128xf32>
    %243 = arith.addf %242, %241 : vector<8x128xf32>
    %244 = arith.divf %242, %243 : vector<8x128xf32>
    %245 = vector.extract_strided_slice %238 {offsets = [0, 128], sizes = [8, 128], strides = [1, 1]} : vector<8x512xf32> to vector<8x128xf32>
    %246 = arith.negf %245 : vector<8x128xf32>
    %247 = math.exp %246 : vector<8x128xf32>
    %cst_83 = arith.constant 1.000000e+00 : f32
    %248 = vector.broadcast %cst_83 : f32 to vector<8x128xf32>
    %249 = arith.addf %248, %247 : vector<8x128xf32>
    %250 = arith.divf %248, %249 : vector<8x128xf32>
    %251 = vector.extract_strided_slice %238 {offsets = [0, 256], sizes = [8, 128], strides = [1, 1]} : vector<8x512xf32> to vector<8x128xf32>
    %252 = math.tanh %251 : vector<8x128xf32>
    %253 = vector.extract_strided_slice %238 {offsets = [0, 384], sizes = [8, 128], strides = [1, 1]} : vector<8x512xf32> to vector<8x128xf32>
    %254 = arith.negf %253 : vector<8x128xf32>
    %255 = math.exp %254 : vector<8x128xf32>
    %cst_84 = arith.constant 1.000000e+00 : f32
    %256 = vector.broadcast %cst_84 : f32 to vector<8x128xf32>
    %257 = arith.addf %256, %255 : vector<8x128xf32>
    %258 = arith.divf %256, %257 : vector<8x128xf32>
    %259 = arith.mulf %250, %225 : vector<8x128xf32>
    %260 = arith.mulf %244, %252 : vector<8x128xf32>
    %261 = arith.addf %259, %260 : vector<8x128xf32>
    %262 = math.tanh %261 : vector<8x128xf32>
    %263 = arith.mulf %258, %262 : vector<8x128xf32>
    %264 = arith.index_cast %c6_i32 : i32 to index
    %c0_85 = arith.constant 0 : index
    %c0_86 = arith.constant 0 : index
    %265 = vector.load %arg14[%264, %c0_85, %c0_86] : memref<8x8x128xf32, #tpu.memory_space<vmem>>, vector<1x8x128xf32>
    %266 = vector.shape_cast %265 : vector<1x8x128xf32> to vector<8x128xf32>
    %267 = vector.shape_cast %263 : vector<8x128xf32> to vector<1x8x128xf32>
    tpu.vector_store %arg14[%264, %c0_85, %c0_86], %267 {strides = array<i32>} : memref<8x8x128xf32, #tpu.memory_space<vmem>>, vector<1x8x128xf32>,
    %c7_i32 = arith.constant 7 : i32
    %268 = arith.index_cast %c7_i32 : i32 to index
    %c0_87 = arith.constant 0 : index
    %c0_88 = arith.constant 0 : index
    %269 = vector.load %arg13[%268, %c0_87, %c0_88] : memref<8x8x512xf32, #tpu.memory_space<vmem>>, vector<1x8x512xf32>
    %270 = vector.shape_cast %269 : vector<1x8x512xf32> to vector<8x512xf32>
    %271 = arith.truncf %263 : vector<8x128xf32> to vector<8x128xbf16>
    %c0_89 = arith.constant 0 : index
    %c0_90 = arith.constant 0 : index
    %272 = vector.load %arg3[%c0_89, %c0_90] : memref<128x512xbf16, #tpu.memory_space<vmem>>, vector<128x512xbf16>
    %cst_91 = arith.constant dense<0.000000e+00> : vector<8x512xf32>
    %273 = tpu.matmul %271, %272, %cst_91 {dimension_numbers = #tpu.dot_dimension_numbers<[1], [0], [0], [1], [0, 0, 1, 1], [], []>} : vector<8x128xbf16>, vector<128x512xbf16>, vector<8x512xf32> -> vector<8x512xf32>
    %274 = arith.addf %270, %273 : vector<8x512xf32>
    %275 = vector.extract_strided_slice %274 {offsets = [0, 0], sizes = [8, 128], strides = [1, 1]} : vector<8x512xf32> to vector<8x128xf32>
    %276 = arith.negf %275 : vector<8x128xf32>
    %277 = math.exp %276 : vector<8x128xf32>
    %cst_92 = arith.constant 1.000000e+00 : f32
    %278 = vector.broadcast %cst_92 : f32 to vector<8x128xf32>
    %279 = arith.addf %278, %277 : vector<8x128xf32>
    %280 = arith.divf %278, %279 : vector<8x128xf32>
    %281 = vector.extract_strided_slice %274 {offsets = [0, 128], sizes = [8, 128], strides = [1, 1]} : vector<8x512xf32> to vector<8x128xf32>
    %282 = arith.negf %281 : vector<8x128xf32>
    %283 = math.exp %282 : vector<8x128xf32>
    %cst_93 = arith.constant 1.000000e+00 : f32
    %284 = vector.broadcast %cst_93 : f32 to vector<8x128xf32>
    %285 = arith.addf %284, %283 : vector<8x128xf32>
    %286 = arith.divf %284, %285 : vector<8x128xf32>
    %287 = vector.extract_strided_slice %274 {offsets = [0, 256], sizes = [8, 128], strides = [1, 1]} : vector<8x512xf32> to vector<8x128xf32>
    %288 = math.tanh %287 : vector<8x128xf32>
    %289 = vector.extract_strided_slice %274 {offsets = [0, 384], sizes = [8, 128], strides = [1, 1]} : vector<8x512xf32> to vector<8x128xf32>
    %290 = arith.negf %289 : vector<8x128xf32>
    %291 = math.exp %290 : vector<8x128xf32>
    %cst_94 = arith.constant 1.000000e+00 : f32
    %292 = vector.broadcast %cst_94 : f32 to vector<8x128xf32>
    %293 = arith.addf %292, %291 : vector<8x128xf32>
    %294 = arith.divf %292, %293 : vector<8x128xf32>
    %295 = arith.mulf %286, %261 : vector<8x128xf32>
    %296 = arith.mulf %280, %288 : vector<8x128xf32>
    %297 = arith.addf %295, %296 : vector<8x128xf32>
    %298 = math.tanh %297 : vector<8x128xf32>
    %299 = arith.mulf %294, %298 : vector<8x128xf32>
    %300 = arith.index_cast %c7_i32 : i32 to index
    %c0_95 = arith.constant 0 : index
    %c0_96 = arith.constant 0 : index
    %301 = vector.load %arg14[%300, %c0_95, %c0_96] : memref<8x8x128xf32, #tpu.memory_space<vmem>>, vector<1x8x128xf32>
    %302 = vector.shape_cast %301 : vector<1x8x128xf32> to vector<8x128xf32>
    %303 = vector.shape_cast %299 : vector<8x128xf32> to vector<1x8x128xf32>
    tpu.vector_store %arg14[%300, %c0_95, %c0_96], %303 {strides = array<i32>} : memref<8x8x128xf32, #tpu.memory_space<vmem>>, vector<1x8x128xf32>,
    %c8_i32 = arith.constant 8 : i32
    %c0_97 = arith.constant 0 : index
    %c0_98 = arith.constant 0 : index
    %c0_99 = arith.constant 0 : index
    %304 = vector.load %arg11[%c0_97, %c0_98, %c0_99] : memref<2x8x128xf32, #tpu.memory_space<vmem>>, vector<1x8x128xf32>
    %305 = vector.shape_cast %304 : vector<1x8x128xf32> to vector<8x128xf32>
    %306 = vector.shape_cast %299 : vector<8x128xf32> to vector<1x8x128xf32>
    tpu.vector_store %arg11[%c0_97, %c0_98, %c0_99], %306 {strides = array<i32>} : memref<2x8x128xf32, #tpu.memory_space<vmem>>, vector<1x8x128xf32>,
    %c0_100 = arith.constant 0 : index
    %c0_101 = arith.constant 0 : index
    %c0_102 = arith.constant 0 : index
    %307 = vector.load %arg12[%c0_100, %c0_101, %c0_102] : memref<2x8x128xf32, #tpu.memory_space<vmem>>, vector<1x8x128xf32>
    %308 = vector.shape_cast %307 : vector<1x8x128xf32> to vector<8x128xf32>
    %309 = vector.shape_cast %297 : vector<8x128xf32> to vector<1x8x128xf32>
    tpu.vector_store %arg12[%c0_100, %c0_101, %c0_102], %309 {strides = array<i32>} : memref<2x8x128xf32, #tpu.memory_space<vmem>>, vector<1x8x128xf32>,
    %c0_103 = arith.constant 0 : index
    %c0_104 = arith.constant 0 : index
    %c0_105 = arith.constant 0 : index
    %310 = vector.load %arg14[%c0_103, %c0_104, %c0_105] : memref<8x8x128xf32, #tpu.memory_space<vmem>>, vector<8x8x128xf32>
    %311 = vector.shape_cast %310 : vector<8x8x128xf32> to vector<64x128xf32>
    %312 = arith.truncf %311 : vector<64x128xf32> to vector<64x128xbf16>
    %c0_106 = arith.constant 0 : index
    %c0_107 = arith.constant 0 : index
    %313 = vector.load %arg5[%c0_106, %c0_107] : memref<128x512xbf16, #tpu.memory_space<vmem>>, vector<128x512xbf16>
    %cst_108 = arith.constant dense<0.000000e+00> : vector<64x512xf32>
    %314 = tpu.matmul %312, %313, %cst_108 {dimension_numbers = #tpu.dot_dimension_numbers<[1], [0], [0], [1], [0, 0, 1, 1], [], []>} : vector<64x128xbf16>, vector<128x512xbf16>, vector<64x512xf32> -> vector<64x512xf32>
    %c0_109 = arith.constant 0 : index
    %c0_110 = arith.constant 0 : index
    %315 = vector.load %arg7[%c0_109, %c0_110] : memref<1x512xf32, #tpu.memory_space<vmem>>, vector<1x512xf32>
    %316 = vector.broadcast %315 : vector<1x512xf32> to vector<64x512xf32>
    %317 = arith.addf %314, %316 : vector<64x512xf32>
    %318 = vector.shape_cast %317 : vector<64x512xf32> to vector<8x8x512xf32>
    %c0_111 = arith.constant 0 : index
    %c0_112 = arith.constant 0 : index
    %c0_113 = arith.constant 0 : index
    %319 = vector.load %arg13[%c0_111, %c0_112, %c0_113] : memref<8x8x512xf32, #tpu.memory_space<vmem>>, vector<8x8x512xf32>
    tpu.vector_store %arg13[%c0_111, %c0_112, %c0_113], %318 {strides = array<i32>} : memref<8x8x512xf32, #tpu.memory_space<vmem>>, vector<8x8x512xf32>,
    %c1 = arith.constant 1 : index
    %c0_114 = arith.constant 0 : index
    %c0_115 = arith.constant 0 : index
    %320 = vector.load %arg11[%c1, %c0_114, %c0_115] : memref<2x8x128xf32, #tpu.memory_space<vmem>>, vector<1x8x128xf32>
    %321 = vector.shape_cast %320 : vector<1x8x128xf32> to vector<8x128xf32>
    %c1_116 = arith.constant 1 : index
    %c0_117 = arith.constant 0 : index
    %c0_118 = arith.constant 0 : index
    %322 = vector.load %arg12[%c1_116, %c0_117, %c0_118] : memref<2x8x128xf32, #tpu.memory_space<vmem>>, vector<1x8x128xf32>
    %323 = vector.shape_cast %322 : vector<1x8x128xf32> to vector<8x128xf32>
    %c0_i32_119 = arith.constant 0 : i32
    %324 = arith.index_cast %c0_i32_119 : i32 to index
    %c0_120 = arith.constant 0 : index
    %c0_121 = arith.constant 0 : index
    %325 = vector.load %arg13[%324, %c0_120, %c0_121] : memref<8x8x512xf32, #tpu.memory_space<vmem>>, vector<1x8x512xf32>
    %326 = vector.shape_cast %325 : vector<1x8x512xf32> to vector<8x512xf32>
    %327 = arith.truncf %321 : vector<8x128xf32> to vector<8x128xbf16>
    %c0_122 = arith.constant 0 : index
    %c0_123 = arith.constant 0 : index
    %328 = vector.load %arg6[%c0_122, %c0_123] : memref<128x512xbf16, #tpu.memory_space<vmem>>, vector<128x512xbf16>
    %cst_124 = arith.constant dense<0.000000e+00> : vector<8x512xf32>
    %329 = tpu.matmul %327, %328, %cst_124 {dimension_numbers = #tpu.dot_dimension_numbers<[1], [0], [0], [1], [0, 0, 1, 1], [], []>} : vector<8x128xbf16>, vector<128x512xbf16>, vector<8x512xf32> -> vector<8x512xf32>
    %330 = arith.addf %326, %329 : vector<8x512xf32>
    %331 = vector.extract_strided_slice %330 {offsets = [0, 0], sizes = [8, 128], strides = [1, 1]} : vector<8x512xf32> to vector<8x128xf32>
    %332 = arith.negf %331 : vector<8x128xf32>
    %333 = math.exp %332 : vector<8x128xf32>
    %cst_125 = arith.constant 1.000000e+00 : f32
    %334 = vector.broadcast %cst_125 : f32 to vector<8x128xf32>
    %335 = arith.addf %334, %333 : vector<8x128xf32>
    %336 = arith.divf %334, %335 : vector<8x128xf32>
    %337 = vector.extract_strided_slice %330 {offsets = [0, 128], sizes = [8, 128], strides = [1, 1]} : vector<8x512xf32> to vector<8x128xf32>
    %338 = arith.negf %337 : vector<8x128xf32>
    %339 = math.exp %338 : vector<8x128xf32>
    %cst_126 = arith.constant 1.000000e+00 : f32
    %340 = vector.broadcast %cst_126 : f32 to vector<8x128xf32>
    %341 = arith.addf %340, %339 : vector<8x128xf32>
    %342 = arith.divf %340, %341 : vector<8x128xf32>
    %343 = vector.extract_strided_slice %330 {offsets = [0, 256], sizes = [8, 128], strides = [1, 1]} : vector<8x512xf32> to vector<8x128xf32>
    %344 = math.tanh %343 : vector<8x128xf32>
    %345 = vector.extract_strided_slice %330 {offsets = [0, 384], sizes = [8, 128], strides = [1, 1]} : vector<8x512xf32> to vector<8x128xf32>
    %346 = arith.negf %345 : vector<8x128xf32>
    %347 = math.exp %346 : vector<8x128xf32>
    %cst_127 = arith.constant 1.000000e+00 : f32
    %348 = vector.broadcast %cst_127 : f32 to vector<8x128xf32>
    %349 = arith.addf %348, %347 : vector<8x128xf32>
    %350 = arith.divf %348, %349 : vector<8x128xf32>
    %351 = arith.mulf %342, %323 : vector<8x128xf32>
    %352 = arith.mulf %336, %344 : vector<8x128xf32>
    %353 = arith.addf %351, %352 : vector<8x128xf32>
    %354 = math.tanh %353 : vector<8x128xf32>
    %355 = arith.mulf %350, %354 : vector<8x128xf32>
    %c1_i32_128 = arith.constant 1 : i32
    %356 = arith.index_cast %c1_i32_128 : i32 to index
    %c0_129 = arith.constant 0 : index
    %c0_130 = arith.constant 0 : index
    %357 = vector.load %arg13[%356, %c0_129, %c0_130] : memref<8x8x512xf32, #tpu.memory_space<vmem>>, vector<1x8x512xf32>
    %358 = vector.shape_cast %357 : vector<1x8x512xf32> to vector<8x512xf32>
    %359 = arith.truncf %355 : vector<8x128xf32> to vector<8x128xbf16>
    %c0_131 = arith.constant 0 : index
    %c0_132 = arith.constant 0 : index
    %360 = vector.load %arg6[%c0_131, %c0_132] : memref<128x512xbf16, #tpu.memory_space<vmem>>, vector<128x512xbf16>
    %cst_133 = arith.constant dense<0.000000e+00> : vector<8x512xf32>
    %361 = tpu.matmul %359, %360, %cst_133 {dimension_numbers = #tpu.dot_dimension_numbers<[1], [0], [0], [1], [0, 0, 1, 1], [], []>} : vector<8x128xbf16>, vector<128x512xbf16>, vector<8x512xf32> -> vector<8x512xf32>
    %362 = arith.addf %358, %361 : vector<8x512xf32>
    %363 = vector.extract_strided_slice %362 {offsets = [0, 0], sizes = [8, 128], strides = [1, 1]} : vector<8x512xf32> to vector<8x128xf32>
    %364 = arith.negf %363 : vector<8x128xf32>
    %365 = math.exp %364 : vector<8x128xf32>
    %cst_134 = arith.constant 1.000000e+00 : f32
    %366 = vector.broadcast %cst_134 : f32 to vector<8x128xf32>
    %367 = arith.addf %366, %365 : vector<8x128xf32>
    %368 = arith.divf %366, %367 : vector<8x128xf32>
    %369 = vector.extract_strided_slice %362 {offsets = [0, 128], sizes = [8, 128], strides = [1, 1]} : vector<8x512xf32> to vector<8x128xf32>
    %370 = arith.negf %369 : vector<8x128xf32>
    %371 = math.exp %370 : vector<8x128xf32>
    %cst_135 = arith.constant 1.000000e+00 : f32
    %372 = vector.broadcast %cst_135 : f32 to vector<8x128xf32>
    %373 = arith.addf %372, %371 : vector<8x128xf32>
    %374 = arith.divf %372, %373 : vector<8x128xf32>
    %375 = vector.extract_strided_slice %362 {offsets = [0, 256], sizes = [8, 128], strides = [1, 1]} : vector<8x512xf32> to vector<8x128xf32>
    %376 = math.tanh %375 : vector<8x128xf32>
    %377 = vector.extract_strided_slice %362 {offsets = [0, 384], sizes = [8, 128], strides = [1, 1]} : vector<8x512xf32> to vector<8x128xf32>
    %378 = arith.negf %377 : vector<8x128xf32>
    %379 = math.exp %378 : vector<8x128xf32>
    %cst_136 = arith.constant 1.000000e+00 : f32
    %380 = vector.broadcast %cst_136 : f32 to vector<8x128xf32>
    %381 = arith.addf %380, %379 : vector<8x128xf32>
    %382 = arith.divf %380, %381 : vector<8x128xf32>
    %383 = arith.mulf %374, %353 : vector<8x128xf32>
    %384 = arith.mulf %368, %376 : vector<8x128xf32>
    %385 = arith.addf %383, %384 : vector<8x128xf32>
    %386 = math.tanh %385 : vector<8x128xf32>
    %387 = arith.mulf %382, %386 : vector<8x128xf32>
    %c2_i32_137 = arith.constant 2 : i32
    %388 = arith.index_cast %c2_i32_137 : i32 to index
    %c0_138 = arith.constant 0 : index
    %c0_139 = arith.constant 0 : index
    %389 = vector.load %arg13[%388, %c0_138, %c0_139] : memref<8x8x512xf32, #tpu.memory_space<vmem>>, vector<1x8x512xf32>
    %390 = vector.shape_cast %389 : vector<1x8x512xf32> to vector<8x512xf32>
    %391 = arith.truncf %387 : vector<8x128xf32> to vector<8x128xbf16>
    %c0_140 = arith.constant 0 : index
    %c0_141 = arith.constant 0 : index
    %392 = vector.load %arg6[%c0_140, %c0_141] : memref<128x512xbf16, #tpu.memory_space<vmem>>, vector<128x512xbf16>
    %cst_142 = arith.constant dense<0.000000e+00> : vector<8x512xf32>
    %393 = tpu.matmul %391, %392, %cst_142 {dimension_numbers = #tpu.dot_dimension_numbers<[1], [0], [0], [1], [0, 0, 1, 1], [], []>} : vector<8x128xbf16>, vector<128x512xbf16>, vector<8x512xf32> -> vector<8x512xf32>
    %394 = arith.addf %390, %393 : vector<8x512xf32>
    %395 = vector.extract_strided_slice %394 {offsets = [0, 0], sizes = [8, 128], strides = [1, 1]} : vector<8x512xf32> to vector<8x128xf32>
    %396 = arith.negf %395 : vector<8x128xf32>
    %397 = math.exp %396 : vector<8x128xf32>
    %cst_143 = arith.constant 1.000000e+00 : f32
    %398 = vector.broadcast %cst_143 : f32 to vector<8x128xf32>
    %399 = arith.addf %398, %397 : vector<8x128xf32>
    %400 = arith.divf %398, %399 : vector<8x128xf32>
    %401 = vector.extract_strided_slice %394 {offsets = [0, 128], sizes = [8, 128], strides = [1, 1]} : vector<8x512xf32> to vector<8x128xf32>
    %402 = arith.negf %401 : vector<8x128xf32>
    %403 = math.exp %402 : vector<8x128xf32>
    %cst_144 = arith.constant 1.000000e+00 : f32
    %404 = vector.broadcast %cst_144 : f32 to vector<8x128xf32>
    %405 = arith.addf %404, %403 : vector<8x128xf32>
    %406 = arith.divf %404, %405 : vector<8x128xf32>
    %407 = vector.extract_strided_slice %394 {offsets = [0, 256], sizes = [8, 128], strides = [1, 1]} : vector<8x512xf32> to vector<8x128xf32>
    %408 = math.tanh %407 : vector<8x128xf32>
    %409 = vector.extract_strided_slice %394 {offsets = [0, 384], sizes = [8, 128], strides = [1, 1]} : vector<8x512xf32> to vector<8x128xf32>
    %410 = arith.negf %409 : vector<8x128xf32>
    %411 = math.exp %410 : vector<8x128xf32>
    %cst_145 = arith.constant 1.000000e+00 : f32
    %412 = vector.broadcast %cst_145 : f32 to vector<8x128xf32>
    %413 = arith.addf %412, %411 : vector<8x128xf32>
    %414 = arith.divf %412, %413 : vector<8x128xf32>
    %415 = arith.mulf %406, %385 : vector<8x128xf32>
    %416 = arith.mulf %400, %408 : vector<8x128xf32>
    %417 = arith.addf %415, %416 : vector<8x128xf32>
    %418 = math.tanh %417 : vector<8x128xf32>
    %419 = arith.mulf %414, %418 : vector<8x128xf32>
    %c3_i32_146 = arith.constant 3 : i32
    %420 = arith.index_cast %c3_i32_146 : i32 to index
    %c0_147 = arith.constant 0 : index
    %c0_148 = arith.constant 0 : index
    %421 = vector.load %arg13[%420, %c0_147, %c0_148] : memref<8x8x512xf32, #tpu.memory_space<vmem>>, vector<1x8x512xf32>
    %422 = vector.shape_cast %421 : vector<1x8x512xf32> to vector<8x512xf32>
    %423 = arith.truncf %419 : vector<8x128xf32> to vector<8x128xbf16>
    %c0_149 = arith.constant 0 : index
    %c0_150 = arith.constant 0 : index
    %424 = vector.load %arg6[%c0_149, %c0_150] : memref<128x512xbf16, #tpu.memory_space<vmem>>, vector<128x512xbf16>
    %cst_151 = arith.constant dense<0.000000e+00> : vector<8x512xf32>
    %425 = tpu.matmul %423, %424, %cst_151 {dimension_numbers = #tpu.dot_dimension_numbers<[1], [0], [0], [1], [0, 0, 1, 1], [], []>} : vector<8x128xbf16>, vector<128x512xbf16>, vector<8x512xf32> -> vector<8x512xf32>
    %426 = arith.addf %422, %425 : vector<8x512xf32>
    %427 = vector.extract_strided_slice %426 {offsets = [0, 0], sizes = [8, 128], strides = [1, 1]} : vector<8x512xf32> to vector<8x128xf32>
    %428 = arith.negf %427 : vector<8x128xf32>
    %429 = math.exp %428 : vector<8x128xf32>
    %cst_152 = arith.constant 1.000000e+00 : f32
    %430 = vector.broadcast %cst_152 : f32 to vector<8x128xf32>
    %431 = arith.addf %430, %429 : vector<8x128xf32>
    %432 = arith.divf %430, %431 : vector<8x128xf32>
    %433 = vector.extract_strided_slice %426 {offsets = [0, 128], sizes = [8, 128], strides = [1, 1]} : vector<8x512xf32> to vector<8x128xf32>
    %434 = arith.negf %433 : vector<8x128xf32>
    %435 = math.exp %434 : vector<8x128xf32>
    %cst_153 = arith.constant 1.000000e+00 : f32
    %436 = vector.broadcast %cst_153 : f32 to vector<8x128xf32>
    %437 = arith.addf %436, %435 : vector<8x128xf32>
    %438 = arith.divf %436, %437 : vector<8x128xf32>
    %439 = vector.extract_strided_slice %426 {offsets = [0, 256], sizes = [8, 128], strides = [1, 1]} : vector<8x512xf32> to vector<8x128xf32>
    %440 = math.tanh %439 : vector<8x128xf32>
    %441 = vector.extract_strided_slice %426 {offsets = [0, 384], sizes = [8, 128], strides = [1, 1]} : vector<8x512xf32> to vector<8x128xf32>
    %442 = arith.negf %441 : vector<8x128xf32>
    %443 = math.exp %442 : vector<8x128xf32>
    %cst_154 = arith.constant 1.000000e+00 : f32
    %444 = vector.broadcast %cst_154 : f32 to vector<8x128xf32>
    %445 = arith.addf %444, %443 : vector<8x128xf32>
    %446 = arith.divf %444, %445 : vector<8x128xf32>
    %447 = arith.mulf %438, %417 : vector<8x128xf32>
    %448 = arith.mulf %432, %440 : vector<8x128xf32>
    %449 = arith.addf %447, %448 : vector<8x128xf32>
    %450 = math.tanh %449 : vector<8x128xf32>
    %451 = arith.mulf %446, %450 : vector<8x128xf32>
    %c4_i32_155 = arith.constant 4 : i32
    %452 = arith.index_cast %c4_i32_155 : i32 to index
    %c0_156 = arith.constant 0 : index
    %c0_157 = arith.constant 0 : index
    %453 = vector.load %arg13[%452, %c0_156, %c0_157] : memref<8x8x512xf32, #tpu.memory_space<vmem>>, vector<1x8x512xf32>
    %454 = vector.shape_cast %453 : vector<1x8x512xf32> to vector<8x512xf32>
    %455 = arith.truncf %451 : vector<8x128xf32> to vector<8x128xbf16>
    %c0_158 = arith.constant 0 : index
    %c0_159 = arith.constant 0 : index
    %456 = vector.load %arg6[%c0_158, %c0_159] : memref<128x512xbf16, #tpu.memory_space<vmem>>, vector<128x512xbf16>
    %cst_160 = arith.constant dense<0.000000e+00> : vector<8x512xf32>
    %457 = tpu.matmul %455, %456, %cst_160 {dimension_numbers = #tpu.dot_dimension_numbers<[1], [0], [0], [1], [0, 0, 1, 1], [], []>} : vector<8x128xbf16>, vector<128x512xbf16>, vector<8x512xf32> -> vector<8x512xf32>
    %458 = arith.addf %454, %457 : vector<8x512xf32>
    %459 = vector.extract_strided_slice %458 {offsets = [0, 0], sizes = [8, 128], strides = [1, 1]} : vector<8x512xf32> to vector<8x128xf32>
    %460 = arith.negf %459 : vector<8x128xf32>
    %461 = math.exp %460 : vector<8x128xf32>
    %cst_161 = arith.constant 1.000000e+00 : f32
    %462 = vector.broadcast %cst_161 : f32 to vector<8x128xf32>
    %463 = arith.addf %462, %461 : vector<8x128xf32>
    %464 = arith.divf %462, %463 : vector<8x128xf32>
    %465 = vector.extract_strided_slice %458 {offsets = [0, 128], sizes = [8, 128], strides = [1, 1]} : vector<8x512xf32> to vector<8x128xf32>
    %466 = arith.negf %465 : vector<8x128xf32>
    %467 = math.exp %466 : vector<8x128xf32>
    %cst_162 = arith.constant 1.000000e+00 : f32
    %468 = vector.broadcast %cst_162 : f32 to vector<8x128xf32>
    %469 = arith.addf %468, %467 : vector<8x128xf32>
    %470 = arith.divf %468, %469 : vector<8x128xf32>
    %471 = vector.extract_strided_slice %458 {offsets = [0, 256], sizes = [8, 128], strides = [1, 1]} : vector<8x512xf32> to vector<8x128xf32>
    %472 = math.tanh %471 : vector<8x128xf32>
    %473 = vector.extract_strided_slice %458 {offsets = [0, 384], sizes = [8, 128], strides = [1, 1]} : vector<8x512xf32> to vector<8x128xf32>
    %474 = arith.negf %473 : vector<8x128xf32>
    %475 = math.exp %474 : vector<8x128xf32>
    %cst_163 = arith.constant 1.000000e+00 : f32
    %476 = vector.broadcast %cst_163 : f32 to vector<8x128xf32>
    %477 = arith.addf %476, %475 : vector<8x128xf32>
    %478 = arith.divf %476, %477 : vector<8x128xf32>
    %479 = arith.mulf %470, %449 : vector<8x128xf32>
    %480 = arith.mulf %464, %472 : vector<8x128xf32>
    %481 = arith.addf %479, %480 : vector<8x128xf32>
    %482 = math.tanh %481 : vector<8x128xf32>
    %483 = arith.mulf %478, %482 : vector<8x128xf32>
    %c5_i32_164 = arith.constant 5 : i32
    %484 = arith.index_cast %c5_i32_164 : i32 to index
    %c0_165 = arith.constant 0 : index
    %c0_166 = arith.constant 0 : index
    %485 = vector.load %arg13[%484, %c0_165, %c0_166] : memref<8x8x512xf32, #tpu.memory_space<vmem>>, vector<1x8x512xf32>
    %486 = vector.shape_cast %485 : vector<1x8x512xf32> to vector<8x512xf32>
    %487 = arith.truncf %483 : vector<8x128xf32> to vector<8x128xbf16>
    %c0_167 = arith.constant 0 : index
    %c0_168 = arith.constant 0 : index
    %488 = vector.load %arg6[%c0_167, %c0_168] : memref<128x512xbf16, #tpu.memory_space<vmem>>, vector<128x512xbf16>
    %cst_169 = arith.constant dense<0.000000e+00> : vector<8x512xf32>
    %489 = tpu.matmul %487, %488, %cst_169 {dimension_numbers = #tpu.dot_dimension_numbers<[1], [0], [0], [1], [0, 0, 1, 1], [], []>} : vector<8x128xbf16>, vector<128x512xbf16>, vector<8x512xf32> -> vector<8x512xf32>
    %490 = arith.addf %486, %489 : vector<8x512xf32>
    %491 = vector.extract_strided_slice %490 {offsets = [0, 0], sizes = [8, 128], strides = [1, 1]} : vector<8x512xf32> to vector<8x128xf32>
    %492 = arith.negf %491 : vector<8x128xf32>
    %493 = math.exp %492 : vector<8x128xf32>
    %cst_170 = arith.constant 1.000000e+00 : f32
    %494 = vector.broadcast %cst_170 : f32 to vector<8x128xf32>
    %495 = arith.addf %494, %493 : vector<8x128xf32>
    %496 = arith.divf %494, %495 : vector<8x128xf32>
    %497 = vector.extract_strided_slice %490 {offsets = [0, 128], sizes = [8, 128], strides = [1, 1]} : vector<8x512xf32> to vector<8x128xf32>
    %498 = arith.negf %497 : vector<8x128xf32>
    %499 = math.exp %498 : vector<8x128xf32>
    %cst_171 = arith.constant 1.000000e+00 : f32
    %500 = vector.broadcast %cst_171 : f32 to vector<8x128xf32>
    %501 = arith.addf %500, %499 : vector<8x128xf32>
    %502 = arith.divf %500, %501 : vector<8x128xf32>
    %503 = vector.extract_strided_slice %490 {offsets = [0, 256], sizes = [8, 128], strides = [1, 1]} : vector<8x512xf32> to vector<8x128xf32>
    %504 = math.tanh %503 : vector<8x128xf32>
    %505 = vector.extract_strided_slice %490 {offsets = [0, 384], sizes = [8, 128], strides = [1, 1]} : vector<8x512xf32> to vector<8x128xf32>
    %506 = arith.negf %505 : vector<8x128xf32>
    %507 = math.exp %506 : vector<8x128xf32>
    %cst_172 = arith.constant 1.000000e+00 : f32
    %508 = vector.broadcast %cst_172 : f32 to vector<8x128xf32>
    %509 = arith.addf %508, %507 : vector<8x128xf32>
    %510 = arith.divf %508, %509 : vector<8x128xf32>
    %511 = arith.mulf %502, %481 : vector<8x128xf32>
    %512 = arith.mulf %496, %504 : vector<8x128xf32>
    %513 = arith.addf %511, %512 : vector<8x128xf32>
    %514 = math.tanh %513 : vector<8x128xf32>
    %515 = arith.mulf %510, %514 : vector<8x128xf32>
    %c6_i32_173 = arith.constant 6 : i32
    %516 = arith.index_cast %c6_i32_173 : i32 to index
    %c0_174 = arith.constant 0 : index
    %c0_175 = arith.constant 0 : index
    %517 = vector.load %arg13[%516, %c0_174, %c0_175] : memref<8x8x512xf32, #tpu.memory_space<vmem>>, vector<1x8x512xf32>
    %518 = vector.shape_cast %517 : vector<1x8x512xf32> to vector<8x512xf32>
    %519 = arith.truncf %515 : vector<8x128xf32> to vector<8x128xbf16>
    %c0_176 = arith.constant 0 : index
    %c0_177 = arith.constant 0 : index
    %520 = vector.load %arg6[%c0_176, %c0_177] : memref<128x512xbf16, #tpu.memory_space<vmem>>, vector<128x512xbf16>
    %cst_178 = arith.constant dense<0.000000e+00> : vector<8x512xf32>
    %521 = tpu.matmul %519, %520, %cst_178 {dimension_numbers = #tpu.dot_dimension_numbers<[1], [0], [0], [1], [0, 0, 1, 1], [], []>} : vector<8x128xbf16>, vector<128x512xbf16>, vector<8x512xf32> -> vector<8x512xf32>
    %522 = arith.addf %518, %521 : vector<8x512xf32>
    %523 = vector.extract_strided_slice %522 {offsets = [0, 0], sizes = [8, 128], strides = [1, 1]} : vector<8x512xf32> to vector<8x128xf32>
    %524 = arith.negf %523 : vector<8x128xf32>
    %525 = math.exp %524 : vector<8x128xf32>
    %cst_179 = arith.constant 1.000000e+00 : f32
    %526 = vector.broadcast %cst_179 : f32 to vector<8x128xf32>
    %527 = arith.addf %526, %525 : vector<8x128xf32>
    %528 = arith.divf %526, %527 : vector<8x128xf32>
    %529 = vector.extract_strided_slice %522 {offsets = [0, 128], sizes = [8, 128], strides = [1, 1]} : vector<8x512xf32> to vector<8x128xf32>
    %530 = arith.negf %529 : vector<8x128xf32>
    %531 = math.exp %530 : vector<8x128xf32>
    %cst_180 = arith.constant 1.000000e+00 : f32
    %532 = vector.broadcast %cst_180 : f32 to vector<8x128xf32>
    %533 = arith.addf %532, %531 : vector<8x128xf32>
    %534 = arith.divf %532, %533 : vector<8x128xf32>
    %535 = vector.extract_strided_slice %522 {offsets = [0, 256], sizes = [8, 128], strides = [1, 1]} : vector<8x512xf32> to vector<8x128xf32>
    %536 = math.tanh %535 : vector<8x128xf32>
    %537 = vector.extract_strided_slice %522 {offsets = [0, 384], sizes = [8, 128], strides = [1, 1]} : vector<8x512xf32> to vector<8x128xf32>
    %538 = arith.negf %537 : vector<8x128xf32>
    %539 = math.exp %538 : vector<8x128xf32>
    %cst_181 = arith.constant 1.000000e+00 : f32
    %540 = vector.broadcast %cst_181 : f32 to vector<8x128xf32>
    %541 = arith.addf %540, %539 : vector<8x128xf32>
    %542 = arith.divf %540, %541 : vector<8x128xf32>
    %543 = arith.mulf %534, %513 : vector<8x128xf32>
    %544 = arith.mulf %528, %536 : vector<8x128xf32>
    %545 = arith.addf %543, %544 : vector<8x128xf32>
    %546 = math.tanh %545 : vector<8x128xf32>
    %547 = arith.mulf %542, %546 : vector<8x128xf32>
    %c7_i32_182 = arith.constant 7 : i32
    %548 = arith.index_cast %c7_i32_182 : i32 to index
    %c0_183 = arith.constant 0 : index
    %c0_184 = arith.constant 0 : index
    %549 = vector.load %arg13[%548, %c0_183, %c0_184] : memref<8x8x512xf32, #tpu.memory_space<vmem>>, vector<1x8x512xf32>
    %550 = vector.shape_cast %549 : vector<1x8x512xf32> to vector<8x512xf32>
    %551 = arith.truncf %547 : vector<8x128xf32> to vector<8x128xbf16>
    %c0_185 = arith.constant 0 : index
    %c0_186 = arith.constant 0 : index
    %552 = vector.load %arg6[%c0_185, %c0_186] : memref<128x512xbf16, #tpu.memory_space<vmem>>, vector<128x512xbf16>
    %cst_187 = arith.constant dense<0.000000e+00> : vector<8x512xf32>
    %553 = tpu.matmul %551, %552, %cst_187 {dimension_numbers = #tpu.dot_dimension_numbers<[1], [0], [0], [1], [0, 0, 1, 1], [], []>} : vector<8x128xbf16>, vector<128x512xbf16>, vector<8x512xf32> -> vector<8x512xf32>
    %554 = arith.addf %550, %553 : vector<8x512xf32>
    %555 = vector.extract_strided_slice %554 {offsets = [0, 0], sizes = [8, 128], strides = [1, 1]} : vector<8x512xf32> to vector<8x128xf32>
    %556 = arith.negf %555 : vector<8x128xf32>
    %557 = math.exp %556 : vector<8x128xf32>
    %cst_188 = arith.constant 1.000000e+00 : f32
    %558 = vector.broadcast %cst_188 : f32 to vector<8x128xf32>
    %559 = arith.addf %558, %557 : vector<8x128xf32>
    %560 = arith.divf %558, %559 : vector<8x128xf32>
    %561 = vector.extract_strided_slice %554 {offsets = [0, 128], sizes = [8, 128], strides = [1, 1]} : vector<8x512xf32> to vector<8x128xf32>
    %562 = arith.negf %561 : vector<8x128xf32>
    %563 = math.exp %562 : vector<8x128xf32>
    %cst_189 = arith.constant 1.000000e+00 : f32
    %564 = vector.broadcast %cst_189 : f32 to vector<8x128xf32>
    %565 = arith.addf %564, %563 : vector<8x128xf32>
    %566 = arith.divf %564, %565 : vector<8x128xf32>
    %567 = vector.extract_strided_slice %554 {offsets = [0, 256], sizes = [8, 128], strides = [1, 1]} : vector<8x512xf32> to vector<8x128xf32>
    %568 = math.tanh %567 : vector<8x128xf32>
    %569 = vector.extract_strided_slice %554 {offsets = [0, 384], sizes = [8, 128], strides = [1, 1]} : vector<8x512xf32> to vector<8x128xf32>
    %570 = arith.negf %569 : vector<8x128xf32>
    %571 = math.exp %570 : vector<8x128xf32>
    %cst_190 = arith.constant 1.000000e+00 : f32
    %572 = vector.broadcast %cst_190 : f32 to vector<8x128xf32>
    %573 = arith.addf %572, %571 : vector<8x128xf32>
    %574 = arith.divf %572, %573 : vector<8x128xf32>
    %575 = arith.mulf %566, %545 : vector<8x128xf32>
    %576 = arith.mulf %560, %568 : vector<8x128xf32>
    %577 = arith.addf %575, %576 : vector<8x128xf32>
    %578 = math.tanh %577 : vector<8x128xf32>
    %579 = arith.mulf %574, %578 : vector<8x128xf32>
    %c8_i32_191 = arith.constant 8 : i32
    %c1_192 = arith.constant 1 : index
    %c0_193 = arith.constant 0 : index
    %c0_194 = arith.constant 0 : index
    %580 = vector.load %arg11[%c1_192, %c0_193, %c0_194] : memref<2x8x128xf32, #tpu.memory_space<vmem>>, vector<1x8x128xf32>
    %581 = vector.shape_cast %580 : vector<1x8x128xf32> to vector<8x128xf32>
    %582 = vector.shape_cast %579 : vector<8x128xf32> to vector<1x8x128xf32>
    tpu.vector_store %arg11[%c1_192, %c0_193, %c0_194], %582 {strides = array<i32>} : memref<2x8x128xf32, #tpu.memory_space<vmem>>, vector<1x8x128xf32>,
    %c1_195 = arith.constant 1 : index
    %c0_196 = arith.constant 0 : index
    %c0_197 = arith.constant 0 : index
    %583 = vector.load %arg12[%c1_195, %c0_196, %c0_197] : memref<2x8x128xf32, #tpu.memory_space<vmem>>, vector<1x8x128xf32>
    %584 = vector.shape_cast %583 : vector<1x8x128xf32> to vector<8x128xf32>
    %585 = vector.shape_cast %577 : vector<8x128xf32> to vector<1x8x128xf32>
    tpu.vector_store %arg12[%c1_195, %c0_196, %c0_197], %585 {strides = array<i32>} : memref<2x8x128xf32, #tpu.memory_space<vmem>>, vector<1x8x128xf32>,
    %c0_i32_198 = arith.constant 0 : i32
    %586 = arith.cmpi eq, %arg0, %c0_i32_198 : i32
    %587 = arith.extui %586 : i1 to i32
    %c0_i32_199 = arith.constant 0 : i32
    %588 = arith.cmpi ne, %587, %c0_i32_199 : i32
    scf.if %588 {
      %c1_200 = arith.constant 1 : index
      %c0_201 = arith.constant 0 : index
      %c0_202 = arith.constant 0 : index
      %589 = vector.load %arg11[%c1_200, %c0_201, %c0_202] : memref<2x8x128xf32, #tpu.memory_space<vmem>>, vector<1x8x128xf32>
      %590 = vector.shape_cast %589 : vector<1x8x128xf32> to vector<8x128xf32>
      %591 = arith.truncf %590 : vector<8x128xf32> to vector<8x128xbf16>
      %c0_203 = arith.constant 0 : index
      %c0_204 = arith.constant 0 : index
      %592 = vector.load %arg8[%c0_203, %c0_204] : memref<128x128xbf16, #tpu.memory_space<vmem>>, vector<128x128xbf16>
      %cst_205 = arith.constant dense<0.000000e+00> : vector<8x128xf32>
      %593 = tpu.matmul %591, %592, %cst_205 {dimension_numbers = #tpu.dot_dimension_numbers<[1], [0], [0], [1], [0, 0, 1, 1], [], []>} : vector<8x128xbf16>, vector<128x128xbf16>, vector<8x128xf32> -> vector<8x128xf32>
      %c0_206 = arith.constant 0 : index
      %c0_207 = arith.constant 0 : index
      %594 = vector.load %arg9[%c0_206, %c0_207] : memref<1x128xf32, #tpu.memory_space<vmem>>, vector<1x128xf32>
      %595 = vector.broadcast %594 : vector<1x128xf32> to vector<8x128xf32>
      %596 = arith.addf %593, %595 : vector<8x128xf32>
      %cst_208 = arith.constant 0.000000e+00 : f32
      %597 = vector.broadcast %cst_208 : f32 to vector<8x128xf32>
      %598 = arith.cmpf oge, %596, %597 : vector<8x128xf32>
      %cst_209 = arith.constant 0.00999999977 : f32
      %599 = vector.broadcast %cst_209 : f32 to vector<8x128xf32>
      %600 = arith.mulf %599, %596 : vector<8x128xf32>
      %601 = arith.select %598, %596, %600 : vector<8x128xi1>, vector<8x128xf32>
      %c0_210 = arith.constant 0 : index
      %c0_211 = arith.constant 0 : index
      %602 = vector.load %arg10[%c0_210, %c0_211] : memref<8x128xf32, #tpu.memory_space<vmem>>, vector<8x128xf32>
      tpu.vector_store %arg10[%c0_210, %c0_211], %601 {strides = array<i32>} : memref<8x128xf32, #tpu.memory_space<vmem>>, vector<8x128xf32>,
    } else {
    }
    return
  }
  func.func @transform_0(%arg0: i32) -> (i32, i32, i32) {
    %c0_i32 = arith.constant 0 : i32
    %c0_i32_0 = arith.constant 0 : i32
    %c0_i32_1 = arith.constant 0 : i32
    return %arg0, %c0_i32, %c0_i32_0 : i32, i32, i32
  }
  func.func @transform_1(%arg0: i32) -> (i32, i32) {
    %c0_i32 = arith.constant 0 : i32
    %c0_i32_0 = arith.constant 0 : i32
    %c0_i32_1 = arith.constant 0 : i32
    return %c0_i32, %c0_i32_0 : i32, i32
  }
  func.func @transform_2(%arg0: i32) -> (i32, i32) {
    %c0_i32 = arith.constant 0 : i32
    %c0_i32_0 = arith.constant 0 : i32
    %c0_i32_1 = arith.constant 0 : i32
    return %c0_i32, %c0_i32_0 : i32, i32
  }
  func.func @transform_3(%arg0: i32) -> (i32, i32) {
    %c0_i32 = arith.constant 0 : i32
    %c0_i32_0 = arith.constant 0 : i32
    %c0_i32_1 = arith.constant 0 : i32
    return %c0_i32, %c0_i32_0 : i32, i32
  }
  func.func @transform_4(%arg0: i32) -> (i32, i32) {
    %c0_i32 = arith.constant 0 : i32
    %c0_i32_0 = arith.constant 0 : i32
    %c0_i32_1 = arith.constant 0 : i32
    return %c0_i32, %c0_i32_0 : i32, i32
  }
  func.func @transform_5(%arg0: i32) -> (i32, i32) {
    %c0_i32 = arith.constant 0 : i32
    %c0_i32_0 = arith.constant 0 : i32
    %c0_i32_1 = arith.constant 0 : i32
    return %c0_i32, %c0_i32_0 : i32, i32
  }
  func.func @transform_6(%arg0: i32) -> (i32, i32) {
    %c0_i32 = arith.constant 0 : i32
    %c0_i32_0 = arith.constant 0 : i32
    %c0_i32_1 = arith.constant 0 : i32
    return %c0_i32, %c0_i32_0 : i32, i32
  }
  func.func @transform_7(%arg0: i32) -> (i32, i32) {
    %c0_i32 = arith.constant 0 : i32
    %c0_i32_0 = arith.constant 0 : i32
    %c0_i32_1 = arith.constant 0 : i32
    return %c0_i32, %c0_i32_0 : i32, i32
  }
  func.func @transform_8(%arg0: i32) -> (i32, i32) {
    %c0_i32 = arith.constant 0 : i32
    %c0_i32_0 = arith.constant 0 : i32
    %c0_i32_1 = arith.constant 0 : i32
    return %c0_i32, %c0_i32_0 : i32, i32
  }
  func.func @transform_9(%arg0: i32) -> (i32, i32) {
    %c0_i32 = arith.constant 0 : i32
    %c0_i32_0 = arith.constant 0 : i32
    %c0_i32_1 = arith.constant 0 : i32
    return %c0_i32, %c0_i32_0 : i32, i32
  }
}

</mosaic_0001>

<bundles_post_ra>
// kernel: forward.1
= control target key start
LH: loop header
LB: loop body
LE: loop exit
PB: predicated region body
PF: predicated region fallthrough
CT: control target
= control target key end

     0   :  { %14 = vsyncpa [#allocation7], 0  ;;  %s6815_s0 = inlined_call_operand.vmem [shape: bf16[1,64,16], index: 0, kind: input, shape index: {}]   ;;  %s6816_s1 = inlined_call_operand.hbm [shape: bf16[16,512], index: 1, kind: input, shape index: {}]   ;;  %s6817_s2 = inlined_call_operand.hbm [shape: bf16[128,512], index: 2, kind: input, shape index: {}]   ;;  %s6818_s3 = inlined_call_operand.vmem [shape: f32[1,512], index: 3, kind: input, shape index: {}]   ;;  %s6819_s4 = inlined_call_operand.hbm [shape: bf16[128,512], index: 4, kind: input, shape index: {}]   ;;  %s6820_s5 = inlined_call_operand.hbm [shape: bf16[128,512], index: 5, kind: input, shape index: {}]   ;;  %s6821_s6 = inlined_call_operand.vmem [shape: f32[1,512], index: 6, kind: input, shape index: {}]   ;;  %s6822_s7 = inlined_call_operand.vmem [shape: bf16[128,128], index: 7, kind: input, shape index: {}]   ;;  %s6823_s8 = inlined_call_operand.vmem [shape: f32[1,128], index: 8, kind: input, shape index: {}]   ;;  %s6824_s9 = inlined_call_operand.vmem [shape: f32[8,128], index: 9, kind: output, shape index: {}]  }
   0x1   :  { %15 = vsyncpa [#allocation9], 0 }
   0x2   :  { %16 = vsyncpa [#allocation12], 0  ;;  %s5508_s30 = smov [#allocation8]   ;;  %s5509_s11 = smov [#allocation6]  }
   0x3   :  { %s36_s10 = sshll.u32 %s5508_s30, 4  ;;  %s24_s12 = sshll.u32 %s5509_s11, 4  ;;  %s37_s10 = int_to_ptr.vmem [resolvable:$true] %s36_s10  ;;  %s25_s12 = int_to_ptr.vmem [resolvable:$true] %s24_s12 }
   0x4   :  { %s5430_s13 = scalar_lea.vmem %s37_s10, 4096  ;;  %p5435_p1 = scmp.lt.s32.totalorder %s37_s10, %s37_s10 }
   0x5   :  { %p5431_p0 = scmp.ne.s32.totalorder %s37_s10, %s5430_s13  ;;  %p5436_p2 = scmp.lt.s32.totalorder %s5430_s13, %s5430_s13 }
   0x7   :  { %p5437_p3 = por %p5436_p2, %p5435_p1 }
   0x9   :  { %p5438_p4 = pnand %p5437_p3, %p5431_p0 }
   0xb   :  { %5441 = shalt.err (!%p5438_p4)
}
   0xc   :  { %s5510_s14 = smov 256   ;;  %s5511_s15 = smov 16  }
   0xd   :  { %42 = dma.hbm_to_vmem [thread:$0]  %s6817_s2, 4096, %s37_s10, [#allocation9], %s5510_s14, %s5510_s14, %s5511_s15  }
   0xe   :  { %s5450_s18 = scalar_lea.vmem %s25_s12, 512  ;;  %p5455_p6 = scmp.lt.s32.totalorder %s25_s12, %s25_s12 }
   0xf   :  { %p5451_p5 = scmp.ne.s32.totalorder %s25_s12, %s5450_s18  ;;  %p5456_p7 = scmp.lt.s32.totalorder %s5450_s18, %s5450_s18 }
  0x11   :  { %p5457_p8 = por %p5456_p7, %p5455_p6 }
  0x13   :  { %p5458_p9 = pnand %p5457_p8, %p5451_p5 }
  0x15   :  { %5461 = shalt.err (!%p5458_p9)
}
  0x16   :  { %30 = dma.hbm_to_vmem [thread:$0]  %s6816_s1, 512, %s25_s12, [#allocation7], %s5510_s14, %s5510_s14, %s5511_s15  }
  0x17   :  { %s5512_s21 = smov [#allocation10]   ;;  %s5513_s23 = smov [#allocation11]  }
  0x18   :  { %s50_s22 = sshll.u32 %s5512_s21, 4  ;;  %s62_s24 = sshll.u32 %s5513_s23, 4  ;;  %s51_s22 = int_to_ptr.vmem [resolvable:$true] %s50_s22  ;;  %s63_s24 = int_to_ptr.vmem [resolvable:$true] %s62_s24 }
  0x19   :  { %s5470_s2 = scalar_lea.vmem %s51_s22, 4096  ;;  %p5475_p11 = scmp.lt.s32.totalorder %s51_s22, %s51_s22 }
  0x1a   :  { %p5471_p10 = scmp.ne.s32.totalorder %s51_s22, %s5470_s2  ;;  %p5476_p12 = scmp.lt.s32.totalorder %s5470_s2, %s5470_s2 }
  0x1c   :  { %p5477_p13 = por %p5476_p12, %p5475_p11 }
  0x1e   :  { %p5478_p0 = pnand %p5477_p13, %p5471_p10 }
  0x20   :  { %5481 = shalt.err (!%p5478_p0)
}
  0x21   :  { %56 = dma.hbm_to_vmem [thread:$0]  %s6819_s4, 4096, %s51_s22, [#allocation9], %s5510_s14, %s5510_s14, %s5511_s15  }
  0x22   :  { %s5490_s1 = scalar_lea.vmem %s63_s24, 4096  ;;  %p5495_p2 = scmp.lt.s32.totalorder %s63_s24, %s63_s24 }
  0x23   :  { %p5491_p1 = scmp.ne.s32.totalorder %s63_s24, %s5490_s1  ;;  %p5496_p3 = scmp.lt.s32.totalorder %s5490_s1, %s5490_s1 }
  0x25   :  { %p5497_p4 = por %p5496_p3, %p5495_p2 }
  0x27   :  { %p5498_p5 = pnand %p5497_p4, %p5491_p1 }
  0x29   :  { %5501 = shalt.err (!%p5498_p5)
}
  0x2a   :  { %68 = dma.hbm_to_vmem [thread:$0]  %s6820_s5, 4096, %s63_s24, [#allocation12], %s5510_s14, %s5510_s14, %s5511_s15  }
  0x2b   :  { %5502 = dma.done.wait [#allocation7], 512  }
  0x2c   :  { %5503 = vsyncadd [#allocation7], 4294966784 }
  0x2d   :  { %5504 = dma.done.wait [#allocation9], 8192  }
  0x2e   :  { %5505 = vsyncadd [#allocation9], 4294959104 }
  0x2f   :  { %5506 = dma.done.wait [#allocation12], 4096  }
  0x30   :  { %5507 = vsyncadd [#allocation12], 4294963200  ;;  %v6831_v0 = vmov 0   ;;  %v4924_v1 = vld [vmem:[#allocation6 + $0x4] ss:$16 sps:$4 sm:$0xff]   ;;  %vm170_vm0 = vcmask 130048   ;;  %v110_v42 = vlaneseq }
  0x31   :  { %215 = vmatprep.mubr.bf16.mxu0 %v6831_v0  ;;  %288 = vmatprep.mubr.bf16.mxu1 %v6831_v0  ;;  %v4926_v2 = vld [vmem:[#allocation6 + $0xc] ss:$16 sps:$4 sm:$0xff]   ;;  %v4928_v3 = vld [vmem:[#allocation6] ss:$16 sps:$4 sm:$0xff]   ;;  %v4929_v4 = vld [vmem:[#allocation6 + $0x8] ss:$16 sps:$4 sm:$0xff]  }
  0x32   :  { %197 = vmatprep.subr.bf16.mxu0 %v4924_v1  ;;  %270 = vmatprep.subr.bf16.mxu1 %v4926_v2  ;;  %v4930_v5 = vld [vmem:[%s6815_s0] sm:$0xff]   ;;  %v5601_v8 = vld [vmem:[#allocation8 + $0xe8] ss:$16 sps:$4 sm:$0xff]   ;;  %v5604_v9 = vld [vmem:[#allocation8 + $0xec] ss:$16 sps:$4 sm:$0xff]   ;;  %v6829_v41 = vmov 0.0|0.0  }
  0x33   :  { %198 = vmatpush1.bf16.msra.mxu0 %v4928_v3  ;;  %271 = vmatpush1.bf16.msra.mxu1 %v4929_v4  ;;  %v5597_v6 = vld [vmem:[#allocation8 + $0xe0] ss:$16 sps:$4 sm:$0xff]   ;;  %v5599_v7 = vld [vmem:[#allocation8 + $0xe4] ss:$16 sps:$4 sm:$0xff]   ;;  %v5614_v12 = vld [vmem:[#allocation8 + $0xcc] ss:$16 sps:$4 sm:$0xff]  }
  0x34   :  { %560 = vmatprep.subr.bf16.mxu0 %v5599_v7  ;;  %v5608_v10 = vld [vmem:[#allocation8 + $0xc4] ss:$16 sps:$4 sm:$0xff]   ;;  %601 = vmatprep.subr.bf16.mxu1 %v5604_v9  ;;  %v5612_v11 = vld [vmem:[#allocation8 + $0xc0] ss:$16 sps:$4 sm:$0xff]   ;;  %v5618_v13 = vld [vmem:[#allocation8 + $0xc8] ss:$16 sps:$4 sm:$0xff]  }
  0x35   :  { %v4943_v14 = vld [vmem:[%s6815_s0 + $0x8] sm:$0xff]   ;;  %v5626_v15 = vld [vmem:[#allocation8 + $0xa4] ss:$16 sps:$4 sm:$0xff]   ;;  %v5629_v16 = vld [vmem:[#allocation8 + $0xa0] ss:$16 sps:$4 sm:$0xff]   ;;  %v5756_v43 = vshrl.u32 %v110_v42, 7 }
  0x36   :  { %4500 = vmatmul.mubr.msk.bf16.vlgmr.msra.gmra.mxu0 %vm170_vm0, %v4930_v5  ;;  %4504 = vmatmul.mubr.msk.bf16.vlgmr.msra.gmra.mxu1 %vm170_vm0, %v4930_v5  ;;  %v5631_v17 = vld [vmem:[#allocation8 + $0xac] ss:$16 sps:$4 sm:$0xff]   ;;  %v5635_v18 = vld [vmem:[#allocation8 + $0xa8] ss:$16 sps:$4 sm:$0xff]   ;;  %v5637_v19 = vld [vmem:[#allocation8 + $0x84] ss:$16 sps:$4 sm:$0xff]  }
  0x37   :  { %561 = vmatpush1.bf16.msra.mxu0 %v5597_v6  ;;  %602 = vmatpush1.bf16.msra.mxu1 %v5601_v8  ;;  %v5642_v20 = vld [vmem:[#allocation8 + $0x8c] ss:$16 sps:$4 sm:$0xff]   ;;  %v5645_v21 = vld [vmem:[#allocation8 + $0x80] ss:$16 sps:$4 sm:$0xff]   ;;  %v5650_v22 = vld [vmem:[#allocation8 + $0x88] ss:$16 sps:$4 sm:$0xff]  }
  0x38   :  { %562 = vmatprep.subr.bf16.mxu0 %v5608_v10  ;;  %603 = vmatprep.subr.bf16.mxu1 %v5614_v12  ;;  %v5652_v23 = vld [vmem:[#allocation8 + $0x64] ss:$16 sps:$4 sm:$0xff]   ;;  %v5656_v24 = vld [vmem:[#allocation8 + $0x6c] ss:$16 sps:$4 sm:$0xff]   ;;  %v5662_v26 = vld [vmem:[#allocation8 + $0x60] ss:$16 sps:$4 sm:$0xff]  }
  0x39   :  { %225 = vmatprep.mubr.bf16.mxu0 %v6831_v0  ;;  %298 = vmatprep.mubr.bf16.mxu1 %v6831_v0  ;;  %v4956_v25 = vld [vmem:[%s6815_s0 + $0x10] sm:$0xff]   ;;  %v5666_v27 = vld [vmem:[#allocation8 + $0x68] ss:$16 sps:$4 sm:$0xff]   ;;  %v5671_v29 = vld [vmem:[#allocation8 + $0x4c] ss:$16 sps:$4 sm:$0xff]   ;;  %6835 = vst [vmem:[#allocation16_spill] sm:$0xff] %v5756_v43 }
  0x3a   :  { %v5668_v28 = vld [vmem:[#allocation8 + $0x44] ss:$16 sps:$4 sm:$0xff]   ;;  %v5675_v30 = vld [vmem:[#allocation8 + $0x40] ss:$16 sps:$4 sm:$0xff]   ;;  %v5678_v31 = vld [vmem:[#allocation8 + $0x48] ss:$16 sps:$4 sm:$0xff]  }
  0x3b   :  { %563 = vmatpush1.bf16.msra.mxu0 %v5612_v11  ;;  %604 = vmatpush1.bf16.msra.mxu1 %v5618_v13  ;;  %v4969_v32 = vld [vmem:[%s6815_s0 + $0x18] sm:$0xff]   ;;  %v5686_v33 = vld [vmem:[#allocation8 + $0x24] ss:$16 sps:$4 sm:$0xff]   ;;  %v5690_v34 = vld [vmem:[#allocation8 + $0x20] ss:$16 sps:$4 sm:$0xff]   ;;  %v6825_v44 = vsub.s32 2, %v5756_v43 }
  0x3c   :  { %564 = vmatprep.subr.bf16.mxu0 %v5626_v15  ;;  %605 = vmatprep.subr.bf16.mxu1 %v5631_v17  ;;  %v5692_v35 = vld [vmem:[#allocation8 + $0x2c] ss:$16 sps:$4 sm:$0xff]   ;;  %v5694_v36 = vld [vmem:[#allocation8 + $0x28] ss:$16 sps:$4 sm:$0xff]   ;;  %v5696_v37 = vld [vmem:[#allocation8 + $0x4] ss:$16 sps:$4 sm:$0xff]  }
  0x3d   :  { %v5699_v38 = vld [vmem:[#allocation8 + $0xc] ss:$16 sps:$4 sm:$0xff]   ;;  %v5704_v39 = vld [vmem:[#allocation8] ss:$16 sps:$4 sm:$0xff]   ;;  %v5708_v40 = vld [vmem:[#allocation8 + $0x8] ss:$16 sps:$4 sm:$0xff]  }
  0x3e   :  { %4501 = vmatmul.mubr.msk.bf16.gmra.mxu0 %vm170_vm0, %v4943_v14  ;;  %4505 = vmatmul.mubr.msk.bf16.gmra.mxu1 %vm170_vm0, %v4943_v14  ;;  %v6828_v45 = vsub.s32 0, %v5756_v43  ;;  %v6826_v46 = vsub.s32 3, %v5756_v43  ;;  %v108_v47 = vld [vmem:[%s6818_s3] sm:$0xf]  ;;  %v6827_v51 = vsub.s32 1, %v5756_v43  ;;  %vm5517_vm1 = vmmov 0  }
  0x3f   :  { %565 = vmatpush1.bf16.msra.mxu0 %v5629_v16  ;;  %235 = vmatprep.mubr.bf16.mxu0 %v6831_v0  ;;  %v5770_v50 = vrot.slane %v108_v47, %v6825_v44 }
  0x40   :  { %606 = vmatpush1.bf16.msra.mxu1 %v5635_v18  ;;  %566 = vmatprep.subr.bf16.mxu0 %v5637_v19  ;;  %v113_v54 = vrot.slane %v108_v47, %v6828_v45  ;;  %v5781_v55 = vrot.slane %v108_v47, %v6826_v46  ;;  %v117_v58 = vrot.slane %v108_v47, %v6827_v51 }
  0x41   :  { %607 = vmatprep.subr.bf16.mxu1 %v5642_v20  ;;  %308 = vmatprep.mubr.bf16.mxu1 %v6831_v0 }
  0x43   :  { %567 = vmatpush1.bf16.msra.mxu0 %v5645_v21 }
  0x44   :  { %608 = vmatpush1.bf16.msra.mxu1 %v5650_v22  ;;  %568 = vmatprep.subr.bf16.mxu0 %v5652_v23 }
  0x45   :  { %609 = vmatprep.subr.bf16.mxu1 %v5656_v24 }
  0x46   :  { %4502 = vmatmul.mubr.msk.bf16.gmra.mxu0 %vm170_vm0, %v4956_v25  ;;  %4506 = vmatmul.mubr.msk.bf16.gmra.mxu1 %vm170_vm0, %v4956_v25 }
  0x47   :  { %569 = vmatpush1.bf16.msra.mxu0 %v5662_v26  ;;  %245 = vmatprep.mubr.bf16.mxu0 %v6831_v0 }
  0x48   :  { %610 = vmatpush1.bf16.msra.mxu1 %v5666_v27  ;;  %570 = vmatprep.subr.bf16.mxu0 %v5668_v28 }
  0x49   :  { %611 = vmatprep.subr.bf16.mxu1 %v5671_v29  ;;  %318 = vmatprep.mubr.bf16.mxu1 %v6831_v0 }
  0x4b   :  { %571 = vmatpush1.bf16.msra.mxu0 %v5675_v30 }
  0x4c   :  { %612 = vmatpush1.bf16.msra.mxu1 %v5678_v31  ;;  %572 = vmatprep.subr.bf16.mxu0 %v5686_v33 }
  0x4d   :  { %613 = vmatprep.subr.bf16.mxu1 %v5692_v35 }
  0x4e   :  { %4503 = vmatmul.mubr.msk.bf16.gmra.mxu0 %vm170_vm0, %v4969_v32  ;;  %4507 = vmatmul.mubr.msk.bf16.gmra.mxu1 %vm170_vm0, %v4969_v32 }
  0x4f   :  { %573 = vmatpush1.bf16.msra.mxu0 %v5690_v34  ;;  %592 = vmatprep.mubr.bf16.mxu0 %v6831_v0 }
  0x50   :  { %614 = vmatpush1.bf16.msra.mxu1 %v5694_v36  ;;  %574 = vmatprep.subr.bf16.mxu0 %v5696_v37 }
  0x51   :  { %615 = vmatprep.subr.bf16.mxu1 %v5699_v38  ;;  %633 = vmatprep.mubr.bf16.mxu1 %v6831_v0 }
  0x53   :  { %575 = vmatpush1.bf16.msra.mxu0 %v5704_v39 }
  0x54   :  { %616 = vmatpush1.bf16.msra.mxu1 %v5708_v40  ;;  %869 = vmatprep.subr.bf16.mxu0 %v5599_v7 }
  0x55   :  { %910 = vmatprep.subr.bf16.mxu1 %v5604_v9 }
  0x56   :  { %593 = vmatmul.mubr.bf16.vlgmr.msra.gmra.mxu0 %v6829_v41 }
  0x57   :  { %634 = vmatmul.mubr.bf16.vlgmr.msra.gmra.mxu1 %v6829_v41  ;;  %870 = vmatpush1.bf16.msra.mxu0 %v5597_v6 }
  0x58   :  { %911 = vmatpush1.bf16.msra.mxu1 %v5601_v8  ;;  %871 = vmatprep.subr.bf16.mxu0 %v5608_v10 }
  0x59   :  { %912 = vmatprep.subr.bf16.mxu1 %v5614_v12  ;;  %901 = vmatprep.mubr.bf16.mxu0 %v6831_v0 }
  0x5a   :  { %942 = vmatprep.mubr.bf16.mxu1 %v6831_v0 }
  0x5b   :  { %872 = vmatpush1.bf16.msra.mxu0 %v5612_v11 }
  0x5c   :  { %913 = vmatpush1.bf16.msra.mxu1 %v5618_v13  ;;  %873 = vmatprep.subr.bf16.mxu0 %v5626_v15 }
  0x5d   :  { %914 = vmatprep.subr.bf16.mxu1 %v5631_v17 }
  0x5f   :  { %874 = vmatpush1.bf16.msra.mxu0 %v5629_v16 }
  0x60   :  { %915 = vmatpush1.bf16.msra.mxu1 %v5635_v18  ;;  %875 = vmatprep.subr.bf16.mxu0 %v5637_v19 }
  0x61   :  { %916 = vmatprep.subr.bf16.mxu1 %v5642_v20 }
  0x63   :  { %876 = vmatpush1.bf16.msra.mxu0 %v5645_v21 }
  0x64   :  { %917 = vmatpush1.bf16.msra.mxu1 %v5650_v22  ;;  %877 = vmatprep.subr.bf16.mxu0 %v5652_v23 }
  0x65   :  { %918 = vmatprep.subr.bf16.mxu1 %v5656_v24 }
  0x67   :  { %878 = vmatpush1.bf16.msra.mxu0 %v5662_v26 }
  0x68   :  { %919 = vmatpush1.bf16.msra.mxu1 %v5666_v27  ;;  %879 = vmatprep.subr.bf16.mxu0 %v5668_v28 }
  0x69   :  { %920 = vmatprep.subr.bf16.mxu1 %v5671_v29 }
  0x6b   :  { %880 = vmatpush1.bf16.msra.mxu0 %v5675_v30 }
  0x6c   :  { %921 = vmatpush1.bf16.msra.mxu1 %v5678_v31  ;;  %881 = vmatprep.subr.bf16.mxu0 %v5686_v33 }
  0x6d   :  { %922 = vmatprep.subr.bf16.mxu1 %v5692_v35 }
  0x6f   :  { %882 = vmatpush1.bf16.msra.mxu0 %v5690_v34 }
  0x70   :  { %923 = vmatpush1.bf16.msra.mxu1 %v5694_v36  ;;  %883 = vmatprep.subr.bf16.mxu0 %v5696_v37 }
  0x71   :  { %924 = vmatprep.subr.bf16.mxu1 %v5699_v38 }
  0x73   :  { %884 = vmatpush1.bf16.msra.mxu0 %v5704_v39 }
  0x74   :  { %925 = vmatpush1.bf16.msra.mxu1 %v5708_v40  ;;  %1179 = vmatprep.subr.bf16.mxu0 %v5599_v7 }
  0x75   :  { %1220 = vmatprep.subr.bf16.mxu1 %v5604_v9 }
  0xf6   :  { %v5764_v48 = vpop.f32.mrf.mxu0  ;;  %v5766_v49 = vpop.f32.mrf.mxu1 }
  0xf8   :  { %v5773_v52 = vpop.f32.mrf.mxu0  ;;  %v5775_v53 = vpop.f32.mrf.mxu1 }
  0xfa   :  { %v221_v56 = vpop.f32.mrf.mxu0  ;;  %v294_v57 = vpop.f32.mrf.mxu1 }
  0xfb   :  { %v5785_v59 = vadd.f32 %v221_v56, %v113_v54  ;;  %v5788_v60 = vadd.f32 %v294_v57, %v5770_v50 }
  0xfc   :  { %v223_v61 = vpop.f32.mrf.mxu0  ;;  %v296_v62 = vpop.f32.mrf.mxu1 }
  0xfd   :  { %v5790_v63 = vadd.f32 %v223_v61, %v117_v58  ;;  %v5793_v1 = vadd.f32 %v296_v62, %v5781_v55 }
  0xfe   :  { %v227_v2 = vpop.f32.mrf.mxu0  ;;  %v300_v3 = vpop.f32.mrf.mxu1 }
  0xff   :  { %v5795_v4 = vadd.f32 %v227_v2, %v113_v54  ;;  %v5798_v5 = vadd.f32 %v300_v3, %v5770_v50 }
 0x100   :  { %v229_v14 = vpop.f32.mrf.mxu0  ;;  %v302_v25 = vpop.f32.mrf.mxu1 }
 0x101   :  { %6836 = vst [vmem:[#allocation17_spill] sm:$0xff] %v5798_v5  ;;  %v5800_v32 = vadd.f32 %v229_v14, %v117_v58  ;;  %v5803_v42 = vadd.f32 %v302_v25, %v5781_v55 }
 0x102   :  { %v231_v47 = vpop.f32.mrf.mxu0  ;;  %v304_v56 = vpop.f32.mrf.mxu1 }
 0x103   :  { %v5805_v57 = vadd.f32 %v231_v47, %v113_v54  ;;  %v5808_v61 = vadd.f32 %v304_v56, %v5770_v50 }
 0x104   :  { %v233_v62 = vpop.f32.mrf.mxu0  ;;  %v306_v2 = vpop.f32.mrf.mxu1 }
 0x105   :  { %6837 = vst [vmem:[#allocation18_spill] sm:$0xff] %v5805_v57  ;;  %6838 = vst [vmem:[#allocation19_spill] sm:$0xff] %v5808_v61  ;;  %v5810_v44 = vadd.f32 %v233_v62, %v117_v58  ;;  %v5813_v3 = vadd.f32 %v306_v2, %v5781_v55 }
 0x106   :  { %v237_v46 = vpop.f32.mrf.mxu0  ;;  %v310_v14 = vpop.f32.mrf.mxu1 }
 0x107   :  { %6839 = vst [vmem:[#allocation20_spill] sm:$0xff] %v5810_v44  ;;  %6840 = vst [vmem:[#allocation21_spill] sm:$0xff] %v5813_v3  ;;  %v5815_v51 = vadd.f32 %v237_v46, %v113_v54  ;;  %v5818_v25 = vadd.f32 %v310_v14, %v5770_v50 }
 0x108   :  { %v239_v45 = vpop.f32.mrf.mxu0  ;;  %v312_v47 = vpop.f32.mrf.mxu1 }
 0x109   :  { %6841 = vst [vmem:[#allocation22_spill] sm:$0xff] %v5815_v51  ;;  %6842 = vst [vmem:[#allocation23_spill] sm:$0xff] %v5818_v25  ;;  %v5820_v41 = vadd.f32 %v239_v45, %v117_v58  ;;  %v5823_v56 = vadd.f32 %v312_v47, %v5781_v55 }
 0x10a   :  { %v241_v0 = vpop.f32.mrf.mxu0  ;;  %v314_v62 = vpop.f32.mrf.mxu1 }
 0x10b   :  { %6843 = vst [vmem:[#allocation24_spill] sm:$0xff] %v5820_v41  ;;  %6844 = vst [vmem:[#allocation25_spill] sm:$0xff] %v5823_v56  ;;  %v5825_v43 = vadd.f32 %v241_v0, %v113_v54  ;;  %v5828_v2 = vadd.f32 %v314_v62, %v5770_v50 }
 0x10c   :  { %v243_v61 = vpop.f32.mrf.mxu0  ;;  %v316_v46 = vpop.f32.mrf.mxu1 }
 0x10d   :  { %6845 = vst [vmem:[#allocation26_spill] sm:$0xff] %v5825_v43  ;;  %6846 = vst [vmem:[#allocation27_spill] sm:$0xff] %v5828_v2  ;;  %v5830_v51 = vadd.f32 %v243_v61, %v117_v58  ;;  %v5833_v14 = vadd.f32 %v316_v46, %v5781_v55 }
 0x10e   :  { %v247_v25 = vpop.f32.mrf.mxu0  ;;  %v320_v45 = vpop.f32.mrf.mxu1 }
 0x10f   :  { %6847 = vst [vmem:[#allocation28_spill] sm:$0xff] %v5830_v51  ;;  %6848 = vst [vmem:[#allocation29_spill] sm:$0xff] %v5833_v14  ;;  %v5835_v41 = vadd.f32 %v247_v25, %v113_v54  ;;  %v5838_v47 = vadd.f32 %v320_v45, %v5770_v50 }
 0x110   :  { %v249_v56 = vpop.f32.mrf.mxu0  ;;  %v322_v0 = vpop.f32.mrf.mxu1 }
 0x111   :  { %6849 = vst [vmem:[#allocation30_spill] sm:$0xff] %v5835_v41  ;;  %6850 = vst [vmem:[#allocation31_spill] sm:$0xff] %v5838_v47  ;;  %v5840_v43 = vadd.f32 %v249_v56, %v117_v58  ;;  %v5843_v62 = vadd.f32 %v322_v0, %v5781_v55  ;;  %v218_v41 = vadd.f32 %v5764_v48, %v113_v54 }
 0x112   :  { %v251_v2 = vpop.f32.mrf.mxu0  ;;  %v324_v61 = vpop.f32.mrf.mxu1  ;;  %v220_v0 = vadd.f32 %v5773_v52, %v117_v58  ;;  %v291_v52 = vadd.f32 %v5766_v49, %v5770_v50 }
 0x113   :  { %6851 = vst [vmem:[#allocation32_spill] sm:$0xff] %v5840_v43  ;;  %6852 = vst [vmem:[#allocation33_spill] sm:$0xff] %v5843_v62  ;;  %v5845_v51 = vadd.f32 %v251_v2, %v113_v54  ;;  %v5848_v46 = vadd.f32 %v324_v61, %v5770_v50  ;;  %v293_v54 = vadd.f32 %v5775_v53, %v5781_v55 }
 0x114   :  { %v253_v14 = vpop.f32.mrf.mxu0  ;;  %v326_v25 = vpop.f32.mrf.mxu1 }
 0x115   :  { %6853 = vst [vmem:[#allocation34_spill] sm:$0xff] %v5845_v51  ;;  %6854 = vst [vmem:[#allocation35_spill] sm:$0xff] %v5848_v46  ;;  %v5851_v45 = vadd.f32 %v253_v14, %v117_v58  ;;  %v5854_v47 = vadd.f32 %v326_v25, %v5781_v55 }
 0x116   :  { %v594_v56 = vpop.f32.mrf.mxu0 }
 0x117   :  { %v642_v62 = vadd.f32 %v594_v56, %v218_v41  ;;  %v635_v43 = vpop.f32.mrf.mxu1 }
 0x118   :  { %v596_v3 = vpop.f32.mrf.mxu0  ;;  %v644_v25 = vadd.f32 %v635_v43, %v291_v52 }
 0x119   :  { %v4540_v2 = vmul.f32 -1.442695, %v642_v62  ;;  %v643_v51 = vadd.f32 %v596_v3, %v220_v0  ;;  %v637_v44 = vpop.f32.mrf.mxu1 }
 0x11a   :  { %v598_v61 = vpop.f32.mrf.mxu0  ;;  %v645_v14 = vadd.f32 %v637_v44, %v293_v54 }
 0x11b   :  { %5134 = vpow2.f32 %v4540_v2  ;;  %v4541_v46 = vmul.f32 -1.442695, %v643_v51  ;;  %v639_v57 = vpop.f32.mrf.mxu1  ;;  %v6855_v61 = vmov 0  }
 0x11c   :  { %v599_v5 = vpop.f32.mrf.mxu0  ;;  %v4542_v41 = vmul.f32 -1.442695, %v645_v14 }
 0x11d   :  { %5136 = vpow2.f32 %v4541_v46  ;;  %v640_v48 = vpop.f32.mrf.mxu1 }
 0x11e   :  { %5138 = vpow2.f32 %v4542_v41 }
 0x128   :  { %v5135_v58 = vpop.eup %5134 }
 0x129   :  { %v649_v62 = vadd.f32 1.0, %v5135_v58 }
 0x12a   :  { %v5137_v3 = vpop.eup %5136 }
 0x12b   :  { %5140 = vrcp.f32 %v649_v62  ;;  %v655_v56 = vadd.f32 1.0, %v5137_v3  ;;  %v5139_v51 = vpop.eup %5138 }
 0x12c   :  { %5142 = vtanh.f32 %v644_v25  ;;  %v662_v0 = vadd.f32 1.0, %v5139_v51 }
 0x12d   :  { %5144 = vrcp.f32 %v655_v56 }
 0x12e   :  { %5146 = vrcp.f32 %v662_v0 }
 0x138   :  { %v5141_v5 = vpop.eup %5140 }
 0x139   :  { %v5143_v57 = vpop.eup %5142 }
 0x13a   :  { %v5145_v46 = vpop.eup %5144  ;;  %v666_v44 = vmul.f32 %v5143_v57, %v5141_v5 }
 0x13b   :  { %v665_v53 = vmul.f32 0.0, %v5145_v46  ;;  %v5147_v43 = vpop.eup %5146 }
 0x13d   :  { %v5861_v55 = vadd.f32 %v666_v44, %v665_v53 }
 0x13f   :  { %5148 = vtanh.f32 %v5861_v55 }
 0x14c   :  { %v5149_v49 = vpop.eup %5148 }
 0x14d   :  { %v5864_v50 = vmul.f32 %v5149_v49, %v5147_v43 }
 0x14f   :  { %v676_v2 = vpack.c.bf16 %v5864_v50, %v5864_v50 }
 0x151   :  { %902 = vmatmul.mubr.bf16.vlgmr.msra.gmra.mxu0 %v676_v2  ;;  %943 = vmatmul.mubr.bf16.vlgmr.msra.gmra.mxu1 %v676_v2 }
 0x152   :  { %1180 = vmatpush1.bf16.msra.mxu0 %v5597_v6  ;;  %1221 = vmatpush1.bf16.msra.mxu1 %v5601_v8 }
 0x153   :  { %1181 = vmatprep.subr.bf16.mxu0 %v5608_v10  ;;  %1222 = vmatprep.subr.bf16.mxu1 %v5614_v12 }
 0x154   :  { %1211 = vmatprep.mubr.bf16.mxu0 %v6855_v61  ;;  %1252 = vmatprep.mubr.bf16.mxu1 %v6855_v61 }
 0x156   :  { %1182 = vmatpush1.bf16.msra.mxu0 %v5612_v11  ;;  %1223 = vmatpush1.bf16.msra.mxu1 %v5618_v13 }
 0x157   :  { %1183 = vmatprep.subr.bf16.mxu0 %v5626_v15  ;;  %1224 = vmatprep.subr.bf16.mxu1 %v5631_v17 }
 0x15a   :  { %1184 = vmatpush1.bf16.msra.mxu0 %v5629_v16  ;;  %1225 = vmatpush1.bf16.msra.mxu1 %v5635_v18 }
 0x15b   :  { %1185 = vmatprep.subr.bf16.mxu0 %v5637_v19  ;;  %1226 = vmatprep.subr.bf16.mxu1 %v5642_v20 }
 0x15e   :  { %1186 = vmatpush1.bf16.msra.mxu0 %v5645_v21  ;;  %1227 = vmatpush1.bf16.msra.mxu1 %v5650_v22 }
 0x15f   :  { %1187 = vmatprep.subr.bf16.mxu0 %v5652_v23  ;;  %1228 = vmatprep.subr.bf16.mxu1 %v5656_v24 }
 0x162   :  { %1188 = vmatpush1.bf16.msra.mxu0 %v5662_v26  ;;  %1229 = vmatpush1.bf16.msra.mxu1 %v5666_v27 }
 0x163   :  { %1189 = vmatprep.subr.bf16.mxu0 %v5668_v28  ;;  %1230 = vmatprep.subr.bf16.mxu1 %v5671_v29 }
 0x166   :  { %1190 = vmatpush1.bf16.msra.mxu0 %v5675_v30  ;;  %1231 = vmatpush1.bf16.msra.mxu1 %v5678_v31 }
 0x167   :  { %1191 = vmatprep.subr.bf16.mxu0 %v5686_v33  ;;  %1232 = vmatprep.subr.bf16.mxu1 %v5692_v35 }
 0x16a   :  { %1192 = vmatpush1.bf16.msra.mxu0 %v5690_v34  ;;  %1233 = vmatpush1.bf16.msra.mxu1 %v5694_v36 }
 0x16b   :  { %1193 = vmatprep.subr.bf16.mxu0 %v5696_v37  ;;  %1234 = vmatprep.subr.bf16.mxu1 %v5699_v38 }
 0x16e   :  { %1194 = vmatpush1.bf16.msra.mxu0 %v5704_v39  ;;  %1235 = vmatpush1.bf16.msra.mxu1 %v5708_v40 }
 0x16f   :  { %1489 = vmatprep.subr.bf16.mxu0 %v5599_v7  ;;  %1530 = vmatprep.subr.bf16.mxu1 %v5604_v9 }
 0x211   :  { %v903_v48 = vpop.f32.mrf.mxu0  ;;  %v944_v54 = vpop.f32.mrf.mxu1 }
 0x212   :  { %v951_v14 = vadd.f32 %v903_v48, %v5785_v59  ;;  %v953_v9 = vadd.f32 %v944_v54, %v5788_v60 }
 0x213   :  { %v905_v52 = vpop.f32.mrf.mxu0  ;;  %v946_v41 = vpop.f32.mrf.mxu1 }
 0x214   :  { %v4575_v58 = vmul.f32 -1.442695, %v951_v14  ;;  %v952_v25 = vadd.f32 %v905_v52, %v5790_v63  ;;  %v954_v7 = vadd.f32 %v946_v41, %v5793_v1 }
 0x215   :  { %v907_v62 = vpop.f32.mrf.mxu0  ;;  %v948_v3 = vpop.f32.mrf.mxu1 }
 0x216   :  { %5150 = vpow2.f32 %v4575_v58  ;;  %v4576_v56 = vmul.f32 -1.442695, %v952_v25  ;;  %v4577_v57 = vmul.f32 -1.442695, %v954_v7  ;;  %v5964_v58 = vld [vmem:[#allocation8 + $0xe0] ss:$16 sps:$4 sm:$0xff]  }
 0x217   :  { %v908_v51 = vpop.f32.mrf.mxu0  ;;  %v949_v5 = vpop.f32.mrf.mxu1  ;;  %v5966_v25 = vld [vmem:[#allocation8 + $0xe8] ss:$16 sps:$4 sm:$0xff]   ;;  %v5972_v62 = vld [vmem:[#allocation8 + $0xc4] ss:$16 sps:$4 sm:$0xff]   ;;  %v5974_v3 = vld [vmem:[#allocation8 + $0xcc] ss:$16 sps:$4 sm:$0xff]  }
 0x218   :  { %5152 = vpow2.f32 %v4576_v56  ;;  %v5976_v56 = vld [vmem:[#allocation8 + $0xc0] ss:$16 sps:$4 sm:$0xff]   ;;  %v5978_v51 = vld [vmem:[#allocation8 + $0xc8] ss:$16 sps:$4 sm:$0xff]   ;;  %v5984_v5 = vld [vmem:[#allocation8 + $0xa4] ss:$16 sps:$4 sm:$0xff]  }
 0x219   :  { %5154 = vtanh.f32 %v953_v9  ;;  %v5986_v7 = vld [vmem:[#allocation8 + $0xac] ss:$16 sps:$4 sm:$0xff]   ;;  %v5988_v9 = vld [vmem:[#allocation8 + $0xa0] ss:$16 sps:$4 sm:$0xff]  }
 0x21a   :  { %5156 = vpow2.f32 %v4577_v57  ;;  %v5990_v57 = vld [vmem:[#allocation8 + $0xa8] ss:$16 sps:$4 sm:$0xff]  }
 0x223   :  { %v5151_v46 = vpop.eup %5150 }
 0x224   :  { %v958_v0 = vadd.f32 1.0, %v5151_v46  ;;  %v5996_v46 = vld [vmem:[#allocation8 + $0x84] ss:$16 sps:$4 sm:$0xff]  }
 0x225   :  { %v5153_v59 = vpop.eup %5152 }
 0x226   :  { %5158 = vrcp.f32 %v958_v0  ;;  %v964_v53 = vadd.f32 1.0, %v5153_v59  ;;  %v5155_v63 = vpop.eup %5154  ;;  %v5998_v0 = vld [vmem:[#allocation8 + $0x8c] ss:$16 sps:$4 sm:$0xff]   ;;  %v6000_v59 = vld [vmem:[#allocation8 + $0x80] ss:$16 sps:$4 sm:$0xff]  }
 0x227   :  { %v5157_v44 = vpop.eup %5156 }
 0x228   :  { %5160 = vrcp.f32 %v964_v53  ;;  %v971_v48 = vadd.f32 1.0, %v5157_v44  ;;  %v6002_v53 = vld [vmem:[#allocation8 + $0x88] ss:$16 sps:$4 sm:$0xff]   ;;  %v6008_v44 = vld [vmem:[#allocation8 + $0x6c] ss:$16 sps:$4 sm:$0xff]  }
 0x22a   :  { %5162 = vrcp.f32 %v971_v48  ;;  %v6020_v48 = vld [vmem:[#allocation8 + $0x4c] ss:$16 sps:$4 sm:$0xff]  }
 0x233   :  { %v5159_v43 = vpop.eup %5158 }
 0x234   :  { %v975_v49 = vmul.f32 %v5159_v43, %v5155_v63  ;;  %v6006_v63 = vld [vmem:[#allocation8 + $0x64] ss:$16 sps:$4 sm:$0xff]   ;;  %v6012_v43 = vld [vmem:[#allocation8 + $0x60] ss:$16 sps:$4 sm:$0xff]  }
 0x235   :  { %v5161_v2 = vpop.eup %5160 }
 0x236   :  { %v974_v14 = vmul.f32 %v5161_v2, %v5861_v55  ;;  %v5962_v55 = vld [vmem:[#allocation8 + $0xec] ss:$16 sps:$4 sm:$0xff]   ;;  %v6018_v2 = vld [vmem:[#allocation8 + $0x44] ss:$16 sps:$4 sm:$0xff]  }
 0x237   :  { %v5163_v60 = vpop.eup %5162 }
 0x238   :  { %v5907_v1 = vadd.f32 %v975_v49, %v974_v14  ;;  %v6014_v49 = vld [vmem:[#allocation8 + $0x68] ss:$16 sps:$4 sm:$0xff]   ;;  %v6024_v14 = vld [vmem:[#allocation8 + $0x40] ss:$16 sps:$4 sm:$0xff]  }
 0x23a   :  { %5164 = vtanh.f32 %v5907_v1 }
 0x247   :  { %v5165_v54 = vpop.eup %5164 }
 0x248   :  { %v5910_v52 = vmul.f32 %v5165_v54, %v5163_v60  ;;  %v6030_v60 = vld [vmem:[#allocation8 + $0x24] ss:$16 sps:$4 sm:$0xff]   ;;  %v6032_v54 = vld [vmem:[#allocation8 + $0x2c] ss:$16 sps:$4 sm:$0xff]  }
 0x24a   :  { %v986_v41 = vpack.c.bf16 %v5910_v52, %v5910_v52 }
 0x24c   :  { %1212 = vmatmul.mubr.bf16.vlgmr.msra.gmra.mxu0 %v986_v41  ;;  %1253 = vmatmul.mubr.bf16.vlgmr.msra.gmra.mxu1 %v986_v41  ;;  %v6036_v41 = vld [vmem:[#allocation8 + $0x20] ss:$16 sps:$4 sm:$0xff]  }
 0x24d   :  { %1490 = vmatpush1.bf16.msra.mxu0 %v5597_v6  ;;  %1531 = vmatpush1.bf16.msra.mxu1 %v5601_v8 }
 0x24e   :  { %1491 = vmatprep.subr.bf16.mxu0 %v5608_v10  ;;  %1532 = vmatprep.subr.bf16.mxu1 %v5614_v12 }
 0x24f   :  { %1521 = vmatprep.mubr.bf16.mxu0 %v6855_v61  ;;  %1562 = vmatprep.mubr.bf16.mxu1 %v6855_v61 }
 0x251   :  { %1492 = vmatpush1.bf16.msra.mxu0 %v5612_v11  ;;  %1533 = vmatpush1.bf16.msra.mxu1 %v5618_v13 }
 0x252   :  { %1493 = vmatprep.subr.bf16.mxu0 %v5626_v15  ;;  %1534 = vmatprep.subr.bf16.mxu1 %v5631_v17 }
 0x255   :  { %1494 = vmatpush1.bf16.msra.mxu0 %v5629_v16  ;;  %1535 = vmatpush1.bf16.msra.mxu1 %v5635_v18 }
 0x256   :  { %1495 = vmatprep.subr.bf16.mxu0 %v5637_v19  ;;  %1536 = vmatprep.subr.bf16.mxu1 %v5642_v20 }
 0x259   :  { %1496 = vmatpush1.bf16.msra.mxu0 %v5645_v21  ;;  %1537 = vmatpush1.bf16.msra.mxu1 %v5650_v22  ;;  %v6856_v22 = vld [vmem:[#allocation17_spill] sm:$0xff] }
 0x25a   :  { %1497 = vmatprep.subr.bf16.mxu0 %v5652_v23  ;;  %1538 = vmatprep.subr.bf16.mxu1 %v5656_v24 }
 0x25d   :  { %1498 = vmatpush1.bf16.msra.mxu0 %v5662_v26  ;;  %1539 = vmatpush1.bf16.msra.mxu1 %v5666_v27 }
 0x25e   :  { %1499 = vmatprep.subr.bf16.mxu0 %v5668_v28  ;;  %1540 = vmatprep.subr.bf16.mxu1 %v5671_v29 }
 0x261   :  { %1500 = vmatpush1.bf16.msra.mxu0 %v5675_v30  ;;  %1541 = vmatpush1.bf16.msra.mxu1 %v5678_v31 }
 0x262   :  { %1501 = vmatprep.subr.bf16.mxu0 %v5686_v33  ;;  %1542 = vmatprep.subr.bf16.mxu1 %v5692_v35 }
 0x265   :  { %1502 = vmatpush1.bf16.msra.mxu0 %v5690_v34  ;;  %1543 = vmatpush1.bf16.msra.mxu1 %v5694_v36 }
 0x266   :  { %1503 = vmatprep.subr.bf16.mxu0 %v5696_v37  ;;  %1544 = vmatprep.subr.bf16.mxu1 %v5699_v38 }
 0x269   :  { %1504 = vmatpush1.bf16.msra.mxu0 %v5704_v39  ;;  %1545 = vmatpush1.bf16.msra.mxu1 %v5708_v40 }
 0x26a   :  { %1840 = vmatprep.subr.bf16.mxu1 %v5962_v55 }
 0x30c   :  { %v1213_v6 = vpop.f32.mrf.mxu0  ;;  %v1254_v8 = vpop.f32.mrf.mxu1 }
 0x30d   :  { %v1261_v10 = vadd.f32 %v1213_v6, %v5795_v4  ;;  %v1263_v23 = vadd.f32 %v1254_v8, %v6856_v22  ;;  %v6038_v6 = vld [vmem:[#allocation8 + $0x28] ss:$16 sps:$4 sm:$0xff]   ;;  %v6042_v8 = vld [vmem:[#allocation8 + $0x4] ss:$16 sps:$4 sm:$0xff]  }
 0x30e   :  { %v1215_v11 = vpop.f32.mrf.mxu0  ;;  %v1256_v12 = vpop.f32.mrf.mxu1 }
 0x30f   :  { %v4610_v13 = vmul.f32 -1.442695, %v1261_v10  ;;  %v1262_v15 = vadd.f32 %v1215_v11, %v5800_v32  ;;  %v1264_v21 = vadd.f32 %v1256_v12, %v5803_v42  ;;  %v5960_v42 = vld [vmem:[#allocation8 + $0xe4] ss:$16 sps:$4 sm:$0xff]   ;;  %v6044_v10 = vld [vmem:[#allocation8 + $0xc] ss:$16 sps:$4 sm:$0xff]  }
 0x310   :  { %v1217_v16 = vpop.f32.mrf.mxu0  ;;  %v1258_v17 = vpop.f32.mrf.mxu1  ;;  %1799 = vmatprep.subr.bf16.mxu0 %v5960_v42  ;;  %v6048_v11 = vld [vmem:[#allocation8] ss:$16 sps:$4 sm:$0xff]   ;;  %v6050_v12 = vld [vmem:[#allocation8 + $0x8] ss:$16 sps:$4 sm:$0xff]  }
 0x311   :  { %5166 = vpow2.f32 %v4610_v13  ;;  %v4611_v18 = vmul.f32 -1.442695, %v1262_v15  ;;  %v4612_v24 = vmul.f32 -1.442695, %v1264_v21  ;;  %v6857_v16 = vld [vmem:[#allocation18_spill] sm:$0xff]  ;;  %v6858_v21 = vld [vmem:[#allocation20_spill] sm:$0xff] }
 0x312   :  { %v1218_v19 = vpop.f32.mrf.mxu0  ;;  %v1259_v20 = vpop.f32.mrf.mxu1 }
 0x313   :  { %5168 = vpow2.f32 %v4611_v18 }
 0x314   :  { %5170 = vtanh.f32 %v1263_v23 }
 0x315   :  { %5172 = vpow2.f32 %v4612_v24 }
 0x31e   :  { %v5167_v26 = vpop.eup %5166 }
 0x31f   :  { %v1268_v27 = vadd.f32 1.0, %v5167_v26 }
 0x320   :  { %v5169_v28 = vpop.eup %5168 }
 0x321   :  { %5174 = vrcp.f32 %v1268_v27  ;;  %v1274_v29 = vadd.f32 1.0, %v5169_v28  ;;  %v5171_v30 = vpop.eup %5170 }
 0x322   :  { %v5173_v31 = vpop.eup %5172 }
 0x323   :  { %5176 = vrcp.f32 %v1274_v29  ;;  %v1281_v36 = vadd.f32 1.0, %v5173_v31  ;;  %v6859_v29 = vld [vmem:[#allocation21_spill] sm:$0xff]  ;;  %v6860_v31 = vld [vmem:[#allocation19_spill] sm:$0xff] }
 0x325   :  { %5178 = vrcp.f32 %v1281_v36 }
 0x32e   :  { %v5175_v33 = vpop.eup %5174 }
 0x32f   :  { %v1285_v34 = vmul.f32 %v5175_v33, %v5171_v30 }
 0x330   :  { %v5177_v35 = vpop.eup %5176 }
 0x331   :  { %v1284_v37 = vmul.f32 %v5177_v35, %v5907_v1  ;;  %v6026_v1 = vld [vmem:[#allocation8 + $0x48] ss:$16 sps:$4 sm:$0xff]  }
 0x332   :  { %v5179_v39 = vpop.eup %5178 }
 0x333   :  { %v5951_v38 = vadd.f32 %v1285_v34, %v1284_v37 }
 0x335   :  { %5180 = vtanh.f32 %v5951_v38 }
 0x342   :  { %v5181_v40 = vpop.eup %5180 }
 0x343   :  { %v5954_v4 = vmul.f32 %v5181_v40, %v5179_v39 }
 0x345   :  { %v1296_v32 = vpack.c.bf16 %v5954_v4, %v5954_v4 }
 0x347   :  { %1522 = vmatmul.mubr.bf16.vlgmr.msra.gmra.mxu0 %v1296_v32  ;;  %1563 = vmatmul.mubr.bf16.vlgmr.msra.gmra.mxu1 %v1296_v32 }
 0x348   :  { %1831 = vmatprep.mubr.bf16.mxu0 %v6855_v61  ;;  %1872 = vmatprep.mubr.bf16.mxu1 %v6855_v61 }
 0x349   :  { %1800 = vmatpush1.bf16.msra.mxu0 %v5964_v58  ;;  %1841 = vmatpush1.bf16.msra.mxu1 %v5966_v25 }
 0x34a   :  { %1801 = vmatprep.subr.bf16.mxu0 %v5972_v62  ;;  %1842 = vmatprep.subr.bf16.mxu1 %v5974_v3 }
 0x34d   :  { %1802 = vmatpush1.bf16.msra.mxu0 %v5976_v56  ;;  %1843 = vmatpush1.bf16.msra.mxu1 %v5978_v51 }
 0x34e   :  { %1803 = vmatprep.subr.bf16.mxu0 %v5984_v5  ;;  %1844 = vmatprep.subr.bf16.mxu1 %v5986_v7 }
 0x351   :  { %1804 = vmatpush1.bf16.msra.mxu0 %v5988_v9  ;;  %1845 = vmatpush1.bf16.msra.mxu1 %v5990_v57 }
 0x352   :  { %1805 = vmatprep.subr.bf16.mxu0 %v5996_v46  ;;  %1846 = vmatprep.subr.bf16.mxu1 %v5998_v0 }
 0x355   :  { %1806 = vmatpush1.bf16.msra.mxu0 %v6000_v59  ;;  %1847 = vmatpush1.bf16.msra.mxu1 %v6002_v53 }
 0x356   :  { %1807 = vmatprep.subr.bf16.mxu0 %v6006_v63  ;;  %1848 = vmatprep.subr.bf16.mxu1 %v6008_v44 }
 0x359   :  { %1808 = vmatpush1.bf16.msra.mxu0 %v6012_v43  ;;  %1849 = vmatpush1.bf16.msra.mxu1 %v6014_v49 }
 0x35a   :  { %1809 = vmatprep.subr.bf16.mxu0 %v6018_v2  ;;  %1850 = vmatprep.subr.bf16.mxu1 %v6020_v48 }
 0x35d   :  { %1810 = vmatpush1.bf16.msra.mxu0 %v6024_v14  ;;  %1851 = vmatpush1.bf16.msra.mxu1 %v6026_v1 }
 0x35e   :  { %1811 = vmatprep.subr.bf16.mxu0 %v6030_v60  ;;  %1852 = vmatprep.subr.bf16.mxu1 %v6032_v54 }
 0x361   :  { %1812 = vmatpush1.bf16.msra.mxu0 %v6036_v41  ;;  %1853 = vmatpush1.bf16.msra.mxu1 %v6038_v6 }
 0x362   :  { %1813 = vmatprep.subr.bf16.mxu0 %v6042_v8  ;;  %1854 = vmatprep.subr.bf16.mxu1 %v6044_v10 }
 0x365   :  { %1814 = vmatpush1.bf16.msra.mxu0 %v6048_v11  ;;  %1855 = vmatpush1.bf16.msra.mxu1 %v6050_v12 }
 0x366   :  { %2109 = vmatprep.subr.bf16.mxu0 %v5960_v42  ;;  %2150 = vmatprep.subr.bf16.mxu1 %v5962_v55 }
 0x407   :  { %v1523_v13 = vpop.f32.mrf.mxu0  ;;  %v1564_v15 = vpop.f32.mrf.mxu1 }
 0x408   :  { %v1571_v17 = vadd.f32 %v1523_v13, %v6857_v16  ;;  %v1573_v33 = vadd.f32 %v1564_v15, %v6860_v31  ;;  %v6862_v31 = vld [vmem:[#allocation24_spill] sm:$0xff] }
 0x409   :  { %v1525_v18 = vpop.f32.mrf.mxu0  ;;  %v1566_v19 = vpop.f32.mrf.mxu1 }
 0x40a   :  { %v4645_v20 = vmul.f32 -1.442695, %v1571_v17  ;;  %v1572_v22 = vadd.f32 %v1525_v18, %v6858_v21  ;;  %v1574_v30 = vadd.f32 %v1566_v19, %v6859_v29 }
 0x40b   :  { %v1527_v23 = vpop.f32.mrf.mxu0  ;;  %v1568_v24 = vpop.f32.mrf.mxu1 }
 0x40c   :  { %5182 = vpow2.f32 %v4645_v20  ;;  %v4646_v26 = vmul.f32 -1.442695, %v1572_v22  ;;  %v4647_v34 = vmul.f32 -1.442695, %v1574_v30 }
 0x40d   :  { %v1528_v27 = vpop.f32.mrf.mxu0  ;;  %v1569_v28 = vpop.f32.mrf.mxu1 }
 0x40e   :  { %5184 = vpow2.f32 %v4646_v26  ;;  %v6861_v26 = vld [vmem:[#allocation22_spill] sm:$0xff] }
 0x40f   :  { %5186 = vtanh.f32 %v1573_v33 }
 0x410   :  { %5188 = vpow2.f32 %v4647_v34 }
 0x419   :  { %v5183_v35 = vpop.eup %5182 }
 0x41a   :  { %v1578_v36 = vadd.f32 1.0, %v5183_v35 }
 0x41b   :  { %v5185_v37 = vpop.eup %5184 }
 0x41c   :  { %5190 = vrcp.f32 %v1578_v36  ;;  %v1584_v39 = vadd.f32 1.0, %v5185_v37  ;;  %v5187_v40 = vpop.eup %5186 }
 0x41d   :  { %v5189_v32 = vpop.eup %5188 }
 0x41e   :  { %5192 = vrcp.f32 %v1584_v39  ;;  %v1591_v18 = vadd.f32 1.0, %v5189_v32 }
 0x420   :  { %5194 = vrcp.f32 %v1591_v18 }
 0x429   :  { %v5191_v13 = vpop.eup %5190 }
 0x42a   :  { %v1595_v16 = vmul.f32 %v5191_v13, %v5187_v40  ;;  %v6863_v40 = vld [vmem:[#allocation25_spill] sm:$0xff]  ;;  %v6864_v13 = vld [vmem:[#allocation23_spill] sm:$0xff] }
 0x42b   :  { %v5193_v17 = vpop.eup %5192 }
 0x42c   :  { %v1594_v20 = vmul.f32 %v5193_v17, %v5951_v38 }
 0x42d   :  { %v5195_v15 = vpop.eup %5194 }
 0x42e   :  { %v6063_v19 = vadd.f32 %v1595_v16, %v1594_v20 }
 0x430   :  { %5196 = vtanh.f32 %v6063_v19 }
 0x43d   :  { %v5197_v21 = vpop.eup %5196 }
 0x43e   :  { %v6066_v22 = vmul.f32 %v5197_v21, %v5195_v15 }
 0x440   :  { %v1606_v23 = vpack.c.bf16 %v6066_v22, %v6066_v22 }
 0x442   :  { %1832 = vmatmul.mubr.bf16.vlgmr.msra.gmra.mxu0 %v1606_v23  ;;  %1873 = vmatmul.mubr.bf16.vlgmr.msra.gmra.mxu1 %v1606_v23 }
 0x443   :  { %2110 = vmatpush1.bf16.msra.mxu0 %v5964_v58  ;;  %2151 = vmatpush1.bf16.msra.mxu1 %v5966_v25 }
 0x444   :  { %2111 = vmatprep.subr.bf16.mxu0 %v5972_v62  ;;  %2152 = vmatprep.subr.bf16.mxu1 %v5974_v3 }
 0x445   :  { %2141 = vmatprep.mubr.bf16.mxu0 %v6855_v61  ;;  %2182 = vmatprep.mubr.bf16.mxu1 %v6855_v61 }
 0x447   :  { %2112 = vmatpush1.bf16.msra.mxu0 %v5976_v56  ;;  %2153 = vmatpush1.bf16.msra.mxu1 %v5978_v51 }
 0x448   :  { %2113 = vmatprep.subr.bf16.mxu0 %v5984_v5  ;;  %2154 = vmatprep.subr.bf16.mxu1 %v5986_v7 }
 0x44b   :  { %2114 = vmatpush1.bf16.msra.mxu0 %v5988_v9  ;;  %2155 = vmatpush1.bf16.msra.mxu1 %v5990_v57 }
 0x44c   :  { %2115 = vmatprep.subr.bf16.mxu0 %v5996_v46  ;;  %2156 = vmatprep.subr.bf16.mxu1 %v5998_v0 }
 0x44f   :  { %2116 = vmatpush1.bf16.msra.mxu0 %v6000_v59  ;;  %2157 = vmatpush1.bf16.msra.mxu1 %v6002_v53 }
 0x450   :  { %2117 = vmatprep.subr.bf16.mxu0 %v6006_v63  ;;  %2158 = vmatprep.subr.bf16.mxu1 %v6008_v44 }
 0x453   :  { %2118 = vmatpush1.bf16.msra.mxu0 %v6012_v43  ;;  %2159 = vmatpush1.bf16.msra.mxu1 %v6014_v49 }
 0x454   :  { %2119 = vmatprep.subr.bf16.mxu0 %v6018_v2  ;;  %2160 = vmatprep.subr.bf16.mxu1 %v6020_v48 }
 0x457   :  { %2120 = vmatpush1.bf16.msra.mxu0 %v6024_v14  ;;  %2161 = vmatpush1.bf16.msra.mxu1 %v6026_v1 }
 0x458   :  { %2121 = vmatprep.subr.bf16.mxu0 %v6030_v60  ;;  %2162 = vmatprep.subr.bf16.mxu1 %v6032_v54 }
 0x45b   :  { %2122 = vmatpush1.bf16.msra.mxu0 %v6036_v41  ;;  %2163 = vmatpush1.bf16.msra.mxu1 %v6038_v6 }
 0x45c   :  { %2123 = vmatprep.subr.bf16.mxu0 %v6042_v8  ;;  %2164 = vmatprep.subr.bf16.mxu1 %v6044_v10 }
 0x45f   :  { %2124 = vmatpush1.bf16.msra.mxu0 %v6048_v11  ;;  %2165 = vmatpush1.bf16.msra.mxu1 %v6050_v12 }
 0x460   :  { %2419 = vmatprep.subr.bf16.mxu0 %v5960_v42  ;;  %2460 = vmatprep.subr.bf16.mxu1 %v5962_v55 }
 0x502   :  { %v1833_v38 = vpop.f32.mrf.mxu0  ;;  %v1874_v24 = vpop.f32.mrf.mxu1 }
 0x503   :  { %v1881_v27 = vadd.f32 %v1833_v38, %v6861_v26  ;;  %v1883_v16 = vadd.f32 %v1874_v24, %v6864_v13 }
 0x504   :  { %v1835_v28 = vpop.f32.mrf.mxu0  ;;  %v1876_v29 = vpop.f32.mrf.mxu1 }
 0x505   :  { %v4680_v30 = vmul.f32 -1.442695, %v1881_v27  ;;  %v1882_v33 = vadd.f32 %v1835_v28, %v6862_v31  ;;  %v1884_v32 = vadd.f32 %v1876_v29, %v6863_v40 }
 0x506   :  { %v1837_v34 = vpop.f32.mrf.mxu0  ;;  %v1878_v35 = vpop.f32.mrf.mxu1 }
 0x507   :  { %5198 = vpow2.f32 %v4680_v30  ;;  %v4681_v36 = vmul.f32 -1.442695, %v1882_v33  ;;  %v4682_v17 = vmul.f32 -1.442695, %v1884_v32 }
 0x508   :  { %v1838_v37 = vpop.f32.mrf.mxu0  ;;  %v1879_v39 = vpop.f32.mrf.mxu1 }
 0x509   :  { %5200 = vpow2.f32 %v4681_v36  ;;  %v6865_v37 = vld [vmem:[#allocation26_spill] sm:$0xff] }
 0x50a   :  { %5202 = vtanh.f32 %v1883_v16  ;;  %v6866_v16 = vld [vmem:[#allocation28_spill] sm:$0xff] }
 0x50b   :  { %5204 = vpow2.f32 %v4682_v17 }
 0x514   :  { %v5199_v18 = vpop.eup %5198 }
 0x515   :  { %v1888_v20 = vadd.f32 1.0, %v5199_v18 }
 0x516   :  { %v5201_v15 = vpop.eup %5200 }
 0x517   :  { %5206 = vrcp.f32 %v1888_v20  ;;  %v1894_v21 = vadd.f32 1.0, %v5201_v15  ;;  %v5203_v23 = vpop.eup %5202 }
 0x518   :  { %v5205_v38 = vpop.eup %5204 }
 0x519   :  { %5208 = vrcp.f32 %v1894_v21  ;;  %v1901_v30 = vadd.f32 1.0, %v5205_v38  ;;  %v6867_v38 = vld [vmem:[#allocation29_spill] sm:$0xff] }
 0x51b   :  { %5210 = vrcp.f32 %v1901_v30 }
 0x524   :  { %v5207_v26 = vpop.eup %5206 }
 0x525   :  { %v1905_v27 = vmul.f32 %v5207_v26, %v5203_v23  ;;  %v6868_v26 = vld [vmem:[#allocation27_spill] sm:$0xff] }
 0x526   :  { %v5209_v28 = vpop.eup %5208 }
 0x527   :  { %v1904_v31 = vmul.f32 %v5209_v28, %v6063_v19 }
 0x528   :  { %v5211_v24 = vpop.eup %5210 }
 0x529   :  { %v6109_v29 = vadd.f32 %v1905_v27, %v1904_v31 }
 0x52b   :  { %5212 = vtanh.f32 %v6109_v29 }
 0x538   :  { %v5213_v33 = vpop.eup %5212 }
 0x539   :  { %v6112_v34 = vmul.f32 %v5213_v33, %v5211_v24 }
 0x53b   :  { %v1916_v35 = vpack.c.bf16 %v6112_v34, %v6112_v34 }
 0x53d   :  { %2142 = vmatmul.mubr.bf16.vlgmr.msra.gmra.mxu0 %v1916_v35  ;;  %2183 = vmatmul.mubr.bf16.vlgmr.msra.gmra.mxu1 %v1916_v35 }
 0x53e   :  { %2420 = vmatpush1.bf16.msra.mxu0 %v5964_v58  ;;  %2461 = vmatpush1.bf16.msra.mxu1 %v5966_v25 }
 0x53f   :  { %2421 = vmatprep.subr.bf16.mxu0 %v5972_v62  ;;  %2462 = vmatprep.subr.bf16.mxu1 %v5974_v3 }
 0x540   :  { %2451 = vmatprep.mubr.bf16.mxu0 %v6855_v61  ;;  %2492 = vmatprep.mubr.bf16.mxu1 %v6855_v61 }
 0x542   :  { %2422 = vmatpush1.bf16.msra.mxu0 %v5976_v56  ;;  %2463 = vmatpush1.bf16.msra.mxu1 %v5978_v51 }
 0x543   :  { %2423 = vmatprep.subr.bf16.mxu0 %v5984_v5  ;;  %2464 = vmatprep.subr.bf16.mxu1 %v5986_v7 }
 0x546   :  { %2424 = vmatpush1.bf16.msra.mxu0 %v5988_v9  ;;  %2465 = vmatpush1.bf16.msra.mxu1 %v5990_v57 }
 0x547   :  { %2425 = vmatprep.subr.bf16.mxu0 %v5996_v46  ;;  %2466 = vmatprep.subr.bf16.mxu1 %v5998_v0 }
 0x54a   :  { %2426 = vmatpush1.bf16.msra.mxu0 %v6000_v59  ;;  %2467 = vmatpush1.bf16.msra.mxu1 %v6002_v53 }
 0x54b   :  { %2427 = vmatprep.subr.bf16.mxu0 %v6006_v63  ;;  %2468 = vmatprep.subr.bf16.mxu1 %v6008_v44 }
 0x54e   :  { %2428 = vmatpush1.bf16.msra.mxu0 %v6012_v43  ;;  %2469 = vmatpush1.bf16.msra.mxu1 %v6014_v49 }
 0x54f   :  { %2429 = vmatprep.subr.bf16.mxu0 %v6018_v2  ;;  %2470 = vmatprep.subr.bf16.mxu1 %v6020_v48 }
 0x552   :  { %2430 = vmatpush1.bf16.msra.mxu0 %v6024_v14  ;;  %2471 = vmatpush1.bf16.msra.mxu1 %v6026_v1 }
 0x553   :  { %2431 = vmatprep.subr.bf16.mxu0 %v6030_v60  ;;  %2472 = vmatprep.subr.bf16.mxu1 %v6032_v54 }
 0x556   :  { %2432 = vmatpush1.bf16.msra.mxu0 %v6036_v41  ;;  %2473 = vmatpush1.bf16.msra.mxu1 %v6038_v6 }
 0x557   :  { %2433 = vmatprep.subr.bf16.mxu0 %v6042_v8  ;;  %2474 = vmatprep.subr.bf16.mxu1 %v6044_v10 }
 0x55a   :  { %2434 = vmatpush1.bf16.msra.mxu0 %v6048_v11  ;;  %2475 = vmatpush1.bf16.msra.mxu1 %v6050_v12 }
 0x55b   :  { %2729 = vmatprep.subr.bf16.mxu0 %v5960_v42  ;;  %2770 = vmatprep.subr.bf16.mxu1 %v5962_v55 }
 0x5fd   :  { %v2143_v19 = vpop.f32.mrf.mxu0  ;;  %v2184_v36 = vpop.f32.mrf.mxu1 }
 0x5fe   :  { %v2191_v39 = vadd.f32 %v2143_v19, %v6865_v37  ;;  %v2193_v55 = vadd.f32 %v2184_v36, %v6868_v26  ;;  %v5033_v26 = vld [vmem:[#allocation10 + $0xe8] ss:$16 sps:$4 sm:$0xff]  }
 0x5ff   :  { %v2145_v40 = vpop.f32.mrf.mxu0  ;;  %v2186_v32 = vpop.f32.mrf.mxu1 }
 0x600   :  { %v4715_v13 = vmul.f32 -1.442695, %v2191_v39  ;;  %v2192_v17 = vadd.f32 %v2145_v40, %v6866_v16  ;;  %v2194_v42 = vadd.f32 %v2186_v32, %v6867_v38 }
 0x601   :  { %v2147_v18 = vpop.f32.mrf.mxu0  ;;  %v2188_v20 = vpop.f32.mrf.mxu1 }
 0x602   :  { %5214 = vpow2.f32 %v4715_v13  ;;  %v4716_v15 = vmul.f32 -1.442695, %v2192_v17  ;;  %v4717_v27 = vmul.f32 -1.442695, %v2194_v42  ;;  %v5030_v42 = vld [vmem:[#allocation10 + $0xe0] ss:$16 sps:$4 sm:$0xff]  }
 0x603   :  { %v2148_v21 = vpop.f32.mrf.mxu0  ;;  %v2189_v23 = vpop.f32.mrf.mxu1 }
 0x604   :  { %5216 = vpow2.f32 %v4716_v15 }
 0x605   :  { %5218 = vtanh.f32 %v2193_v55 }
 0x606   :  { %5220 = vpow2.f32 %v4717_v27  ;;  %v5038_v27 = vld [vmem:[#allocation10 + $0xc4] ss:$16 sps:$4 sm:$0xff]  }
 0x60f   :  { %v5215_v28 = vpop.eup %5214 }
 0x610   :  { %v2198_v30 = vadd.f32 1.0, %v5215_v28  ;;  %v5041_v28 = vld [vmem:[#allocation10 + $0xcc] ss:$16 sps:$4 sm:$0xff]  }
 0x611   :  { %v5217_v31 = vpop.eup %5216 }
 0x612   :  { %5222 = vrcp.f32 %v2198_v30  ;;  %v2204_v24 = vadd.f32 1.0, %v5217_v31  ;;  %v5219_v33 = vpop.eup %5218  ;;  %v5036_v30 = vld [vmem:[#allocation10 + $0xc0] ss:$16 sps:$4 sm:$0xff]   ;;  %v5039_v31 = vld [vmem:[#allocation10 + $0xc8] ss:$16 sps:$4 sm:$0xff]  }
 0x613   :  { %v5221_v35 = vpop.eup %5220 }
 0x614   :  { %5224 = vrcp.f32 %v2204_v24  ;;  %v2211_v40 = vadd.f32 1.0, %v5221_v35  ;;  %v5044_v24 = vld [vmem:[#allocation10 + $0xa4] ss:$16 sps:$4 sm:$0xff]   ;;  %v5042_v35 = vld [vmem:[#allocation10 + $0xa0] ss:$16 sps:$4 sm:$0xff]  }
 0x616   :  { %5226 = vrcp.f32 %v2211_v40  ;;  %v5048_v40 = vld [vmem:[#allocation10 + $0x80] ss:$16 sps:$4 sm:$0xff]  }
 0x61f   :  { %v5223_v19 = vpop.eup %5222 }
 0x620   :  { %v2215_v37 = vmul.f32 %v5223_v19, %v5219_v33  ;;  %v5047_v33 = vld [vmem:[#allocation10 + $0xac] ss:$16 sps:$4 sm:$0xff]   ;;  %v5045_v19 = vld [vmem:[#allocation10 + $0xa8] ss:$16 sps:$4 sm:$0xff]  }
 0x621   :  { %v5225_v39 = vpop.eup %5224 }
 0x622   :  { %v2214_v13 = vmul.f32 %v5225_v39, %v6109_v29  ;;  %v5053_v39 = vld [vmem:[#allocation10 + $0x8c] ss:$16 sps:$4 sm:$0xff]  }
 0x623   :  { %v5227_v36 = vpop.eup %5226 }
 0x624   :  { %v6155_v32 = vadd.f32 %v2215_v37, %v2214_v13  ;;  %v5050_v37 = vld [vmem:[#allocation10 + $0x84] ss:$16 sps:$4 sm:$0xff]   ;;  %v5051_v13 = vld [vmem:[#allocation10 + $0x88] ss:$16 sps:$4 sm:$0xff]  }
 0x626   :  { %5228 = vtanh.f32 %v6155_v32 }
 0x633   :  { %v5229_v16 = vpop.eup %5228 }
 0x634   :  { %v6158_v17 = vmul.f32 %v5229_v16, %v5227_v36  ;;  %v5059_v36 = vld [vmem:[#allocation10 + $0x6c] ss:$16 sps:$4 sm:$0xff]   ;;  %v5054_v16 = vld [vmem:[#allocation10 + $0x60] ss:$16 sps:$4 sm:$0xff]  }
 0x636   :  { %v2226_v18 = vpack.c.bf16 %v6158_v17, %v6158_v17 }
 0x638   :  { %2452 = vmatmul.mubr.bf16.vlgmr.msra.gmra.mxu0 %v2226_v18  ;;  %2493 = vmatmul.mubr.bf16.vlgmr.msra.gmra.mxu1 %v2226_v18  ;;  %v5057_v18 = vld [vmem:[#allocation10 + $0x68] ss:$16 sps:$4 sm:$0xff]  }
 0x639   :  { %2730 = vmatpush1.bf16.msra.mxu0 %v5964_v58  ;;  %2771 = vmatpush1.bf16.msra.mxu1 %v5966_v25  ;;  %v5032_v58 = vld [vmem:[#allocation10 + $0xe4] ss:$16 sps:$4 sm:$0xff]   ;;  %v5035_v25 = vld [vmem:[#allocation10 + $0xec] ss:$16 sps:$4 sm:$0xff]  }
 0x63a   :  { %2731 = vmatprep.subr.bf16.mxu0 %v5972_v62  ;;  %2772 = vmatprep.subr.bf16.mxu1 %v5974_v3 }
 0x63b   :  { %2761 = vmatprep.mubr.bf16.mxu0 %v6855_v61  ;;  %2802 = vmatprep.mubr.bf16.mxu1 %v6855_v61 }
 0x63d   :  { %2732 = vmatpush1.bf16.msra.mxu0 %v5976_v56  ;;  %2773 = vmatpush1.bf16.msra.mxu1 %v5978_v51  ;;  %v6869_v56 = vld [vmem:[#allocation30_spill] sm:$0xff] }
 0x63e   :  { %2733 = vmatprep.subr.bf16.mxu0 %v5984_v5  ;;  %2774 = vmatprep.subr.bf16.mxu1 %v5986_v7 }
 0x641   :  { %2734 = vmatpush1.bf16.msra.mxu0 %v5988_v9  ;;  %2775 = vmatpush1.bf16.msra.mxu1 %v5990_v57  ;;  %v6870_v57 = vld [vmem:[#allocation32_spill] sm:$0xff] }
 0x642   :  { %2735 = vmatprep.subr.bf16.mxu0 %v5996_v46  ;;  %2776 = vmatprep.subr.bf16.mxu1 %v5998_v0 }
 0x645   :  { %2736 = vmatpush1.bf16.msra.mxu0 %v6000_v59  ;;  %2777 = vmatpush1.bf16.msra.mxu1 %v6002_v53 }
 0x646   :  { %2737 = vmatprep.subr.bf16.mxu0 %v6006_v63  ;;  %2778 = vmatprep.subr.bf16.mxu1 %v6008_v44 }
 0x649   :  { %2738 = vmatpush1.bf16.msra.mxu0 %v6012_v43  ;;  %2779 = vmatpush1.bf16.msra.mxu1 %v6014_v49  ;;  %v6871_v43 = vld [vmem:[#allocation33_spill] sm:$0xff] }
 0x64a   :  { %2739 = vmatprep.subr.bf16.mxu0 %v6018_v2  ;;  %2780 = vmatprep.subr.bf16.mxu1 %v6020_v48  ;;  %v6872_v2 = vld [vmem:[#allocation31_spill] sm:$0xff] }
 0x64d   :  { %2740 = vmatpush1.bf16.msra.mxu0 %v6024_v14  ;;  %2781 = vmatpush1.bf16.msra.mxu1 %v6026_v1 }
 0x64e   :  { %2741 = vmatprep.subr.bf16.mxu0 %v6030_v60  ;;  %2782 = vmatprep.subr.bf16.mxu1 %v6032_v54 }
 0x651   :  { %2742 = vmatpush1.bf16.msra.mxu0 %v6036_v41  ;;  %2783 = vmatpush1.bf16.msra.mxu1 %v6038_v6 }
 0x652   :  { %2743 = vmatprep.subr.bf16.mxu0 %v6042_v8  ;;  %2784 = vmatprep.subr.bf16.mxu1 %v6044_v10 }
 0x655   :  { %2744 = vmatpush1.bf16.msra.mxu0 %v6048_v11  ;;  %2785 = vmatpush1.bf16.msra.mxu1 %v6050_v12 }
 0x656   :  { %3069 = vmatprep.subr.bf16.mxu0 %v5032_v58  ;;  %3142 = vmatprep.subr.bf16.mxu1 %v5035_v25  ;;  %v5062_v58 = vld [vmem:[#allocation10 + $0x44] ss:$16 sps:$4 sm:$0xff]   ;;  %v5065_v25 = vld [vmem:[#allocation10 + $0x4c] ss:$16 sps:$4 sm:$0xff]  }
 0x6f8   :  { %v2453_v62 = vpop.f32.mrf.mxu0  ;;  %v2494_v3 = vpop.f32.mrf.mxu1 }
 0x6f9   :  { %v2501_v51 = vadd.f32 %v2453_v62, %v6869_v56  ;;  %v2503_v48 = vadd.f32 %v2494_v3, %v6872_v2  ;;  %v5060_v62 = vld [vmem:[#allocation10 + $0x40] ss:$16 sps:$4 sm:$0xff]   ;;  %v5063_v3 = vld [vmem:[#allocation10 + $0x48] ss:$16 sps:$4 sm:$0xff]   ;;  %v5068_v56 = vld [vmem:[#allocation10 + $0x24] ss:$16 sps:$4 sm:$0xff]  }
 0x6fa   :  { %v2455_v5 = vpop.f32.mrf.mxu0  ;;  %v2496_v7 = vpop.f32.mrf.mxu1  ;;  %v6246_v2 = vld [vmem:[#allocation11 + $0xac] ss:$16 sps:$4 sm:$0xff]  }
 0x6fb   :  { %v4750_v9 = vmul.f32 -1.442695, %v2501_v51  ;;  %v2502_v46 = vadd.f32 %v2455_v5, %v6870_v57  ;;  %v2504_v49 = vadd.f32 %v2496_v7, %v6871_v43  ;;  %v5071_v51 = vld [vmem:[#allocation10 + $0x2c] ss:$16 sps:$4 sm:$0xff]   ;;  %v5066_v5 = vld [vmem:[#allocation10 + $0x20] ss:$16 sps:$4 sm:$0xff]  }
 0x6fc   :  { %v2457_v0 = vpop.f32.mrf.mxu0  ;;  %v2498_v59 = vpop.f32.mrf.mxu1  ;;  %v5069_v7 = vld [vmem:[#allocation10 + $0x28] ss:$16 sps:$4 sm:$0xff]   ;;  %v5077_v57 = vld [vmem:[#allocation10 + $0xc] ss:$16 sps:$4 sm:$0xff]  }
 0x6fd   :  { %5230 = vpow2.f32 %v4750_v9  ;;  %v4751_v53 = vmul.f32 -1.442695, %v2502_v46  ;;  %v4752_v14 = vmul.f32 -1.442695, %v2504_v49  ;;  %v5074_v9 = vld [vmem:[#allocation10 + $0x4] ss:$16 sps:$4 sm:$0xff]   ;;  %v2851_v59 = vpack.c.bf16 %v5910_v52, %v5864_v50 }
 0x6fe   :  { %v2458_v63 = vpop.f32.mrf.mxu0  ;;  %v2499_v44 = vpop.f32.mrf.mxu1  ;;  %v5072_v46 = vld [vmem:[#allocation10] ss:$16 sps:$4 sm:$0xff]   ;;  %v5075_v0 = vld [vmem:[#allocation10 + $0x8] ss:$16 sps:$4 sm:$0xff]   ;;  %v6220_v50 = vld [vmem:[#allocation11 + $0xe4] ss:$16 sps:$4 sm:$0xff]  }
 0x6ff   :  { %5232 = vpow2.f32 %v4751_v53  ;;  %v2852_v53 = vpack.c.bf16 %v6066_v22, %v5954_v4  ;;  %v2853_v63 = vpack.c.bf16 %v6158_v17, %v6112_v34  ;;  %v6222_v52 = vld [vmem:[#allocation11 + $0xec] ss:$16 sps:$4 sm:$0xff]   ;;  %v6224_v4 = vld [vmem:[#allocation11 + $0xe0] ss:$16 sps:$4 sm:$0xff]   ;;  %v6226_v22 = vld [vmem:[#allocation11 + $0xe8] ss:$16 sps:$4 sm:$0xff]  }
 0x700   :  { %5234 = vtanh.f32 %v2503_v48  ;;  %v6232_v34 = vld [vmem:[#allocation11 + $0xc4] ss:$16 sps:$4 sm:$0xff]   ;;  %v6234_v17 = vld [vmem:[#allocation11 + $0xcc] ss:$16 sps:$4 sm:$0xff]   ;;  %v6236_v44 = vld [vmem:[#allocation11 + $0xc0] ss:$16 sps:$4 sm:$0xff]  }
 0x701   :  { %5236 = vpow2.f32 %v4752_v14  ;;  %v6238_v43 = vld [vmem:[#allocation11 + $0xc8] ss:$16 sps:$4 sm:$0xff]   ;;  %v6244_v49 = vld [vmem:[#allocation11 + $0xa4] ss:$16 sps:$4 sm:$0xff]   ;;  %v6248_v48 = vld [vmem:[#allocation11 + $0xa0] ss:$16 sps:$4 sm:$0xff]  }
 0x702   :  { %v6250_v14 = vld [vmem:[#allocation11 + $0xa8] ss:$16 sps:$4 sm:$0xff]  }
 0x70a   :  { %v5231_v1 = vpop.eup %5230 }
 0x70b   :  { %v2508_v60 = vadd.f32 1.0, %v5231_v1  ;;  %v6256_v1 = vld [vmem:[#allocation11 + $0x84] ss:$16 sps:$4 sm:$0xff]  }
 0x70c   :  { %v5233_v54 = vpop.eup %5232 }
 0x70d   :  { %5238 = vrcp.f32 %v2508_v60  ;;  %v2514_v41 = vadd.f32 1.0, %v5233_v54  ;;  %v5235_v6 = vpop.eup %5234  ;;  %v6258_v60 = vld [vmem:[#allocation11 + $0x8c] ss:$16 sps:$4 sm:$0xff]   ;;  %v6260_v54 = vld [vmem:[#allocation11 + $0x80] ss:$16 sps:$4 sm:$0xff]  }
 0x70e   :  { %v5237_v8 = vpop.eup %5236 }
 0x70f   :  { %5240 = vrcp.f32 %v2514_v41  ;;  %v2521_v29 = vadd.f32 1.0, %v5237_v8  ;;  %v6262_v41 = vld [vmem:[#allocation11 + $0x88] ss:$16 sps:$4 sm:$0xff]   ;;  %v6270_v8 = vld [vmem:[#allocation11 + $0x6c] ss:$16 sps:$4 sm:$0xff]  }
 0x711   :  { %5242 = vrcp.f32 %v2521_v29  ;;  %v6282_v29 = vld [vmem:[#allocation11 + $0x4c] ss:$16 sps:$4 sm:$0xff]  }
 0x71a   :  { %v5239_v10 = vpop.eup %5238 }
 0x71b   :  { %v2525_v11 = vmul.f32 %v5239_v10, %v5235_v6  ;;  %v6268_v6 = vld [vmem:[#allocation11 + $0x64] ss:$16 sps:$4 sm:$0xff]   ;;  %v6272_v10 = vld [vmem:[#allocation11 + $0x60] ss:$16 sps:$4 sm:$0xff]  }
 0x71c   :  { %v5241_v12 = vpop.eup %5240 }
 0x71d   :  { %v2524_v20 = vmul.f32 %v5241_v12, %v6155_v32  ;;  %v5056_v32 = vld [vmem:[#allocation10 + $0x64] ss:$16 sps:$4 sm:$0xff]  }
 0x71e   :  { %v5243_v21 = vpop.eup %5242  ;;  %v6280_v12 = vld [vmem:[#allocation11 + $0x44] ss:$16 sps:$4 sm:$0xff]  }
 0x71f   :  { %v6199_v15 = vadd.f32 %v2525_v11, %v2524_v20  ;;  %v6274_v11 = vld [vmem:[#allocation11 + $0x68] ss:$16 sps:$4 sm:$0xff]   ;;  %v6284_v20 = vld [vmem:[#allocation11 + $0x40] ss:$16 sps:$4 sm:$0xff]  }
 0x721   :  { %5244 = vtanh.f32 %v6199_v15 }
 0x72e   :  { %v5245_v23 = vpop.eup %5244 }
 0x72f   :  { %v6202_v38 = vmul.f32 %v5245_v23, %v5243_v21  ;;  %v6286_v21 = vld [vmem:[#allocation11 + $0x48] ss:$16 sps:$4 sm:$0xff]   ;;  %v6292_v23 = vld [vmem:[#allocation11 + $0x24] ss:$16 sps:$4 sm:$0xff]  }
 0x731   :  { %v2536_v55 = vpack.c.bf16 %v6202_v38, %v6202_v38 }
 0x733   :  { %2762 = vmatmul.mubr.bf16.vlgmr.msra.gmra.mxu0 %v2536_v55  ;;  %2803 = vmatmul.mubr.bf16.vlgmr.msra.gmra.mxu1 %v2536_v55  ;;  %v6298_v55 = vld [vmem:[#allocation11 + $0x28] ss:$16 sps:$4 sm:$0xff]  }
 0x734   :  { %3070 = vmatpush1.bf16.msra.mxu0 %v5030_v42  ;;  %3143 = vmatpush1.bf16.msra.mxu1 %v5033_v26  ;;  %v6294_v42 = vld [vmem:[#allocation11 + $0x2c] ss:$16 sps:$4 sm:$0xff]   ;;  %v6296_v26 = vld [vmem:[#allocation11 + $0x20] ss:$16 sps:$4 sm:$0xff]  }
 0x735   :  { %3071 = vmatprep.subr.bf16.mxu0 %v5038_v27  ;;  %3144 = vmatprep.subr.bf16.mxu1 %v5041_v28  ;;  %v6300_v27 = vld [vmem:[#allocation11 + $0x4] ss:$16 sps:$4 sm:$0xff]   ;;  %v6304_v28 = vld [vmem:[#allocation11 + $0xc] ss:$16 sps:$4 sm:$0xff]  }
 0x736   :  { %3101 = vmatprep.mubr.bf16.mxu0 %v6855_v61  ;;  %3174 = vmatprep.mubr.bf16.mxu1 %v6855_v61 }
 0x738   :  { %3072 = vmatpush1.bf16.msra.mxu0 %v5036_v30  ;;  %3145 = vmatpush1.bf16.msra.mxu1 %v5039_v31  ;;  %v6308_v30 = vld [vmem:[#allocation11] ss:$16 sps:$4 sm:$0xff]   ;;  %v6310_v31 = vld [vmem:[#allocation11 + $0x8] ss:$16 sps:$4 sm:$0xff]  }
 0x739   :  { %3073 = vmatprep.subr.bf16.mxu0 %v5044_v24  ;;  %3146 = vmatprep.subr.bf16.mxu1 %v5047_v33 }
 0x73c   :  { %3074 = vmatpush1.bf16.msra.mxu0 %v5042_v35  ;;  %3147 = vmatpush1.bf16.msra.mxu1 %v5045_v19  ;;  %v6873_v35 = vld [vmem:[#allocation34_spill] sm:$0xff] }
 0x73d   :  { %3075 = vmatprep.subr.bf16.mxu0 %v5050_v37  ;;  %3148 = vmatprep.subr.bf16.mxu1 %v5053_v39 }
 0x740   :  { %3076 = vmatpush1.bf16.msra.mxu0 %v5048_v40  ;;  %3149 = vmatpush1.bf16.msra.mxu1 %v5051_v13 }
 0x741   :  { %3077 = vmatprep.subr.bf16.mxu0 %v5056_v32  ;;  %3150 = vmatprep.subr.bf16.mxu1 %v5059_v36 }
 0x744   :  { %3078 = vmatpush1.bf16.msra.mxu0 %v5054_v16  ;;  %3151 = vmatpush1.bf16.msra.mxu1 %v5057_v18 }
 0x745   :  { %3079 = vmatprep.subr.bf16.mxu0 %v5062_v58  ;;  %3152 = vmatprep.subr.bf16.mxu1 %v5065_v25 }
 0x748   :  { %3080 = vmatpush1.bf16.msra.mxu0 %v5060_v62  ;;  %3153 = vmatpush1.bf16.msra.mxu1 %v5063_v3  ;;  %v6874_v62 = vld [vmem:[#allocation35_spill] sm:$0xff] }
 0x749   :  { %3081 = vmatprep.subr.bf16.mxu0 %v5068_v56  ;;  %3154 = vmatprep.subr.bf16.mxu1 %v5071_v51 }
 0x74c   :  { %3082 = vmatpush1.bf16.msra.mxu0 %v5066_v5  ;;  %3155 = vmatpush1.bf16.msra.mxu1 %v5069_v7 }
 0x74d   :  { %3083 = vmatprep.subr.bf16.mxu0 %v5074_v9  ;;  %3156 = vmatprep.subr.bf16.mxu1 %v5077_v57 }
 0x750   :  { %3084 = vmatpush1.bf16.msra.mxu0 %v5072_v46  ;;  %3157 = vmatpush1.bf16.msra.mxu1 %v5075_v0 }
 0x751   :  { %3448 = vmatprep.subr.bf16.mxu0 %v6220_v50  ;;  %3489 = vmatprep.subr.bf16.mxu1 %v6222_v52 }
 0x753   :  { %3102 = vmatmul.mubr.bf16.vlgmr.msra.gmra.mxu0 %v2851_v59  ;;  %3175 = vmatmul.mubr.bf16.vlgmr.msra.gmra.mxu1 %v2851_v59 }
 0x754   :  { %3111 = vmatprep.mubr.bf16.mxu0 %v6855_v61  ;;  %3184 = vmatprep.mubr.bf16.mxu1 %v6855_v61 }
 0x755   :  { %3449 = vmatpush1.bf16.msra.mxu0 %v6224_v4  ;;  %3490 = vmatpush1.bf16.msra.mxu1 %v6226_v22 }
 0x756   :  { %3450 = vmatprep.subr.bf16.mxu0 %v6232_v34  ;;  %3491 = vmatprep.subr.bf16.mxu1 %v6234_v17 }
 0x759   :  { %3451 = vmatpush1.bf16.msra.mxu0 %v6236_v44  ;;  %3492 = vmatpush1.bf16.msra.mxu1 %v6238_v43 }
 0x75a   :  { %3452 = vmatprep.subr.bf16.mxu0 %v6244_v49  ;;  %3493 = vmatprep.subr.bf16.mxu1 %v6246_v2 }
 0x75b   :  { %3112 = vmatmul.mubr.bf16.gmra.mxu0 %v2852_v53  ;;  %3185 = vmatmul.mubr.bf16.gmra.mxu1 %v2852_v53 }
 0x75c   :  { %3121 = vmatprep.mubr.bf16.mxu0 %v6855_v61  ;;  %3194 = vmatprep.mubr.bf16.mxu1 %v6855_v61 }
 0x75d   :  { %3453 = vmatpush1.bf16.msra.mxu0 %v6248_v48  ;;  %3494 = vmatpush1.bf16.msra.mxu1 %v6250_v14 }
 0x75e   :  { %3454 = vmatprep.subr.bf16.mxu0 %v6256_v1  ;;  %3495 = vmatprep.subr.bf16.mxu1 %v6258_v60 }
 0x761   :  { %3455 = vmatpush1.bf16.msra.mxu0 %v6260_v54  ;;  %3496 = vmatpush1.bf16.msra.mxu1 %v6262_v41 }
 0x762   :  { %3456 = vmatprep.subr.bf16.mxu0 %v6268_v6  ;;  %3497 = vmatprep.subr.bf16.mxu1 %v6270_v8 }
 0x763   :  { %3122 = vmatmul.mubr.bf16.gmra.mxu0 %v2853_v63  ;;  %3195 = vmatmul.mubr.bf16.gmra.mxu1 %v2853_v63 }
 0x764   :  { %3131 = vmatprep.mubr.bf16.mxu0 %v6855_v61  ;;  %3204 = vmatprep.mubr.bf16.mxu1 %v6855_v61 }
 0x765   :  { %3457 = vmatpush1.bf16.msra.mxu0 %v6272_v10  ;;  %3498 = vmatpush1.bf16.msra.mxu1 %v6274_v11 }
 0x766   :  { %3458 = vmatprep.subr.bf16.mxu0 %v6280_v12  ;;  %3499 = vmatprep.subr.bf16.mxu1 %v6282_v29 }
 0x769   :  { %3459 = vmatpush1.bf16.msra.mxu0 %v6284_v20  ;;  %3500 = vmatpush1.bf16.msra.mxu1 %v6286_v21 }
 0x76a   :  { %3460 = vmatprep.subr.bf16.mxu0 %v6292_v23  ;;  %3501 = vmatprep.subr.bf16.mxu1 %v6294_v42 }
 0x76d   :  { %3461 = vmatpush1.bf16.msra.mxu0 %v6296_v26  ;;  %3502 = vmatpush1.bf16.msra.mxu1 %v6298_v55 }
 0x76e   :  { %3462 = vmatprep.subr.bf16.mxu0 %v6300_v27  ;;  %3503 = vmatprep.subr.bf16.mxu1 %v6304_v28 }
 0x771   :  { %3463 = vmatpush1.bf16.msra.mxu0 %v6308_v30  ;;  %3504 = vmatpush1.bf16.msra.mxu1 %v6310_v31 }
 0x772   :  { %3563 = vmatprep.subr.bf16.mxu0 %v6220_v50  ;;  %3604 = vmatprep.subr.bf16.mxu1 %v6222_v52 }
 0x7f3   :  { %v2763_v24 = vpop.f32.mrf.mxu0  ;;  %v2804_v33 = vpop.f32.mrf.mxu1 }
 0x7f4   :  { %v2811_v19 = vadd.f32 %v2763_v24, %v6873_v35  ;;  %v2813_v3 = vadd.f32 %v2804_v33, %v6874_v62 }
 0x7f5   :  { %v2765_v37 = vpop.f32.mrf.mxu0  ;;  %v2806_v39 = vpop.f32.mrf.mxu1 }
 0x7f6   :  { %v4785_v40 = vmul.f32 -1.442695, %v2811_v19  ;;  %v2812_v13 = vadd.f32 %v2765_v37, %v5851_v45  ;;  %v2814_v25 = vadd.f32 %v2806_v39, %v5854_v47  ;;  %v6875_v37 = vmov 0.0|0.0  }
 0x7f7   :  { %v2767_v32 = vpop.f32.mrf.mxu0  ;;  %v2808_v36 = vpop.f32.mrf.mxu1 }
 0x7f8   :  { %5246 = vpow2.f32 %v4785_v40  ;;  %v4786_v16 = vmul.f32 -1.442695, %v2812_v13  ;;  %v4787_v56 = vmul.f32 -1.442695, %v2814_v25 }
 0x7f9   :  { %v2768_v18 = vpop.f32.mrf.mxu0  ;;  %v2809_v58 = vpop.f32.mrf.mxu1 }
 0x7fa   :  { %5248 = vpow2.f32 %v4786_v16 }
 0x7fb   :  { %5250 = vtanh.f32 %v2813_v3 }
 0x7fc   :  { %5252 = vpow2.f32 %v4787_v56 }
 0x805   :  { %v5247_v51 = vpop.eup %5246 }
 0x806   :  { %v2818_v5 = vadd.f32 1.0, %v5247_v51 }
 0x807   :  { %v5249_v7 = vpop.eup %5248 }
 0x808   :  { %5254 = vrcp.f32 %v2818_v5  ;;  %v2824_v9 = vadd.f32 1.0, %v5249_v7  ;;  %v5251_v45 = vpop.eup %5250 }
 0x809   :  { %v5253_v57 = vpop.eup %5252 }
 0x80a   :  { %5256 = vrcp.f32 %v2824_v9  ;;  %v2831_v53 = vadd.f32 1.0, %v5253_v57 }
 0x80c   :  { %5258 = vrcp.f32 %v2831_v53 }
 0x815   :  { %v5255_v46 = vpop.eup %5254 }
 0x816   :  { %v2835_v0 = vmul.f32 %v5255_v46, %v5251_v45 }
 0x817   :  { %v5257_v59 = vpop.eup %5256 }
 0x818   :  { %v2834_v63 = vmul.f32 %v5257_v59, %v6199_v15  ;;  %v3103_v15 = vpop.f32.mrf.mxu0 }
 0x819   :  { %v5259_v24 = vpop.eup %5258 }
 0x81a   :  { %v2836_v47 = vadd.f32 %v2835_v0, %v2834_v63  ;;  %v3105_v39 = vpop.f32.mrf.mxu0  ;;  %v2887_v63 = vld [vmem:[%s6821_s6] sm:$0xf] }
 0x81c   :  { %5260 = vtanh.f32 %v2836_v47  ;;  %v6362_v13 = vpop.f32.mrf.mxu0 }
 0x81e   :  { %v6366_v36 = vpop.f32.mrf.mxu0 }
 0x820   :  { %v6370_v18 = vpop.f32.mrf.mxu0 }
 0x822   :  { %v6374_v25 = vpop.f32.mrf.mxu0 }
 0x824   :  { %v6378_v3 = vpop.f32.mrf.mxu0 }
 0x825   :  { %6877 = vst [vmem:[#allocation18_spill] sm:$0xff] %v6378_v3 }
 0x826   :  { %v6382_v51 = vpop.f32.mrf.mxu0 }
 0x827   :  { %6879 = vst [vmem:[#allocation21_spill] sm:$0xff] %v6382_v51 }
 0x828   :  { %v6386_v7 = vpop.f32.mrf.mxu0 }
 0x829   :  { %v5261_v33 = vpop.eup %5260  ;;  %6881 = vst [vmem:[#allocation22_spill] sm:$0xff] %v6386_v7 }
 0x82a   :  { %v2838_v35 = vmul.f32 %v5261_v33, %v5259_v24  ;;  %v6390_v45 = vpop.f32.mrf.mxu0 }
 0x82b   :  { %6883 = vst [vmem:[#allocation25_spill] sm:$0xff] %v6390_v45 }
 0x82c   :  { %v2854_v19 = vpack.c.bf16 %v2838_v35, %v6202_v38  ;;  %v3176_v38 = vpop.f32.mrf.mxu1  ;;  %v6394_v46 = vpop.f32.mrf.mxu0 }
 0x82d   :  { %6885 = vst [vmem:[#allocation26_spill] sm:$0xff] %v6394_v46 }
 0x82e   :  { %3132 = vmatmul.mubr.bf16.gmra.mxu0 %v2854_v19  ;;  %3205 = vmatmul.mubr.bf16.gmra.mxu1 %v2854_v19  ;;  %v3178_v40 = vpop.f32.mrf.mxu1  ;;  %v6398_v59 = vpop.f32.mrf.mxu0  ;;  %v6893_v19 = vld [vmem:[#allocation16_spill] sm:$0xff] }
 0x82f   :  { %3480 = vmatprep.mubr.bf16.mxu0 %v6855_v61  ;;  %3521 = vmatprep.mubr.bf16.mxu1 %v6855_v61  ;;  %6887 = vst [vmem:[#allocation29_spill] sm:$0xff] %v6398_v59  ;;  %v6900_v3 = vsub.s32 3, %v6893_v19 }
 0x830   :  { %v6364_v32 = vpop.f32.mrf.mxu1 }
 0x832   :  { %v6368_v16 = vpop.f32.mrf.mxu1 }
 0x834   :  { %v6372_v58 = vpop.f32.mrf.mxu1 }
 0x835   :  { %6876 = vst [vmem:[#allocation17_spill] sm:$0xff] %v6372_v58 }
 0x836   :  { %3481 = vmatmul.mubr.bf16.vlgmr.msra.gmra.mxu0 %v6875_v37  ;;  %3522 = vmatmul.mubr.bf16.vlgmr.msra.gmra.mxu1 %v6875_v37  ;;  %v6376_v62 = vpop.f32.mrf.mxu1  ;;  %v6894_v37 = vsub.s32 0, %v6893_v19 }
 0x837   :  { %3564 = vmatpush1.bf16.msra.mxu0 %v6224_v4  ;;  %3605 = vmatpush1.bf16.msra.mxu1 %v6226_v22 }
 0x838   :  { %3565 = vmatprep.subr.bf16.mxu0 %v6232_v34  ;;  %3606 = vmatprep.subr.bf16.mxu1 %v6234_v17  ;;  %v6380_v56 = vpop.f32.mrf.mxu1  ;;  %v6415_v46 = vrot.slane %v2887_v63, %v6894_v37 }
 0x839   :  { %3595 = vmatprep.mubr.bf16.mxu0 %v6855_v61  ;;  %3636 = vmatprep.mubr.bf16.mxu1 %v6855_v61  ;;  %6878 = vst [vmem:[#allocation20_spill] sm:$0xff] %v6380_v56 }
 0x83a   :  { %v6384_v5 = vpop.f32.mrf.mxu1 }
 0x83b   :  { %3566 = vmatpush1.bf16.msra.mxu0 %v6236_v44  ;;  %3607 = vmatpush1.bf16.msra.mxu1 %v6238_v43  ;;  %6880 = vst [vmem:[#allocation19_spill] sm:$0xff] %v6384_v5 }
 0x83c   :  { %3567 = vmatprep.subr.bf16.mxu0 %v6244_v49  ;;  %3608 = vmatprep.subr.bf16.mxu1 %v6246_v2  ;;  %v6388_v9 = vpop.f32.mrf.mxu1 }
 0x83d   :  { %6882 = vst [vmem:[#allocation24_spill] sm:$0xff] %v6388_v9 }
 0x83e   :  { %v6392_v57 = vpop.f32.mrf.mxu1 }
 0x83f   :  { %3568 = vmatpush1.bf16.msra.mxu0 %v6248_v48  ;;  %3609 = vmatpush1.bf16.msra.mxu1 %v6250_v14  ;;  %6884 = vst [vmem:[#allocation23_spill] sm:$0xff] %v6392_v57 }
 0x840   :  { %3569 = vmatprep.subr.bf16.mxu0 %v6256_v1  ;;  %3610 = vmatprep.subr.bf16.mxu1 %v6258_v60  ;;  %v6396_v0 = vpop.f32.mrf.mxu1 }
 0x841   :  { %6886 = vst [vmem:[#allocation28_spill] sm:$0xff] %v6396_v0 }
 0x842   :  { %v6400_v53 = vpop.f32.mrf.mxu1 }
 0x843   :  { %3570 = vmatpush1.bf16.msra.mxu0 %v6260_v54  ;;  %3611 = vmatpush1.bf16.msra.mxu1 %v6262_v41  ;;  %6888 = vst [vmem:[#allocation27_spill] sm:$0xff] %v6400_v53  ;;  %v6897_v53 = vsub.s32 1, %v6893_v19 }
 0x844   :  { %3571 = vmatprep.subr.bf16.mxu0 %v6268_v6  ;;  %3612 = vmatprep.subr.bf16.mxu1 %v6270_v8 }
 0x845   :  { %v6423_v9 = vrot.slane %v2887_v63, %v6897_v53 }
 0x847   :  { %3572 = vmatpush1.bf16.msra.mxu0 %v6272_v10  ;;  %3613 = vmatpush1.bf16.msra.mxu1 %v6274_v11  ;;  %v3106_v45 = vadd.f32 %v3105_v39, %v6423_v9  ;;  %v6901_v39 = vsub.s32 2, %v6893_v19 }
 0x848   :  { %3573 = vmatprep.subr.bf16.mxu0 %v6280_v12  ;;  %3614 = vmatprep.subr.bf16.mxu1 %v6282_v29 }
 0x84b   :  { %3574 = vmatpush1.bf16.msra.mxu0 %v6284_v20  ;;  %3615 = vmatpush1.bf16.msra.mxu1 %v6286_v21 }
 0x84c   :  { %3575 = vmatprep.subr.bf16.mxu0 %v6292_v23  ;;  %3616 = vmatprep.subr.bf16.mxu1 %v6294_v42 }
 0x84f   :  { %3576 = vmatpush1.bf16.msra.mxu0 %v6296_v26  ;;  %3617 = vmatpush1.bf16.msra.mxu1 %v6298_v55 }
 0x850   :  { %3577 = vmatprep.subr.bf16.mxu0 %v6300_v27  ;;  %3618 = vmatprep.subr.bf16.mxu1 %v6304_v28 }
 0x853   :  { %3578 = vmatpush1.bf16.msra.mxu0 %v6308_v30  ;;  %3619 = vmatpush1.bf16.msra.mxu1 %v6310_v31 }
 0x854   :  { %3678 = vmatprep.subr.bf16.mxu0 %v6220_v50  ;;  %3719 = vmatprep.subr.bf16.mxu1 %v6222_v52 }
 0x8ee   :  { %v6405_v47 = vpop.f32.mrf.mxu0  ;;  %v6407_v24 = vpop.f32.mrf.mxu1 }
 0x8ef   :  { %6889 = vst [vmem:[#allocation30_spill] sm:$0xff] %v6405_v47  ;;  %6890 = vst [vmem:[#allocation32_spill] sm:$0xff] %v6407_v24  ;;  %v3104_v24 = vadd.f32 %v3103_v15, %v6415_v46 }
 0x8f0   :  { %v6409_v33 = vpop.f32.mrf.mxu0  ;;  %v6411_v35 = vpop.f32.mrf.mxu1 }
 0x8f1   :  { %6891 = vst [vmem:[#allocation33_spill] sm:$0xff] %v6409_v33  ;;  %6892 = vst [vmem:[#allocation31_spill] sm:$0xff] %v6411_v35 }
 0x8f2   :  { %v6417_v0 = vpop.f32.mrf.mxu0  ;;  %v6419_v59 = vpop.f32.mrf.mxu1 }
 0x8f3   :  { %6895 = vst [vmem:[#allocation34_spill] sm:$0xff] %v6417_v0  ;;  %6896 = vst [vmem:[#allocation35_spill] sm:$0xff] %v6419_v59 }
 0x8f4   :  { %v6425_v57 = vpop.f32.mrf.mxu0  ;;  %v6427_v47 = vpop.f32.mrf.mxu1 }
 0x8f5   :  { %6898 = vst [vmem:[#allocation16_spill] sm:$0xff] %v6425_v57  ;;  %6899 = vst [vmem:[#allocation36_spill] sm:$0xff] %v6427_v47  ;;  %v6433_v57 = vrot.slane %v2887_v63, %v6900_v3 }
 0x8f6   :  { %v3482_v33 = vpop.f32.mrf.mxu0  ;;  %v3523_v35 = vpop.f32.mrf.mxu1 }
 0x8f7   :  { %v3530_v37 = vadd.f32 %v3482_v33, %v3104_v24  ;;  %v3179_v15 = vadd.f32 %v3178_v40, %v6433_v57  ;;  %v6438_v24 = vrot.slane %v2887_v63, %v6901_v39 }
 0x8f8   :  { %v3484_v7 = vpop.f32.mrf.mxu0  ;;  %v3525_v56 = vpop.f32.mrf.mxu1 }
 0x8f9   :  { %v4852_v0 = vmul.f32 -1.442695, %v3530_v37  ;;  %v3531_v5 = vadd.f32 %v3484_v7, %v3106_v45  ;;  %v3533_v33 = vadd.f32 %v3525_v56, %v3179_v15  ;;  %v3177_v7 = vadd.f32 %v3176_v38, %v6438_v24 }
 0x8fa   :  { %v3486_v59 = vpop.f32.mrf.mxu0  ;;  %v3527_v51 = vpop.f32.mrf.mxu1 }
 0x8fb   :  { %5262 = vpow2.f32 %v4852_v0  ;;  %v4853_v53 = vmul.f32 -1.442695, %v3531_v5  ;;  %v4854_v45 = vmul.f32 -1.442695, %v3533_v33  ;;  %v3532_v0 = vadd.f32 %v3523_v35, %v3177_v7 }
 0x8fc   :  { %v3487_v47 = vpop.f32.mrf.mxu0  ;;  %v3528_v58 = vpop.f32.mrf.mxu1  ;;  %v3108_v33 = vadd.f32 %v6362_v13, %v6415_v46  ;;  %v3183_v13 = vadd.f32 %v6368_v16, %v6433_v57 }
 0x8fd   :  { %5264 = vpow2.f32 %v4853_v53 }
 0x8fe   :  { %5266 = vpow2.f32 %v4854_v45 }
 0x908   :  { %v5263_v51 = vpop.eup %5262 }
 0x909   :  { %v3537_v5 = vadd.f32 1.0, %v5263_v51  ;;  %v3110_v51 = vadd.f32 %v6366_v36, %v6423_v9 }
 0x90a   :  { %v5265_v59 = vpop.eup %5264 }
 0x90b   :  { %5268 = vrcp.f32 %v3537_v5  ;;  %v3543_v3 = vadd.f32 1.0, %v5265_v59  ;;  %v5267_v58 = vpop.eup %5266 }
 0x90c   :  { %5270 = vtanh.f32 %v3532_v0  ;;  %v3550_v19 = vadd.f32 1.0, %v5267_v58 }
 0x90d   :  { %5272 = vrcp.f32 %v3543_v3 }
 0x90e   :  { %5274 = vrcp.f32 %v3550_v19 }
 0x918   :  { %v5269_v47 = vpop.eup %5268 }
 0x919   :  { %v5271_v40 = vpop.eup %5270 }
 0x91a   :  { %v5273_v37 = vpop.eup %5272  ;;  %v3554_v53 = vmul.f32 %v5271_v40, %v5269_v47 }
 0x91b   :  { %v3553_v63 = vmul.f32 0.0, %v5273_v37  ;;  %v5275_v38 = vpop.eup %5274 }
 0x91d   :  { %v6441_v56 = vadd.f32 %v3554_v53, %v3553_v63 }
 0x91f   :  { %5276 = vtanh.f32 %v6441_v56 }
 0x92c   :  { %v5277_v35 = vpop.eup %5276 }
 0x92d   :  { %v3557_v15 = vmul.f32 %v5277_v35, %v5275_v38  ;;  %v3181_v38 = vadd.f32 %v6364_v32, %v6438_v24 }
 0x92f   :  { %v3562_v39 = vpack.c.bf16 %v3557_v15, %v3557_v15 }
 0x931   :  { %3596 = vmatmul.mubr.bf16.vlgmr.msra.gmra.mxu0 %v3562_v39  ;;  %3637 = vmatmul.mubr.bf16.vlgmr.msra.gmra.mxu1 %v3562_v39 }
 0x932   :  { %3679 = vmatpush1.bf16.msra.mxu0 %v6224_v4  ;;  %3720 = vmatpush1.bf16.msra.mxu1 %v6226_v22 }
 0x933   :  { %3680 = vmatprep.subr.bf16.mxu0 %v6232_v34  ;;  %3721 = vmatprep.subr.bf16.mxu1 %v6234_v17 }
 0x934   :  { %3710 = vmatprep.mubr.bf16.mxu0 %v6855_v61  ;;  %3751 = vmatprep.mubr.bf16.mxu1 %v6855_v61 }
 0x936   :  { %3681 = vmatpush1.bf16.msra.mxu0 %v6236_v44  ;;  %3722 = vmatpush1.bf16.msra.mxu1 %v6238_v43 }
 0x937   :  { %3682 = vmatprep.subr.bf16.mxu0 %v6244_v49  ;;  %3723 = vmatprep.subr.bf16.mxu1 %v6246_v2 }
 0x93a   :  { %3683 = vmatpush1.bf16.msra.mxu0 %v6248_v48  ;;  %3724 = vmatpush1.bf16.msra.mxu1 %v6250_v14 }
 0x93b   :  { %3684 = vmatprep.subr.bf16.mxu0 %v6256_v1  ;;  %3725 = vmatprep.subr.bf16.mxu1 %v6258_v60 }
 0x93e   :  { %3685 = vmatpush1.bf16.msra.mxu0 %v6260_v54  ;;  %3726 = vmatpush1.bf16.msra.mxu1 %v6262_v41 }
 0x93f   :  { %3686 = vmatprep.subr.bf16.mxu0 %v6268_v6  ;;  %3727 = vmatprep.subr.bf16.mxu1 %v6270_v8 }
 0x942   :  { %3687 = vmatpush1.bf16.msra.mxu0 %v6272_v10  ;;  %3728 = vmatpush1.bf16.msra.mxu1 %v6274_v11 }
 0x943   :  { %3688 = vmatprep.subr.bf16.mxu0 %v6280_v12  ;;  %3729 = vmatprep.subr.bf16.mxu1 %v6282_v29 }
 0x946   :  { %3689 = vmatpush1.bf16.msra.mxu0 %v6284_v20  ;;  %3730 = vmatpush1.bf16.msra.mxu1 %v6286_v21 }
 0x947   :  { %3690 = vmatprep.subr.bf16.mxu0 %v6292_v23  ;;  %3731 = vmatprep.subr.bf16.mxu1 %v6294_v42 }
 0x94a   :  { %3691 = vmatpush1.bf16.msra.mxu0 %v6296_v26  ;;  %3732 = vmatpush1.bf16.msra.mxu1 %v6298_v55 }
 0x94b   :  { %3692 = vmatprep.subr.bf16.mxu0 %v6300_v27  ;;  %3733 = vmatprep.subr.bf16.mxu1 %v6304_v28 }
 0x94e   :  { %3693 = vmatpush1.bf16.msra.mxu0 %v6308_v30  ;;  %3734 = vmatpush1.bf16.msra.mxu1 %v6310_v31 }
 0x94f   :  { %3793 = vmatprep.subr.bf16.mxu0 %v6220_v50  ;;  %3834 = vmatprep.subr.bf16.mxu1 %v6222_v52 }
 0x9f1   :  { %v3597_v7 = vpop.f32.mrf.mxu0  ;;  %v3638_v45 = vpop.f32.mrf.mxu1 }
 0x9f2   :  { %v3645_v0 = vadd.f32 %v3597_v7, %v3108_v33  ;;  %v3647_v36 = vadd.f32 %v3638_v45, %v3181_v38 }
 0x9f3   :  { %v3599_v5 = vpop.f32.mrf.mxu0  ;;  %v3640_v59 = vpop.f32.mrf.mxu1 }
 0x9f4   :  { %v4855_v3 = vmul.f32 -1.442695, %v3645_v0  ;;  %v3646_v58 = vadd.f32 %v3599_v5, %v3110_v51  ;;  %v3648_v53 = vadd.f32 %v3640_v59, %v3183_v13  ;;  %v3116_v13 = vadd.f32 %v6374_v25, %v6423_v9 }
 0x9f5   :  { %v3601_v47 = vpop.f32.mrf.mxu0  ;;  %v3642_v40 = vpop.f32.mrf.mxu1 }
 0x9f6   :  { %5278 = vpow2.f32 %v4855_v3  ;;  %v4856_v37 = vmul.f32 -1.442695, %v3646_v58  ;;  %v4857_v35 = vmul.f32 -1.442695, %v3648_v53 }
 0x9f7   :  { %v3602_v19 = vpop.f32.mrf.mxu0  ;;  %v3643_v63 = vpop.f32.mrf.mxu1 }
 0x9f8   :  { %5280 = vpow2.f32 %v4856_v37 }
 0x9f9   :  { %5282 = vtanh.f32 %v3647_v36 }
 0x9fa   :  { %5284 = vpow2.f32 %v4857_v35 }
 0xa03   :  { %v5279_v15 = vpop.eup %5278 }
 0xa04   :  { %v3652_v39 = vadd.f32 1.0, %v5279_v15 }
 0xa05   :  { %v5281_v33 = vpop.eup %5280 }
 0xa06   :  { %5286 = vrcp.f32 %v3652_v39  ;;  %v3658_v7 = vadd.f32 1.0, %v5281_v33  ;;  %v5283_v51 = vpop.eup %5282 }
 0xa07   :  { %v5285_v0 = vpop.eup %5284 }
 0xa08   :  { %5288 = vrcp.f32 %v3658_v7  ;;  %v3665_v16 = vadd.f32 1.0, %v5285_v0 }
 0xa0a   :  { %5290 = vrcp.f32 %v3665_v16 }
 0xa13   :  { %v5287_v5 = vpop.eup %5286 }
 0xa14   :  { %v3669_v3 = vmul.f32 %v5287_v5, %v5283_v51 }
 0xa15   :  { %v5289_v58 = vpop.eup %5288 }
 0xa16   :  { %v3668_v59 = vmul.f32 %v5289_v58, %v6441_v56  ;;  %v3114_v56 = vadd.f32 %v6370_v18, %v6415_v46  ;;  %v3189_v18 = vadd.f32 %v6376_v62, %v6433_v57 }
 0xa17   :  { %v5291_v32 = vpop.eup %5290 }
 0xa18   :  { %v6487_v47 = vadd.f32 %v3669_v3, %v3668_v59  ;;  %v6902_v3 = vld [vmem:[#allocation17_spill] sm:$0xff] }
 0xa19   :  { %v3187_v58 = vadd.f32 %v6902_v3, %v6438_v24 }
 0xa1a   :  { %5292 = vtanh.f32 %v6487_v47 }
 0xa27   :  { %v5293_v45 = vpop.eup %5292 }
 0xa28   :  { %v3672_v40 = vmul.f32 %v5293_v45, %v5291_v32 }
 0xa2a   :  { %v3677_v37 = vpack.c.bf16 %v3672_v40, %v3672_v40 }
 0xa2c   :  { %3711 = vmatmul.mubr.bf16.vlgmr.msra.gmra.mxu0 %v3677_v37  ;;  %3752 = vmatmul.mubr.bf16.vlgmr.msra.gmra.mxu1 %v3677_v37 }
 0xa2d   :  { %3794 = vmatpush1.bf16.msra.mxu0 %v6224_v4  ;;  %3835 = vmatpush1.bf16.msra.mxu1 %v6226_v22 }
 0xa2e   :  { %3795 = vmatprep.subr.bf16.mxu0 %v6232_v34  ;;  %3836 = vmatprep.subr.bf16.mxu1 %v6234_v17 }
 0xa2f   :  { %3825 = vmatprep.mubr.bf16.mxu0 %v6855_v61  ;;  %3866 = vmatprep.mubr.bf16.mxu1 %v6855_v61 }
 0xa31   :  { %3796 = vmatpush1.bf16.msra.mxu0 %v6236_v44  ;;  %3837 = vmatpush1.bf16.msra.mxu1 %v6238_v43 }
 0xa32   :  { %3797 = vmatprep.subr.bf16.mxu0 %v6244_v49  ;;  %3838 = vmatprep.subr.bf16.mxu1 %v6246_v2 }
 0xa35   :  { %3798 = vmatpush1.bf16.msra.mxu0 %v6248_v48  ;;  %3839 = vmatpush1.bf16.msra.mxu1 %v6250_v14 }
 0xa36   :  { %3799 = vmatprep.subr.bf16.mxu0 %v6256_v1  ;;  %3840 = vmatprep.subr.bf16.mxu1 %v6258_v60 }
 0xa39   :  { %3800 = vmatpush1.bf16.msra.mxu0 %v6260_v54  ;;  %3841 = vmatpush1.bf16.msra.mxu1 %v6262_v41 }
 0xa3a   :  { %3801 = vmatprep.subr.bf16.mxu0 %v6268_v6  ;;  %3842 = vmatprep.subr.bf16.mxu1 %v6270_v8 }
 0xa3d   :  { %3802 = vmatpush1.bf16.msra.mxu0 %v6272_v10  ;;  %3843 = vmatpush1.bf16.msra.mxu1 %v6274_v11 }
 0xa3e   :  { %3803 = vmatprep.subr.bf16.mxu0 %v6280_v12  ;;  %3844 = vmatprep.subr.bf16.mxu1 %v6282_v29 }
 0xa41   :  { %3804 = vmatpush1.bf16.msra.mxu0 %v6284_v20  ;;  %3845 = vmatpush1.bf16.msra.mxu1 %v6286_v21 }
 0xa42   :  { %3805 = vmatprep.subr.bf16.mxu0 %v6292_v23  ;;  %3846 = vmatprep.subr.bf16.mxu1 %v6294_v42 }
 0xa45   :  { %3806 = vmatpush1.bf16.msra.mxu0 %v6296_v26  ;;  %3847 = vmatpush1.bf16.msra.mxu1 %v6298_v55 }
 0xa46   :  { %3807 = vmatprep.subr.bf16.mxu0 %v6300_v27  ;;  %3848 = vmatprep.subr.bf16.mxu1 %v6304_v28 }
 0xa49   :  { %3808 = vmatpush1.bf16.msra.mxu0 %v6308_v30  ;;  %3849 = vmatpush1.bf16.msra.mxu1 %v6310_v31 }
 0xa4a   :  { %3908 = vmatprep.subr.bf16.mxu0 %v6220_v50  ;;  %3949 = vmatprep.subr.bf16.mxu1 %v6222_v52 }
 0xaec   :  { %v3712_v19 = vpop.f32.mrf.mxu0  ;;  %v3753_v63 = vpop.f32.mrf.mxu1 }
 0xaed   :  { %v3760_v53 = vadd.f32 %v3712_v19, %v3114_v56  ;;  %v3762_v25 = vadd.f32 %v3753_v63, %v3187_v58 }
 0xaee   :  { %v3714_v38 = vpop.f32.mrf.mxu0  ;;  %v3755_v36 = vpop.f32.mrf.mxu1 }
 0xaef   :  { %v4858_v35 = vmul.f32 -1.442695, %v3760_v53  ;;  %v3761_v15 = vadd.f32 %v3714_v38, %v3116_v13  ;;  %v3763_v5 = vadd.f32 %v3755_v36, %v3189_v18 }
 0xaf0   :  { %v3716_v39 = vpop.f32.mrf.mxu0  ;;  %v3757_v33 = vpop.f32.mrf.mxu1 }
 0xaf1   :  { %5294 = vpow2.f32 %v4858_v35  ;;  %v4859_v7 = vmul.f32 -1.442695, %v3761_v15  ;;  %v4860_v16 = vmul.f32 -1.442695, %v3763_v5 }
 0xaf2   :  { %v3717_v51 = vpop.f32.mrf.mxu0  ;;  %v3758_v0 = vpop.f32.mrf.mxu1 }
 0xaf3   :  { %5296 = vpow2.f32 %v4859_v7  ;;  %v6904_v0 = vld [vmem:[#allocation21_spill] sm:$0xff] }
 0xaf4   :  { %5298 = vtanh.f32 %v3762_v25  ;;  %v3120_v18 = vadd.f32 %v6904_v0, %v6423_v9 }
 0xaf5   :  { %5300 = vpow2.f32 %v4860_v16 }
 0xafe   :  { %v5295_v59 = vpop.eup %5294 }
 0xaff   :  { %v3767_v32 = vadd.f32 1.0, %v5295_v59 }
 0xb00   :  { %v5297_v45 = vpop.eup %5296 }
 0xb01   :  { %5302 = vrcp.f32 %v3767_v32  ;;  %v3773_v40 = vadd.f32 1.0, %v5297_v45  ;;  %v5299_v37 = vpop.eup %5298 }
 0xb02   :  { %v5301_v56 = vpop.eup %5300 }
 0xb03   :  { %5304 = vrcp.f32 %v3773_v40  ;;  %v3780_v62 = vadd.f32 1.0, %v5301_v56  ;;  %v6905_v56 = vld [vmem:[#allocation19_spill] sm:$0xff] }
 0xb05   :  { %5306 = vrcp.f32 %v3780_v62 }
 0xb0e   :  { %v5303_v19 = vpop.eup %5302 }
 0xb0f   :  { %v3784_v13 = vmul.f32 %v5303_v19, %v5299_v37  ;;  %v3193_v19 = vadd.f32 %v6905_v56, %v6433_v57 }
 0xb10   :  { %v5305_v53 = vpop.eup %5304 }
 0xb11   :  { %v3783_v38 = vmul.f32 %v5305_v53, %v6487_v47  ;;  %v6903_v47 = vld [vmem:[#allocation18_spill] sm:$0xff]  ;;  %v6906_v53 = vld [vmem:[#allocation20_spill] sm:$0xff] }
 0xb12   :  { %v5307_v63 = vpop.eup %5306  ;;  %v3118_v33 = vadd.f32 %v6903_v47, %v6415_v46  ;;  %v3191_v62 = vadd.f32 %v6906_v53, %v6438_v24  ;;  %v6628_v53 = vld [vmem:[#allocation11 + $0xe0] ss:$16 sps:$4 sm:$0xff]  }
 0xb13   :  { %v6533_v36 = vadd.f32 %v3784_v13, %v3783_v38 }
 0xb15   :  { %5308 = vtanh.f32 %v6533_v36 }
 0xb22   :  { %v5309_v35 = vpop.eup %5308 }
 0xb23   :  { %v3787_v15 = vmul.f32 %v5309_v35, %v5307_v63 }
 0xb25   :  { %v3792_v39 = vpack.c.bf16 %v3787_v15, %v3787_v15 }
 0xb27   :  { %3826 = vmatmul.mubr.bf16.vlgmr.msra.gmra.mxu0 %v3792_v39  ;;  %3867 = vmatmul.mubr.bf16.vlgmr.msra.gmra.mxu1 %v3792_v39 }
 0xb28   :  { %3909 = vmatpush1.bf16.msra.mxu0 %v6224_v4  ;;  %3950 = vmatpush1.bf16.msra.mxu1 %v6226_v22 }
 0xb29   :  { %3910 = vmatprep.subr.bf16.mxu0 %v6232_v34  ;;  %3951 = vmatprep.subr.bf16.mxu1 %v6234_v17 }
 0xb2a   :  { %3940 = vmatprep.mubr.bf16.mxu0 %v6855_v61  ;;  %3981 = vmatprep.mubr.bf16.mxu1 %v6855_v61 }
 0xb2c   :  { %3911 = vmatpush1.bf16.msra.mxu0 %v6236_v44  ;;  %3952 = vmatpush1.bf16.msra.mxu1 %v6238_v43 }
 0xb2d   :  { %3912 = vmatprep.subr.bf16.mxu0 %v6244_v49  ;;  %3953 = vmatprep.subr.bf16.mxu1 %v6246_v2 }
 0xb30   :  { %3913 = vmatpush1.bf16.msra.mxu0 %v6248_v48  ;;  %3954 = vmatpush1.bf16.msra.mxu1 %v6250_v14 }
 0xb31   :  { %3914 = vmatprep.subr.bf16.mxu0 %v6256_v1  ;;  %3955 = vmatprep.subr.bf16.mxu1 %v6258_v60 }
 0xb34   :  { %3915 = vmatpush1.bf16.msra.mxu0 %v6260_v54  ;;  %3956 = vmatpush1.bf16.msra.mxu1 %v6262_v41 }
 0xb35   :  { %3916 = vmatprep.subr.bf16.mxu0 %v6268_v6  ;;  %3957 = vmatprep.subr.bf16.mxu1 %v6270_v8 }
 0xb38   :  { %3917 = vmatpush1.bf16.msra.mxu0 %v6272_v10  ;;  %3958 = vmatpush1.bf16.msra.mxu1 %v6274_v11 }
 0xb39   :  { %3918 = vmatprep.subr.bf16.mxu0 %v6280_v12  ;;  %3959 = vmatprep.subr.bf16.mxu1 %v6282_v29 }
 0xb3c   :  { %3919 = vmatpush1.bf16.msra.mxu0 %v6284_v20  ;;  %3960 = vmatpush1.bf16.msra.mxu1 %v6286_v21 }
 0xb3d   :  { %3920 = vmatprep.subr.bf16.mxu0 %v6292_v23  ;;  %3961 = vmatprep.subr.bf16.mxu1 %v6294_v42 }
 0xb40   :  { %3921 = vmatpush1.bf16.msra.mxu0 %v6296_v26  ;;  %3962 = vmatpush1.bf16.msra.mxu1 %v6298_v55 }
 0xb41   :  { %3922 = vmatprep.subr.bf16.mxu0 %v6300_v27  ;;  %3963 = vmatprep.subr.bf16.mxu1 %v6304_v28 }
 0xb44   :  { %3923 = vmatpush1.bf16.msra.mxu0 %v6308_v30  ;;  %3964 = vmatpush1.bf16.msra.mxu1 %v6310_v31 }
 0xb45   :  { %4023 = vmatprep.subr.bf16.mxu0 %v6220_v50  ;;  %4064 = vmatprep.subr.bf16.mxu1 %v6222_v52 }
 0xbe7   :  { %v3827_v7 = vpop.f32.mrf.mxu0  ;;  %v3868_v51 = vpop.f32.mrf.mxu1 }
 0xbe8   :  { %v3875_v5 = vadd.f32 %v3827_v7, %v3118_v33  ;;  %v3877_v38 = vadd.f32 %v3868_v51, %v3191_v62  ;;  %v6631_v62 = vld [vmem:[#allocation11 + $0xe8] ss:$16 sps:$4 sm:$0xff]  }
 0xbe9   :  { %v3829_v3 = vpop.f32.mrf.mxu0  ;;  %v3870_v58 = vpop.f32.mrf.mxu1 }
 0xbea   :  { %v4861_v25 = vmul.f32 -1.442695, %v3875_v5  ;;  %v3876_v16 = vadd.f32 %v3829_v3, %v3120_v18  ;;  %v3878_v13 = vadd.f32 %v3870_v58, %v3193_v19 }
 0xbeb   :  { %v3831_v59 = vpop.f32.mrf.mxu0  ;;  %v3872_v32 = vpop.f32.mrf.mxu1 }
 0xbec   :  { %5310 = vpow2.f32 %v4861_v25  ;;  %v4862_v45 = vmul.f32 -1.442695, %v3876_v16  ;;  %v4863_v63 = vmul.f32 -1.442695, %v3878_v13 }
 0xbed   :  { %v3832_v40 = vpop.f32.mrf.mxu0  ;;  %v3873_v37 = vpop.f32.mrf.mxu1 }
 0xbee   :  { %5312 = vpow2.f32 %v4862_v45 }
 0xbef   :  { %5314 = vtanh.f32 %v3877_v38  ;;  %v6634_v38 = vld [vmem:[#allocation11 + $0xc4] ss:$16 sps:$4 sm:$0xff]  }
 0xbf0   :  { %5316 = vpow2.f32 %v4863_v63  ;;  %v6637_v63 = vld [vmem:[#allocation11 + $0xcc] ss:$16 sps:$4 sm:$0xff]  }
 0xbf9   :  { %v5311_v35 = vpop.eup %5310 }
 0xbfa   :  { %v3882_v15 = vadd.f32 1.0, %v5311_v35  ;;  %v6642_v35 = vld [vmem:[#allocation11 + $0xc0] ss:$16 sps:$4 sm:$0xff]  }
 0xbfb   :  { %v5313_v39 = vpop.eup %5312 }
 0xbfc   :  { %5318 = vrcp.f32 %v3882_v15  ;;  %v3888_v47 = vadd.f32 1.0, %v5313_v39  ;;  %v5315_v33 = vpop.eup %5314  ;;  %v6645_v15 = vld [vmem:[#allocation11 + $0xc8] ss:$16 sps:$4 sm:$0xff]   ;;  %v6648_v39 = vld [vmem:[#allocation11 + $0xa4] ss:$16 sps:$4 sm:$0xff]  }
 0xbfd   :  { %v5317_v7 = vpop.eup %5316 }
 0xbfe   :  { %5320 = vrcp.f32 %v3888_v47  ;;  %v3895_v3 = vadd.f32 1.0, %v5317_v7  ;;  %v6651_v47 = vld [vmem:[#allocation11 + $0xac] ss:$16 sps:$4 sm:$0xff]   ;;  %v6657_v7 = vld [vmem:[#allocation11 + $0xa8] ss:$16 sps:$4 sm:$0xff]  }
 0xc00   :  { %5322 = vrcp.f32 %v3895_v3  ;;  %v6669_v3 = vld [vmem:[#allocation11 + $0x88] ss:$16 sps:$4 sm:$0xff]  }
 0xc09   :  { %v5319_v0 = vpop.eup %5318 }
 0xc0a   :  { %v3899_v18 = vmul.f32 %v5319_v0, %v5315_v33  ;;  %v6654_v33 = vld [vmem:[#allocation11 + $0xa0] ss:$16 sps:$4 sm:$0xff]   ;;  %v6660_v0 = vld [vmem:[#allocation11 + $0x84] ss:$16 sps:$4 sm:$0xff]  }
 0xc0b   :  { %v5321_v5 = vpop.eup %5320 }
 0xc0c   :  { %v3898_v58 = vmul.f32 %v5321_v5, %v6533_v36  ;;  %v6666_v5 = vld [vmem:[#allocation11 + $0x80] ss:$16 sps:$4 sm:$0xff]  }
 0xc0d   :  { %v5323_v51 = vpop.eup %5322 }
 0xc0e   :  { %v6579_v25 = vadd.f32 %v3899_v18, %v3898_v58  ;;  %v6663_v18 = vld [vmem:[#allocation11 + $0x8c] ss:$16 sps:$4 sm:$0xff]   ;;  %v6672_v58 = vld [vmem:[#allocation11 + $0x64] ss:$16 sps:$4 sm:$0xff]  }
 0xc10   :  { %5324 = vtanh.f32 %v6579_v25 }
 0xc1d   :  { %v5325_v16 = vpop.eup %5324 }
 0xc1e   :  { %v3902_v59 = vmul.f32 %v5325_v16, %v5323_v51  ;;  %v6678_v51 = vld [vmem:[#allocation11 + $0x60] ss:$16 sps:$4 sm:$0xff]   ;;  %v6681_v16 = vld [vmem:[#allocation11 + $0x68] ss:$16 sps:$4 sm:$0xff]  }
 0xc20   :  { %v3907_v32 = vpack.c.bf16 %v3902_v59, %v3902_v59  ;;  %v6684_v59 = vld [vmem:[#allocation11 + $0x44] ss:$16 sps:$4 sm:$0xff]  }
 0xc22   :  { %3941 = vmatmul.mubr.bf16.vlgmr.msra.gmra.mxu0 %v3907_v32  ;;  %3982 = vmatmul.mubr.bf16.vlgmr.msra.gmra.mxu1 %v3907_v32  ;;  %v6687_v32 = vld [vmem:[#allocation11 + $0x4c] ss:$16 sps:$4 sm:$0xff]  }
 0xc23   :  { %4024 = vmatpush1.bf16.msra.mxu0 %v6224_v4  ;;  %4065 = vmatpush1.bf16.msra.mxu1 %v6226_v22  ;;  %v6907_v4 = vld [vmem:[#allocation22_spill] sm:$0xff] }
 0xc24   :  { %4025 = vmatprep.subr.bf16.mxu0 %v6232_v34  ;;  %4066 = vmatprep.subr.bf16.mxu1 %v6234_v17  ;;  %v3124_v22 = vadd.f32 %v6907_v4, %v6415_v46  ;;  %v6690_v4 = vld [vmem:[#allocation11 + $0x40] ss:$16 sps:$4 sm:$0xff]  }
 0xc25   :  { %4055 = vmatprep.mubr.bf16.mxu0 %v6855_v61  ;;  %4096 = vmatprep.mubr.bf16.mxu1 %v6855_v61 }
 0xc27   :  { %4026 = vmatpush1.bf16.msra.mxu0 %v6236_v44  ;;  %4067 = vmatpush1.bf16.msra.mxu1 %v6238_v43  ;;  %v6908_v44 = vld [vmem:[#allocation25_spill] sm:$0xff] }
 0xc28   :  { %4027 = vmatprep.subr.bf16.mxu0 %v6244_v49  ;;  %4068 = vmatprep.subr.bf16.mxu1 %v6246_v2  ;;  %v3126_v43 = vadd.f32 %v6908_v44, %v6423_v9  ;;  %v6702_v44 = vld [vmem:[#allocation11 + $0x20] ss:$16 sps:$4 sm:$0xff]  }
 0xc2b   :  { %4028 = vmatpush1.bf16.msra.mxu0 %v6248_v48  ;;  %4069 = vmatpush1.bf16.msra.mxu1 %v6250_v14 }
 0xc2c   :  { %4029 = vmatprep.subr.bf16.mxu0 %v6256_v1  ;;  %4070 = vmatprep.subr.bf16.mxu1 %v6258_v60 }
 0xc2f   :  { %4030 = vmatpush1.bf16.msra.mxu0 %v6260_v54  ;;  %4071 = vmatpush1.bf16.msra.mxu1 %v6262_v41 }
 0xc30   :  { %4031 = vmatprep.subr.bf16.mxu0 %v6268_v6  ;;  %4072 = vmatprep.subr.bf16.mxu1 %v6270_v8 }
 0xc33   :  { %4032 = vmatpush1.bf16.msra.mxu0 %v6272_v10  ;;  %4073 = vmatpush1.bf16.msra.mxu1 %v6274_v11  ;;  %v6910_v11 = vld [vmem:[#allocation24_spill] sm:$0xff] }
 0xc34   :  { %4033 = vmatprep.subr.bf16.mxu0 %v6280_v12  ;;  %4074 = vmatprep.subr.bf16.mxu1 %v6282_v29  ;;  %v3197_v12 = vadd.f32 %v6910_v11, %v6438_v24 }
 0xc37   :  { %4034 = vmatpush1.bf16.msra.mxu0 %v6284_v20  ;;  %4075 = vmatpush1.bf16.msra.mxu1 %v6286_v21 }
 0xc38   :  { %4035 = vmatprep.subr.bf16.mxu0 %v6292_v23  ;;  %4076 = vmatprep.subr.bf16.mxu1 %v6294_v42 }
 0xc3b   :  { %4036 = vmatpush1.bf16.msra.mxu0 %v6296_v26  ;;  %4077 = vmatpush1.bf16.msra.mxu1 %v6298_v55 }
 0xc3c   :  { %4037 = vmatprep.subr.bf16.mxu0 %v6300_v27  ;;  %4078 = vmatprep.subr.bf16.mxu1 %v6304_v28 }
 0xc3f   :  { %4038 = vmatpush1.bf16.msra.mxu0 %v6308_v30  ;;  %4079 = vmatpush1.bf16.msra.mxu1 %v6310_v31 }
 0xc40   :  { %4138 = vmatprep.subr.bf16.mxu0 %v6220_v50  ;;  %4179 = vmatprep.subr.bf16.mxu1 %v6222_v52  ;;  %v6909_v52 = vld [vmem:[#allocation23_spill] sm:$0xff] }
 0xc41   :  { %v3199_v8 = vadd.f32 %v6909_v52, %v6433_v57  ;;  %v6912_v52 = vld [vmem:[#allocation29_spill] sm:$0xff] }
 0xce2   :  { %v3942_v34 = vpop.f32.mrf.mxu0  ;;  %v3983_v17 = vpop.f32.mrf.mxu1 }
 0xce3   :  { %v3990_v49 = vadd.f32 %v3942_v34, %v3124_v22  ;;  %v3992_v29 = vadd.f32 %v3983_v17, %v3197_v12  ;;  %v6693_v22 = vld [vmem:[#allocation11 + $0x48] ss:$16 sps:$4 sm:$0xff]   ;;  %v6696_v34 = vld [vmem:[#allocation11 + $0x24] ss:$16 sps:$4 sm:$0xff]   ;;  %v6699_v17 = vld [vmem:[#allocation11 + $0x2c] ss:$16 sps:$4 sm:$0xff]  }
 0xce4   :  { %v3944_v2 = vpop.f32.mrf.mxu0  ;;  %v3985_v48 = vpop.f32.mrf.mxu1 }
 0xce5   :  { %v4864_v14 = vmul.f32 -1.442695, %v3990_v49  ;;  %v3991_v1 = vadd.f32 %v3944_v2, %v3126_v43  ;;  %v3993_v10 = vadd.f32 %v3985_v48, %v3199_v8  ;;  %v6705_v43 = vld [vmem:[#allocation11 + $0x28] ss:$16 sps:$4 sm:$0xff]   ;;  %v6708_v49 = vld [vmem:[#allocation11 + $0x4] ss:$16 sps:$4 sm:$0xff]   ;;  %v3130_v8 = vadd.f32 %v6912_v52, %v6423_v9 }
 0xce6   :  { %v3946_v60 = vpop.f32.mrf.mxu0  ;;  %v3987_v54 = vpop.f32.mrf.mxu1  ;;  %v6711_v2 = vld [vmem:[#allocation11 + $0xc] ss:$16 sps:$4 sm:$0xff]   ;;  %v6714_v48 = vld [vmem:[#allocation11] ss:$16 sps:$4 sm:$0xff]  }
 0xce7   :  { %5326 = vpow2.f32 %v4864_v14  ;;  %v4865_v41 = vmul.f32 -1.442695, %v3991_v1  ;;  %v4866_v20 = vmul.f32 -1.442695, %v3993_v10  ;;  %v6717_v14 = vld [vmem:[#allocation11 + $0x8] ss:$16 sps:$4 sm:$0xff]  }
 0xce8   :  { %v3947_v50 = vpop.f32.mrf.mxu0  ;;  %v3988_v6 = vpop.f32.mrf.mxu1  ;;  %v5420_v1 = vld [vmem:[#allocation11 + $0xe4] ss:$16 sps:$4 sm:$0xff]   ;;  %v5421_v60 = vld [vmem:[#allocation11 + $0xec] ss:$16 sps:$4 sm:$0xff]  }
 0xce9   :  { %5328 = vpow2.f32 %v4865_v41  ;;  %v6911_v54 = vld [vmem:[#allocation26_spill] sm:$0xff] }
 0xcea   :  { %5330 = vtanh.f32 %v3992_v29  ;;  %v3128_v41 = vadd.f32 %v6911_v54, %v6415_v46 }
 0xceb   :  { %5332 = vpow2.f32 %v4866_v20 }
 0xcf4   :  { %v5327_v21 = vpop.eup %5326 }
 0xcf5   :  { %v3997_v23 = vadd.f32 1.0, %v5327_v21 }
 0xcf6   :  { %v5329_v42 = vpop.eup %5328 }
 0xcf7   :  { %5334 = vrcp.f32 %v3997_v23  ;;  %v4003_v26 = vadd.f32 1.0, %v5329_v42  ;;  %v5331_v55 = vpop.eup %5330 }
 0xcf8   :  { %v5333_v27 = vpop.eup %5332 }
 0xcf9   :  { %5336 = vrcp.f32 %v4003_v26  ;;  %v4010_v36 = vadd.f32 1.0, %v5333_v27  ;;  %v6913_v27 = vld [vmem:[#allocation27_spill] sm:$0xff] }
 0xcfb   :  { %5338 = vrcp.f32 %v4010_v36 }
 0xd04   :  { %v5335_v28 = vpop.eup %5334 }
 0xd05   :  { %v4014_v30 = vmul.f32 %v5335_v28, %v5331_v55  ;;  %v3203_v28 = vadd.f32 %v6913_v27, %v6433_v57 }
 0xd06   :  { %v5337_v31 = vpop.eup %5336 }
 0xd07   :  { %v4013_v45 = vmul.f32 %v5337_v31, %v6579_v25  ;;  %v6675_v25 = vld [vmem:[#allocation11 + $0x6c] ss:$16 sps:$4 sm:$0xff]   ;;  %v6914_v31 = vld [vmem:[#allocation28_spill] sm:$0xff] }
 0xd08   :  { %v5339_v37 = vpop.eup %5338  ;;  %v3201_v36 = vadd.f32 %v6914_v31, %v6438_v24  ;;  %v5516_v31 = vmov 0.0  }
 0xd09   :  { %v6625_v40 = vadd.f32 %v4014_v30, %v4013_v45 }
 0xd0b   :  { %5340 = vtanh.f32 %v6625_v40 }
 0xd18   :  { %v5341_v56 = vpop.eup %5340 }
 0xd19   :  { %v4017_v19 = vmul.f32 %v5341_v56, %v5339_v37 }
 0xd1b   :  { %v4022_v13 = vpack.c.bf16 %v4017_v19, %v4017_v19 }
 0xd1d   :  { %4056 = vmatmul.mubr.bf16.vlgmr.msra.gmra.mxu0 %v4022_v13  ;;  %4097 = vmatmul.mubr.bf16.vlgmr.msra.gmra.mxu1 %v4022_v13 }
 0xd1e   :  { %4139 = vmatpush1.bf16.msra.mxu0 %v6628_v53  ;;  %4180 = vmatpush1.bf16.msra.mxu1 %v6631_v62 }
 0xd1f   :  { %4140 = vmatprep.subr.bf16.mxu0 %v6634_v38  ;;  %4181 = vmatprep.subr.bf16.mxu1 %v6637_v63 }
 0xd20   :  { %4170 = vmatprep.mubr.bf16.mxu0 %v6855_v61  ;;  %4211 = vmatprep.mubr.bf16.mxu1 %v6855_v61 }
 0xd22   :  { %4141 = vmatpush1.bf16.msra.mxu0 %v6642_v35  ;;  %4182 = vmatpush1.bf16.msra.mxu1 %v6645_v15 }
 0xd23   :  { %4142 = vmatprep.subr.bf16.mxu0 %v6648_v39  ;;  %4183 = vmatprep.subr.bf16.mxu1 %v6651_v47 }
 0xd26   :  { %4143 = vmatpush1.bf16.msra.mxu0 %v6654_v33  ;;  %4184 = vmatpush1.bf16.msra.mxu1 %v6657_v7 }
 0xd27   :  { %4144 = vmatprep.subr.bf16.mxu0 %v6660_v0  ;;  %4185 = vmatprep.subr.bf16.mxu1 %v6663_v18 }
 0xd2a   :  { %4145 = vmatpush1.bf16.msra.mxu0 %v6666_v5  ;;  %4186 = vmatpush1.bf16.msra.mxu1 %v6669_v3 }
 0xd2b   :  { %4146 = vmatprep.subr.bf16.mxu0 %v6672_v58  ;;  %4187 = vmatprep.subr.bf16.mxu1 %v6675_v25 }
 0xd2e   :  { %4147 = vmatpush1.bf16.msra.mxu0 %v6678_v51  ;;  %4188 = vmatpush1.bf16.msra.mxu1 %v6681_v16 }
 0xd2f   :  { %4148 = vmatprep.subr.bf16.mxu0 %v6684_v59  ;;  %4189 = vmatprep.subr.bf16.mxu1 %v6687_v32 }
 0xd32   :  { %4149 = vmatpush1.bf16.msra.mxu0 %v6690_v4  ;;  %4190 = vmatpush1.bf16.msra.mxu1 %v6693_v22 }
 0xd33   :  { %4150 = vmatprep.subr.bf16.mxu0 %v6696_v34  ;;  %4191 = vmatprep.subr.bf16.mxu1 %v6699_v17 }
 0xd36   :  { %4151 = vmatpush1.bf16.msra.mxu0 %v6702_v44  ;;  %4192 = vmatpush1.bf16.msra.mxu1 %v6705_v43 }
 0xd37   :  { %4152 = vmatprep.subr.bf16.mxu0 %v6708_v49  ;;  %4193 = vmatprep.subr.bf16.mxu1 %v6711_v2 }
 0xd3a   :  { %4153 = vmatpush1.bf16.msra.mxu0 %v6714_v48  ;;  %4194 = vmatpush1.bf16.msra.mxu1 %v6717_v14 }
 0xd3b   :  { %4253 = vmatprep.subr.bf16.mxu0 %v5420_v1  ;;  %4294 = vmatprep.subr.bf16.mxu1 %v5421_v60 }
 0xddd   :  { %v4057_v50 = vpop.f32.mrf.mxu0  ;;  %v4098_v6 = vpop.f32.mrf.mxu1 }
 0xdde   :  { %v4105_v10 = vadd.f32 %v4057_v50, %v3128_v41  ;;  %v4107_v45 = vadd.f32 %v4098_v6, %v3201_v36  ;;  %v5127_v36 = vld [vmem:[%s6822_s7 + $0x30] sm:$0xff]  }
 0xddf   :  { %v4059_v11 = vpop.f32.mrf.mxu0  ;;  %v4100_v12 = vpop.f32.mrf.mxu1 }
 0xde0   :  { %v4867_v29 = vmul.f32 -1.442695, %v4105_v10  ;;  %v4106_v20 = vadd.f32 %v4059_v11, %v3130_v8  ;;  %v4108_v30 = vadd.f32 %v4100_v12, %v3203_v28 }
 0xde1   :  { %v4061_v21 = vpop.f32.mrf.mxu0  ;;  %v4102_v23 = vpop.f32.mrf.mxu1 }
 0xde2   :  { %5342 = vpow2.f32 %v4867_v29  ;;  %v4868_v42 = vmul.f32 -1.442695, %v4106_v20  ;;  %v4869_v37 = vmul.f32 -1.442695, %v4108_v30  ;;  %v5126_v30 = vld [vmem:[%s6822_s7 + $0x38] sm:$0xff]  }
 0xde3   :  { %v4062_v26 = vpop.f32.mrf.mxu0  ;;  %v4103_v55 = vpop.f32.mrf.mxu1 }
 0xde4   :  { %5344 = vpow2.f32 %v4868_v42 }
 0xde5   :  { %5346 = vtanh.f32 %v4107_v45  ;;  %v5128_v45 = vld [vmem:[%s6822_s7 + $0x28] sm:$0xff]  }
 0xde6   :  { %5348 = vpow2.f32 %v4869_v37  ;;  %v5129_v37 = vld [vmem:[%s6822_s7 + $0x20] sm:$0xff]  }
 0xdef   :  { %v5343_v56 = vpop.eup %5342 }
 0xdf0   :  { %v4112_v19 = vadd.f32 1.0, %v5343_v56  ;;  %v5130_v56 = vld [vmem:[%s6822_s7 + $0x18] sm:$0xff]  }
 0xdf1   :  { %v5345_v13 = vpop.eup %5344 }
 0xdf2   :  { %5350 = vrcp.f32 %v4112_v19  ;;  %v4118_v1 = vadd.f32 1.0, %v5345_v13  ;;  %v5347_v60 = vpop.eup %5346  ;;  %v5131_v19 = vld [vmem:[%s6822_s7 + $0x10] sm:$0xff]   ;;  %v5132_v13 = vld [vmem:[%s6822_s7 + $0x8] sm:$0xff]  }
 0xdf3   :  { %v5349_v54 = vpop.eup %5348 }
 0xdf4   :  { %5352 = vrcp.f32 %v4118_v1  ;;  %v4125_v8 = vadd.f32 1.0, %v5349_v54  ;;  %v5133_v1 = vld [vmem:[%s6822_s7] sm:$0xff]  }
 0xdf6   :  { %5354 = vrcp.f32 %v4125_v8 }
 0xdff   :  { %v5351_v41 = vpop.eup %5350 }
 0xe00   :  { %v4129_v50 = vmul.f32 %v5351_v41, %v5347_v60  ;;  %v6919_v60 = vld [vmem:[#allocation34_spill] sm:$0xff] }
 0xe01   :  { %v5353_v52 = vpop.eup %5352  ;;  %v3138_v54 = vadd.f32 %v6919_v60, %v6415_v46 }
 0xe02   :  { %v4128_v10 = vmul.f32 %v5353_v52, %v6625_v40  ;;  %v6920_v52 = vld [vmem:[#allocation16_spill] sm:$0xff] }
 0xe03   :  { %v5355_v6 = vpop.eup %5354  ;;  %v3140_v8 = vadd.f32 %v6920_v52, %v6423_v9 }
 0xe04   :  { %v6729_v11 = vadd.f32 %v4129_v50, %v4128_v10 }
 0xe06   :  { %5356 = vtanh.f32 %v6729_v11 }
 0xe13   :  { %v5357_v12 = vpop.eup %5356 }
 0xe14   :  { %v4132_v29 = vmul.f32 %v5357_v12, %v5355_v6 }
 0xe16   :  { %v4137_v20 = vpack.c.bf16 %v4132_v29, %v4132_v29 }
 0xe18   :  { %4171 = vmatmul.mubr.bf16.vlgmr.msra.gmra.mxu0 %v4137_v20  ;;  %4212 = vmatmul.mubr.bf16.vlgmr.msra.gmra.mxu1 %v4137_v20 }
 0xe19   :  { %4254 = vmatpush1.bf16.msra.mxu0 %v6628_v53  ;;  %4295 = vmatpush1.bf16.msra.mxu1 %v6631_v62 }
 0xe1a   :  { %4255 = vmatprep.subr.bf16.mxu0 %v6634_v38  ;;  %4296 = vmatprep.subr.bf16.mxu1 %v6637_v63  ;;  %v6916_v38 = vld [vmem:[#allocation33_spill] sm:$0xff] }
 0xe1b   :  { %4285 = vmatprep.mubr.bf16.mxu0 %v6855_v61  ;;  %4326 = vmatprep.mubr.bf16.mxu1 %v6855_v61  ;;  %v6915_v61 = vld [vmem:[#allocation30_spill] sm:$0xff]  ;;  %v3136_v63 = vadd.f32 %v6916_v38, %v6423_v9  ;;  %v6921_v38 = vld [vmem:[#allocation36_spill] sm:$0xff] }
 0xe1c   :  { %v3134_v40 = vadd.f32 %v6915_v61, %v6415_v46  ;;  %v3213_v46 = vadd.f32 %v6921_v38, %v6433_v57 }
 0xe1d   :  { %4256 = vmatpush1.bf16.msra.mxu0 %v6642_v35  ;;  %4297 = vmatpush1.bf16.msra.mxu1 %v6645_v15 }
 0xe1e   :  { %4257 = vmatprep.subr.bf16.mxu0 %v6648_v39  ;;  %4298 = vmatprep.subr.bf16.mxu1 %v6651_v47 }
 0xe21   :  { %4258 = vmatpush1.bf16.msra.mxu0 %v6654_v33  ;;  %4299 = vmatpush1.bf16.msra.mxu1 %v6657_v7 }
 0xe22   :  { %4259 = vmatprep.subr.bf16.mxu0 %v6660_v0  ;;  %4300 = vmatprep.subr.bf16.mxu1 %v6663_v18 }
 0xe25   :  { %4260 = vmatpush1.bf16.msra.mxu0 %v6666_v5  ;;  %4301 = vmatpush1.bf16.msra.mxu1 %v6669_v3 }
 0xe26   :  { %4261 = vmatprep.subr.bf16.mxu0 %v6672_v58  ;;  %4302 = vmatprep.subr.bf16.mxu1 %v6675_v25  ;;  %v6917_v58 = vld [vmem:[#allocation31_spill] sm:$0xff] }
 0xe27   :  { %v3209_v25 = vadd.f32 %v6917_v58, %v6433_v57 }
 0xe29   :  { %4262 = vmatpush1.bf16.msra.mxu0 %v6678_v51  ;;  %4303 = vmatpush1.bf16.msra.mxu1 %v6681_v16  ;;  %v6918_v16 = vld [vmem:[#allocation32_spill] sm:$0xff] }
 0xe2a   :  { %4263 = vmatprep.subr.bf16.mxu0 %v6684_v59  ;;  %4304 = vmatprep.subr.bf16.mxu1 %v6687_v32  ;;  %v3207_v59 = vadd.f32 %v6918_v16, %v6438_v24 }
 0xe2d   :  { %4264 = vmatpush1.bf16.msra.mxu0 %v6690_v4  ;;  %4305 = vmatpush1.bf16.msra.mxu1 %v6693_v22 }
 0xe2e   :  { %4265 = vmatprep.subr.bf16.mxu0 %v6696_v34  ;;  %4306 = vmatprep.subr.bf16.mxu1 %v6699_v17 }
 0xe31   :  { %4266 = vmatpush1.bf16.msra.mxu0 %v6702_v44  ;;  %4307 = vmatpush1.bf16.msra.mxu1 %v6705_v43 }
 0xe32   :  { %4267 = vmatprep.subr.bf16.mxu0 %v6708_v49  ;;  %4308 = vmatprep.subr.bf16.mxu1 %v6711_v2 }
 0xe35   :  { %4268 = vmatpush1.bf16.msra.mxu0 %v6714_v48  ;;  %4309 = vmatpush1.bf16.msra.mxu1 %v6717_v14 }
 0xe36   :  { %4894 = vmatprep.subr.bf16.mxu0 %v5516_v31 }
 0xed8   :  { %v4172_v53 = vpop.f32.mrf.mxu0  ;;  %v4213_v62 = vpop.f32.mrf.mxu1 }
 0xed9   :  { %v4220_v35 = vadd.f32 %v4172_v53, %v3134_v40  ;;  %v4222_v32 = vadd.f32 %v4213_v62, %v3207_v59 }
 0xeda   :  { %v4174_v15 = vpop.f32.mrf.mxu0  ;;  %v4215_v39 = vpop.f32.mrf.mxu1 }
 0xedb   :  { %v4870_v47 = vmul.f32 -1.442695, %v4220_v35  ;;  %v4221_v33 = vadd.f32 %v4174_v15, %v3136_v63  ;;  %v4223_v51 = vadd.f32 %v4215_v39, %v3209_v25  ;;  %v6922_v35 = vld [vmem:[#allocation35_spill] sm:$0xff] }
 0xedc   :  { %v4176_v7 = vpop.f32.mrf.mxu0  ;;  %v4217_v0 = vpop.f32.mrf.mxu1  ;;  %v3211_v15 = vadd.f32 %v6922_v35, %v6438_v24 }
 0xedd   :  { %5358 = vpow2.f32 %v4870_v47  ;;  %v4871_v18 = vmul.f32 -1.442695, %v4221_v33  ;;  %v4872_v4 = vmul.f32 -1.442695, %v4223_v51 }
 0xede   :  { %v4177_v5 = vpop.f32.mrf.mxu0  ;;  %v4218_v3 = vpop.f32.mrf.mxu1 }
 0xedf   :  { %5360 = vpow2.f32 %v4871_v18 }
 0xee0   :  { %5362 = vtanh.f32 %v4222_v32 }
 0xee1   :  { %5364 = vpow2.f32 %v4872_v4 }
 0xeea   :  { %v5359_v22 = vpop.eup %5358 }
 0xeeb   :  { %v4227_v34 = vadd.f32 1.0, %v5359_v22  ;;  %v4876_v22 = vld [vmem:[%s6823_s8] ss:$0 sm:$0xff] }
 0xeec   :  { %v5361_v17 = vpop.eup %5360 }
 0xeed   :  { %5366 = vrcp.f32 %v4227_v34  ;;  %v4233_v44 = vadd.f32 1.0, %v5361_v17  ;;  %v5363_v43 = vpop.eup %5362 }
 0xeee   :  { %v5365_v49 = vpop.eup %5364 }
 0xeef   :  { %5368 = vrcp.f32 %v4233_v44  ;;  %v4240_v21 = vadd.f32 1.0, %v5365_v49 }
 0xef1   :  { %5370 = vrcp.f32 %v4240_v21 }
 0xefa   :  { %v5367_v2 = vpop.eup %5366 }
 0xefb   :  { %v4244_v48 = vmul.f32 %v5367_v2, %v5363_v43 }
 0xefc   :  { %v5369_v14 = vpop.eup %5368 }
 0xefd   :  { %v4243_v23 = vmul.f32 %v5369_v14, %v6729_v11 }
 0xefe   :  { %v5371_v26 = vpop.eup %5370 }
 0xeff   :  { %v6773_v42 = vadd.f32 %v4244_v48, %v4243_v23 }
 0xf01   :  { %5372 = vtanh.f32 %v6773_v42 }
 0xf0e   :  { %v5373_v55 = vpop.eup %5372 }
 0xf0f   :  { %v4247_v27 = vmul.f32 %v5373_v55, %v5371_v26 }
 0xf11   :  { %v4252_v28 = vpack.c.bf16 %v4247_v27, %v4247_v27 }
 0xf13   :  { %4286 = vmatmul.mubr.bf16.vlgmr.msra.gmra.mxu0 %v4252_v28  ;;  %4327 = vmatmul.mubr.bf16.vlgmr.msra.gmra.mxu1 %v4252_v28 }
 0xf14   :  { %4895 = vmatpush3.bf16.msra.mxu0 %v5126_v30  ;;  %4910 = vmatprep.mubr.msk.bf16.mxu0 %vm5517_vm1, %v5516_v31 }
 0xf15   :  { %4896 = vmatprep.subr.bf16.mxu0 %v5516_v31 }
 0xf18   :  { %4897 = vmatpush3.bf16.msra.mxu0 %v5127_v36 }
 0xf19   :  { %4898 = vmatprep.subr.bf16.mxu0 %v5516_v31 }
 0xf1c   :  { %4899 = vmatpush3.bf16.msra.mxu0 %v5128_v45 }
 0xf1d   :  { %4900 = vmatprep.subr.bf16.mxu0 %v5516_v31 }
 0xf20   :  { %4901 = vmatpush3.bf16.msra.mxu0 %v5129_v37 }
 0xf21   :  { %4902 = vmatprep.subr.bf16.mxu0 %v5516_v31 }
 0xf24   :  { %4903 = vmatpush3.bf16.msra.mxu0 %v5130_v56 }
 0xf25   :  { %4904 = vmatprep.subr.bf16.mxu0 %v5516_v31 }
 0xf28   :  { %4905 = vmatpush3.bf16.msra.mxu0 %v5131_v19 }
 0xf29   :  { %4906 = vmatprep.subr.bf16.mxu0 %v5516_v31 }
 0xf2c   :  { %4907 = vmatpush3.bf16.msra.mxu0 %v5132_v13 }
 0xf2d   :  { %4908 = vmatprep.subr.bf16.mxu0 %v5516_v31 }
 0xf30   :  { %4909 = vmatpush3.bf16.msra.mxu0 %v5133_v1 }
 0xfd3   :  { %v4287_v41 = vpop.f32.mrf.mxu0  ;;  %v4328_v50 = vpop.f32.mrf.mxu1 }
 0xfd4   :  { %v4335_v10 = vadd.f32 %v4287_v41, %v3138_v54  ;;  %v4337_v9 = vadd.f32 %v4328_v50, %v3211_v15 }
 0xfd5   :  { %v4289_v11 = vpop.f32.mrf.mxu0  ;;  %v4330_v6 = vpop.f32.mrf.mxu1 }
 0xfd6   :  { %v4873_v12 = vmul.f32 -1.442695, %v4335_v10  ;;  %v4336_v29 = vadd.f32 %v4289_v11, %v3140_v8  ;;  %v4338_v63 = vadd.f32 %v4330_v6, %v3213_v46 }
 0xfd7   :  { %v4291_v20 = vpop.f32.mrf.mxu0  ;;  %v4332_v61 = vpop.f32.mrf.mxu1 }
 0xfd8   :  { %5374 = vpow2.f32 %v4873_v12  ;;  %v4874_v40 = vmul.f32 -1.442695, %v4336_v29  ;;  %v4875_v39 = vmul.f32 -1.442695, %v4338_v63 }
 0xfd9   :  { %v4292_v53 = vpop.f32.mrf.mxu0  ;;  %v4333_v62 = vpop.f32.mrf.mxu1 }
 0xfda   :  { %5376 = vpow2.f32 %v4874_v40 }
 0xfdb   :  { %5378 = vtanh.f32 %v4337_v9 }
 0xfdc   :  { %5380 = vpow2.f32 %v4875_v39 }
 0xfe5   :  { %v5375_v47 = vpop.eup %5374 }
 0xfe6   :  { %v4342_v33 = vadd.f32 1.0, %v5375_v47 }
 0xfe7   :  { %v5377_v7 = vpop.eup %5376 }
 0xfe8   :  { %5382 = vrcp.f32 %v4342_v33  ;;  %v4348_v0 = vadd.f32 1.0, %v5377_v7  ;;  %v5379_v18 = vpop.eup %5378 }
 0xfe9   :  { %v5381_v5 = vpop.eup %5380 }
 0xfea   :  { %5384 = vrcp.f32 %v4348_v0  ;;  %v4355_v57 = vadd.f32 1.0, %v5381_v5 }
 0xfec   :  { %5386 = vrcp.f32 %v4355_v57 }
 0xff5   :  { %v5383_v3 = vpop.eup %5382 }
 0xff6   :  { %v4359_v58 = vmul.f32 %v5383_v3, %v5379_v18 }
 0xff7   :  { %v5385_v25 = vpop.eup %5384 }
 0xff8   :  { %v4358_v51 = vmul.f32 %v5385_v25, %v6773_v42 }
 0xff9   :  { %v5387_v24 = vpop.eup %5386 }
 0xffa   :  { %v4360_v16 = vadd.f32 %v4359_v58, %v4358_v51 }
 0xffc   :  { %5388 = vtanh.f32 %v4360_v16 }
0x1009   :  { %v5389_v59 = vpop.eup %5388 }
0x100a   :  { %v4362_v32 = vmul.f32 %v5389_v59, %v5387_v24 }
0x100c   :  { %v4369_v4 = vpack.c.bf16 %v4362_v32, %v4362_v32 }
0x100e   :  { %4911 = vmatmul.mubr.bf16.vlgmr.msra.gmra.mxu0 %v4369_v4 }
0x10ce   :  { %v4475_v34 = vpop.f32.mrf.mxu0 }
0x10cf   :  { %v4476_v17 = vadd.f32 %v4876_v22, %v4475_v34 }
0x10d0   :  { %v4912_v44 = vpop.f32.mrf.mxu0 }
0x10d1   :  { %vm4481_vm2 = vcmp.ge.f32.partialorder %v4476_v17, 0.0  ;;  %v4482_v43 = vmul.f32 0.01, %v4476_v17 }
0x10d2   :  { %v4478_v49 = vpop.f32.mrf.mxu0 }
0x10d3   :  { %v4483_v2 = vsel %vm4481_vm2, %v4476_v17, %v4482_v43 }
0x10d4   :  { %4484 = vst [vmem:[%s6824_s9] sm:$0xff] %v4483_v2  ;;  %v4913_v48 = vpop.f32.mrf.mxu0 }
0x10d5   :  { %4489 = vsyncpa [#allocation7], 1 }
0x10d6   :  { %4490 = vsyncpa [#allocation9], 1 }
0x10d7   :  { %4491 = vsyncpa [#allocation12], 1 }

</bundles_post_ra>
